<compile_context>
chip_gen: v6e
topology: v6e:2x2x1
jax: 0.10.0
libtpu: 0.0.40
codegen_flags: <defaults>
</compile_context>

<pallas_src>
import functools

import numpy as np
import jax
import jax.numpy as jnp
from jax import lax
from jax.experimental import pallas as pl
from jax.experimental.pallas import tpu as pltpu


# ---------------------------------------------------------------------------
# Fused kernel: streaming MeanStd pooling + Linear + BatchNorm1d + l2_norm
#               + ArcMarginProduct (target=None) in the last-step epilogue.
# ---------------------------------------------------------------------------
def xtractor_kernel(x_ref, w_ref, gamma_ref, beta_ref, warc_ref,
                    logits_ref, embn_ref,
                    sumx_ref, sumx2_ref, *, T, F, s):
    t = pl.program_id(0)

    @pl.when(t == 0)
    def _init():
        sumx_ref[...] = jnp.zeros_like(sumx_ref)
        sumx2_ref[...] = jnp.zeros_like(sumx2_ref)

    # Streaming reduction over the time axis (bf16 tile -> f32 accumulators).
    xt = x_ref[...].astype(jnp.float32)              # (B, T_tile, F)
    sumx_ref[...] += jnp.sum(xt, axis=1)             # Σx   (B, F)
    sumx2_ref[...] += jnp.sum(xt * xt, axis=1)       # Σx²  (B, F)

    @pl.when(t == pl.num_programs(0) - 1)
    def _epilogue():
        # --- MeanStdPooling (torch.std is unbiased, /(T-1)); padded time rows
        #     are zeros and contribute nothing, so use the true T here. ---
        mean = sumx_ref[...] * jnp.float32(1.0 / T)                        # (B, F)
        var = (sumx2_ref[...] - jnp.float32(T) * mean * mean) \
            * jnp.float32(1.0 / max(T - 1, 1))
        std = jnp.sqrt(jnp.maximum(var, 0.0))                              # (B, F)

        # --- Linear(2F -> E), bias=False; W split to avoid a lane concat. ---
        w_mean = w_ref[0:F, :]                                             # (F, E)
        w_std = w_ref[F:2 * F, :]                                          # (F, E)
        lin = (jnp.dot(mean, w_mean, preferred_element_type=jnp.float32)
               + jnp.dot(std, w_std, preferred_element_type=jnp.float32))  # (B, E)

        # --- BatchNorm1d, training-mode batch statistics (module default). ---
        bmean = jnp.mean(lin, axis=0, keepdims=True)
        bvar = jnp.mean((lin - bmean) ** 2, axis=0, keepdims=True)
        y = gamma_ref[...] * (lin - bmean) * lax.rsqrt(bvar + 1e-5) + beta_ref[...]

        # --- sidekit l2_norm: divide by row L2 norm (rsqrt -> EUP slot). ---
        emb = y * lax.rsqrt(jnp.sum(y * y, axis=1, keepdims=True))

        # --- F.normalize(emb, dim=1): emb is already unit-norm, keep exact. ---
        xn = emb * lax.rsqrt(jnp.maximum(
            jnp.sum(emb * emb, axis=1, keepdims=True), 1e-24))

        # --- ArcMargin (target=None): s * cos(theta); weight already
        #     normalized + transposed to (E, NSPK_pad) -> straight MXU feed. ---
        logits_ref[...] = jnp.float32(s) * jnp.dot(
            xn, warc_ref[...], preferred_element_type=jnp.float32)
        embn_ref[...] = xn


# ---------------------------------------------------------------------------
# Wrapper
# ---------------------------------------------------------------------------
def xtractor_forward(x, w_be, gamma, beta, w_arc, *, s=30.0, t_tile=None,
                     x_store_dtype=jnp.bfloat16):
    """x: (B, T, F). w_be: (2F, E). gamma/beta: (E,). w_arc: (NSPK, E).
    Returns (logits (B, NSPK), F.normalize(l2_norm-embedding) (B, E))."""
    B, T, F = x.shape
    two_f, E = w_be.shape
    assert two_f == 2 * F
    NSPK = w_arc.shape[0]

    x_bytes = np.dtype(x_store_dtype).itemsize
    x_s = x.astype(x_store_dtype)                  # bf16 HBM storage for the big tensor

    # Pre-normalize + transpose the ArcMargin weight (constant per forward) and
    # pad NSPK up to a lane-dense multiple of 128 (unmasked logits stores).
    wn = w_arc.astype(jnp.float32)
    wn = wn / jnp.maximum(jnp.sqrt(jnp.sum(wn * wn, axis=1, keepdims=True)), 1e-12)
    wn_t = wn.T                                    # (E, NSPK)
    nspk_pad = max(128, ((NSPK + 127) // 128) * 128)
    if nspk_pad != NSPK:
        wn_t = jnp.pad(wn_t, ((0, 0), (0, nspk_pad - NSPK)))

    # T tile: largest multiple of 8 whose double-buffered bf16 block fits ~24 MiB
    # (leaves headroom on v7x's 64 MiB VMEM; the rest of the working set is small).
    if t_tile is None:
        per_row = B * F * x_bytes
        t_tile = max(8, min(512, ((24 << 20) // (2 * per_row)) // 8 * 8))
    t_tile = int(min(t_tile, ((T + 7) // 8) * 8))
    nt = (T + t_tile - 1) // t_tile
    T_pad = nt * t_tile
    if T_pad != T:
        # Zero padding is exact: padded rows add nothing to Σx / Σx².
        x_s = jnp.pad(x_s, ((0, 0), (0, T_pad - T), (0, 0)))

    w_be32 = w_be.astype(jnp.float32)
    gamma2 = gamma.reshape(1, E).astype(jnp.float32)
    beta2 = beta.reshape(1, E).astype(jnp.float32)

    vmem_bytes = (2 * B * t_tile * F * x_bytes        # double-buffered x tile
                  + 2 * F * E * 4                     # w_be
                  + E * nspk_pad * 4                  # normalized ArcMargin weight
                  + 2 * (B * nspk_pad + B * E) * 4    # outputs
                  + 2 * B * F * 4                     # Σx / Σx² scratch
                  + (4 << 20))                        # headroom

    kernel = functools.partial(xtractor_kernel, T=T, F=F, s=float(s))

    logits_p, emb_n = pl.pallas_call(
        kernel,
        out_shape=(jax.ShapeDtypeStruct((B, nspk_pad), jnp.float32),
                   jax.ShapeDtypeStruct((B, E), jnp.float32)),
        grid=(nt,),
        in_specs=[
            pl.BlockSpec((B, t_tile, F), lambda t: (0, t, 0)),   # streamed x
            pl.BlockSpec((2 * F, E), lambda t: (0, 0)),          # resident weights
            pl.BlockSpec((1, E), lambda t: (0, 0)),
            pl.BlockSpec((1, E), lambda t: (0, 0)),
            pl.BlockSpec((E, nspk_pad), lambda t: (0, 0)),
        ],
        out_specs=(pl.BlockSpec((B, nspk_pad), lambda t: (0, 0)),
                   pl.BlockSpec((B, E), lambda t: (0, 0))),
        scratch_shapes=[pltpu.VMEM((B, F), jnp.float32),
                        pltpu.VMEM((B, F), jnp.float32)],
        compiler_params=pltpu.CompilerParams(
            dimension_semantics=("arbitrary",),       # time axis is a reduction
            vmem_limit_bytes=int(vmem_bytes)),
    )(x_s, w_be32, gamma2, beta2, wn_t)

    # TODO(synk): for very large speaker counts, additionally tile NSPK with a
    # "parallel" grid axis so both v7x TensorCores share the logits matmul.
    return logits_p[:, :NSPK], emb_n


# ---------------------------------------------------------------------------
# Pure-JAX reference (two-pass pooling, torch-style formulas)
# ---------------------------------------------------------------------------
def xtractor_ref(x, w_be, gamma, beta, w_arc, s=30.0):
    x = x.astype(jnp.float32)
    mean = jnp.mean(x, axis=1)
    std = jnp.sqrt(jnp.sum((x - mean[:, None, :]) ** 2, axis=1) / (x.shape[1] - 1))
    pooled = jnp.concatenate([mean, std], axis=1)
    lin = pooled @ w_be
    bmean = jnp.mean(lin, axis=0, keepdims=True)
    bvar = jnp.mean((lin - bmean) ** 2, axis=0, keepdims=True)
    y = gamma.reshape(1, -1) * (lin - bmean) / jnp.sqrt(bvar + 1e-5) + beta.reshape(1, -1)
    emb = y / jnp.sqrt(jnp.sum(y * y, axis=1, keepdims=True))
    xn = emb / jnp.maximum(jnp.linalg.norm(emb, axis=1, keepdims=True), 1e-12)
    wn = w_arc / jnp.maximum(jnp.linalg.norm(w_arc, axis=1, keepdims=True), 1e-12)
    return s * (xn @ wn.T), xn


if __name__ == "__main__":
    # Small shapes consistent with the module: HuBERT hidden F=1024 (so the
    # Linear in_features=2048 matches), T=200 frames, batch B=2, E=256, 64 speakers.
    B, T, F = 2, 200, 1024
    E, NSPK = 256, 64

    key = jax.random.PRNGKey(0)
    k_x, k_wbe, k_warc = jax.random.split(key, 3)

    # Round x to bf16-representable values so kernel (bf16 storage) and the f32
    # reference see identical inputs.
    x = jax.random.normal(k_x, (B, T, F), dtype=jnp.float32)
    x = x.astype(jnp.bfloat16).astype(jnp.float32)
    w_be = jax.random.normal(k_wbe, (2 * F, E), dtype=jnp.float32) / jnp.sqrt(2.0 * F)
    gamma = jnp.ones((E,), dtype=jnp.float32)     # BatchNorm1d default init
    beta = jnp.zeros((E,), dtype=jnp.float32)
    w_arc = jax.random.normal(k_warc, (NSPK, E), dtype=jnp.float32) / jnp.sqrt(1.0 * E)

    fwd = jax.jit(functools.partial(xtractor_forward, t_tile=128))  # 2 streamed T-steps
    logits, emb_n = jax.block_until_ready(fwd(x, w_be, gamma, beta, w_arc))

    ref_logits, ref_emb = xtractor_ref(x, w_be, gamma, beta, w_arc)
    assert logits.shape == (B, NSPK) and emb_n.shape == (B, E)
    assert jnp.allclose(logits, ref_logits, rtol=2e-3, atol=2e-3)
    assert jnp.allclose(emb_n, ref_emb, rtol=2e-3, atol=2e-3)

    # TODO(synk): the HuBERT feature-extractor branch (load_saved_states=False),
    # GRU/attentive pooling, and the margin-applying ArcMargin path (target != None)
    # are outside this synthetic kernel.
    print("KERNEL_OK")
</pallas_src>

<mosaic_0001>
module attributes {stable_mosaic.version = 11 : i64} {
  func.func @xtractor_kernel(%arg0: i32, %arg1: memref<2x128x1024xbf16, #tpu.memory_space<vmem>>, %arg2: memref<2048x256xf32, #tpu.memory_space<vmem>>, %arg3: memref<1x256xf32, #tpu.memory_space<vmem>>, %arg4: memref<1x256xf32, #tpu.memory_space<vmem>>, %arg5: memref<256x128xf32, #tpu.memory_space<vmem>>, %arg6: memref<2x128xf32, #tpu.memory_space<vmem>>, %arg7: memref<2x256xf32, #tpu.memory_space<vmem>>, %arg8: memref<2x1024xf32, #tpu.memory_space<vmem>>, %arg9: memref<2x1024xf32, #tpu.memory_space<vmem>>) attributes {dimension_semantics = [#tpu.dimension_semantics<arbitrary>], iteration_bounds = array<i64: 2>, scalar_prefetch = 0 : i64, scratch_operands = 2 : i64, tpu.core_type = #tpu.core_type<tc>, window_params = [{transform_indices = @transform_0, window_bounds = array<i64: 2, 128, 1024>}, {pipeline_mode = #tpu.pipeline_mode<synchronous>, transform_indices = @transform_1, window_bounds = array<i64: 2048, 256>}, {pipeline_mode = #tpu.pipeline_mode<synchronous>, transform_indices = @transform_2, window_bounds = array<i64: 1, 256>}, {pipeline_mode = #tpu.pipeline_mode<synchronous>, transform_indices = @transform_3, window_bounds = array<i64: 1, 256>}, {pipeline_mode = #tpu.pipeline_mode<synchronous>, transform_indices = @transform_4, window_bounds = array<i64: 256, 128>}, {pipeline_mode = #tpu.pipeline_mode<synchronous>, transform_indices = @transform_5, window_bounds = array<i64: 2, 128>}, {pipeline_mode = #tpu.pipeline_mode<synchronous>, transform_indices = @transform_6, window_bounds = array<i64: 2, 256>}]} {
    %c0_i32 = arith.constant 0 : i32
    %0 = arith.cmpi eq, %arg0, %c0_i32 : i32
    %1 = arith.extui %0 : i1 to i32
    %c0_i32_0 = arith.constant 0 : i32
    %2 = arith.cmpi ne, %1, %c0_i32_0 : i32
    scf.if %2 {
      %cst_13 = arith.constant 0.000000e+00 : f32
      %17 = vector.broadcast %cst_13 : f32 to vector<2x1024xf32>
      %c0_14 = arith.constant 0 : index
      %c0_15 = arith.constant 0 : index
      %18 = vector.load %arg8[%c0_14, %c0_15] : memref<2x1024xf32, #tpu.memory_space<vmem>>, vector<2x1024xf32>
      tpu.vector_store %arg8[%c0_14, %c0_15], %17 {strides = array<i32>} : memref<2x1024xf32, #tpu.memory_space<vmem>>, vector<2x1024xf32>,
      %cst_16 = arith.constant 0.000000e+00 : f32
      %19 = vector.broadcast %cst_16 : f32 to vector<2x1024xf32>
      %c0_17 = arith.constant 0 : index
      %c0_18 = arith.constant 0 : index
      %20 = vector.load %arg9[%c0_17, %c0_18] : memref<2x1024xf32, #tpu.memory_space<vmem>>, vector<2x1024xf32>
      tpu.vector_store %arg9[%c0_17, %c0_18], %19 {strides = array<i32>} : memref<2x1024xf32, #tpu.memory_space<vmem>>, vector<2x1024xf32>,
    } else {
    }
    %c0 = arith.constant 0 : index
    %c0_1 = arith.constant 0 : index
    %c0_2 = arith.constant 0 : index
    %3 = vector.load %arg1[%c0, %c0_1, %c0_2] : memref<2x128x1024xbf16, #tpu.memory_space<vmem>>, vector<2x128x1024xbf16>
    %4 = arith.extf %3 : vector<2x128x1024xbf16> to vector<2x128x1024xf32>
    %c0_3 = arith.constant 0 : index
    %c0_4 = arith.constant 0 : index
    %5 = vector.load %arg8[%c0_3, %c0_4] : memref<2x1024xf32, #tpu.memory_space<vmem>>, vector<2x1024xf32>
    %cst = arith.constant dense<0.000000e+00> : vector<2x1024xf32>
    %6 = vector.multi_reduction <add>, %4, %cst [1] : vector<2x128x1024xf32> to vector<2x1024xf32>
    %7 = arith.addf %5, %6 : vector<2x1024xf32>
    %c0_5 = arith.constant 0 : index
    %c0_6 = arith.constant 0 : index
    %8 = vector.load %arg8[%c0_5, %c0_6] : memref<2x1024xf32, #tpu.memory_space<vmem>>, vector<2x1024xf32>
    tpu.vector_store %arg8[%c0_5, %c0_6], %7 {strides = array<i32>} : memref<2x1024xf32, #tpu.memory_space<vmem>>, vector<2x1024xf32>,
    %c0_7 = arith.constant 0 : index
    %c0_8 = arith.constant 0 : index
    %9 = vector.load %arg9[%c0_7, %c0_8] : memref<2x1024xf32, #tpu.memory_space<vmem>>, vector<2x1024xf32>
    %10 = arith.mulf %4, %4 : vector<2x128x1024xf32>
    %cst_9 = arith.constant dense<0.000000e+00> : vector<2x1024xf32>
    %11 = vector.multi_reduction <add>, %10, %cst_9 [1] : vector<2x128x1024xf32> to vector<2x1024xf32>
    %12 = arith.addf %9, %11 : vector<2x1024xf32>
    %c0_10 = arith.constant 0 : index
    %c0_11 = arith.constant 0 : index
    %13 = vector.load %arg9[%c0_10, %c0_11] : memref<2x1024xf32, #tpu.memory_space<vmem>>, vector<2x1024xf32>
    tpu.vector_store %arg9[%c0_10, %c0_11], %12 {strides = array<i32>} : memref<2x1024xf32, #tpu.memory_space<vmem>>, vector<2x1024xf32>,
    %c1_i32 = arith.constant 1 : i32
    %14 = arith.cmpi eq, %arg0, %c1_i32 : i32
    %15 = arith.extui %14 : i1 to i32
    %c0_i32_12 = arith.constant 0 : i32
    %16 = arith.cmpi ne, %15, %c0_i32_12 : i32
    scf.if %16 {
      %c0_13 = arith.constant 0 : index
      %c0_14 = arith.constant 0 : index
      %17 = vector.load %arg8[%c0_13, %c0_14] : memref<2x1024xf32, #tpu.memory_space<vmem>>, vector<2x1024xf32>
      %cst_15 = arith.constant 5.000000e-03 : f32
      %18 = vector.broadcast %cst_15 : f32 to vector<2x1024xf32>
      %19 = arith.mulf %17, %18 : vector<2x1024xf32>
      %c0_16 = arith.constant 0 : index
      %c0_17 = arith.constant 0 : index
      %20 = vector.load %arg9[%c0_16, %c0_17] : memref<2x1024xf32, #tpu.memory_space<vmem>>, vector<2x1024xf32>
      %cst_18 = arith.constant 2.000000e+02 : f32
      %21 = vector.broadcast %cst_18 : f32 to vector<2x1024xf32>
      %22 = arith.mulf %21, %19 : vector<2x1024xf32>
      %23 = arith.mulf %22, %19 : vector<2x1024xf32>
      %24 = arith.subf %20, %23 : vector<2x1024xf32>
      %cst_19 = arith.constant 0.00502512557 : f32
      %25 = vector.broadcast %cst_19 : f32 to vector<2x1024xf32>
      %26 = arith.mulf %24, %25 : vector<2x1024xf32>
      %cst_20 = arith.constant 0.000000e+00 : f32
      %27 = vector.broadcast %cst_20 : f32 to vector<2x1024xf32>
      %28 = arith.maximumf %26, %27 : vector<2x1024xf32>
      %29 = math.sqrt %28 : vector<2x1024xf32>
      %c0_21 = arith.constant 0 : index
      %c0_22 = arith.constant 0 : index
      %30 = vector.load %arg2[%c0_21, %c0_22] : memref<2048x256xf32, #tpu.memory_space<vmem>>, vector<1024x256xf32>
      %c1024 = arith.constant 1024 : index
      %c0_23 = arith.constant 0 : index
      %31 = vector.load %arg2[%c1024, %c0_23] : memref<2048x256xf32, #tpu.memory_space<vmem>>, vector<1024x256xf32>
      %cst_24 = arith.constant dense<0.000000e+00> : vector<2x256xf32>
      %32 = tpu.matmul %19, %30, %cst_24 {dimension_numbers = #tpu.dot_dimension_numbers<[1], [0], [0], [1], [0, 0, 1, 1], [], []>} : vector<2x1024xf32>, vector<1024x256xf32>, vector<2x256xf32> -> vector<2x256xf32>
      %cst_25 = arith.constant dense<0.000000e+00> : vector<2x256xf32>
      %33 = tpu.matmul %29, %31, %cst_25 {dimension_numbers = #tpu.dot_dimension_numbers<[1], [0], [0], [1], [0, 0, 1, 1], [], []>} : vector<2x1024xf32>, vector<1024x256xf32>, vector<2x256xf32> -> vector<2x256xf32>
      %34 = arith.addf %32, %33 : vector<2x256xf32>
      %cst_26 = arith.constant dense<0.000000e+00> : vector<256xf32>
      %35 = vector.multi_reduction <add>, %34, %cst_26 [0] : vector<2x256xf32> to vector<256xf32>
      %36 = vector.shape_cast %35 : vector<256xf32> to vector<1x256xf32>
      %cst_27 = arith.constant 2.000000e+00 : f32
      %37 = vector.broadcast %cst_27 : f32 to vector<1x256xf32>
      %38 = arith.divf %36, %37 : vector<1x256xf32>
      %39 = vector.broadcast %38 : vector<1x256xf32> to vector<2x256xf32>
      %40 = arith.subf %34, %39 : vector<2x256xf32>
      %41 = arith.mulf %40, %40 : vector<2x256xf32>
      %cst_28 = arith.constant dense<0.000000e+00> : vector<256xf32>
      %42 = vector.multi_reduction <add>, %41, %cst_28 [0] : vector<2x256xf32> to vector<256xf32>
      %43 = vector.shape_cast %42 : vector<256xf32> to vector<1x256xf32>
      %cst_29 = arith.constant 2.000000e+00 : f32
      %44 = vector.broadcast %cst_29 : f32 to vector<1x256xf32>
      %45 = arith.divf %43, %44 : vector<1x256xf32>
      %c0_30 = arith.constant 0 : index
      %c0_31 = arith.constant 0 : index
      %46 = vector.load %arg3[%c0_30, %c0_31] : memref<1x256xf32, #tpu.memory_space<vmem>>, vector<1x256xf32>
      %47 = vector.broadcast %38 : vector<1x256xf32> to vector<2x256xf32>
      %48 = arith.subf %34, %47 : vector<2x256xf32>
      %49 = vector.broadcast %46 : vector<1x256xf32> to vector<2x256xf32>
      %50 = arith.mulf %49, %48 : vector<2x256xf32>
      %cst_32 = arith.constant 9.99999974E-6 : f32
      %51 = vector.broadcast %cst_32 : f32 to vector<1x256xf32>
      %52 = arith.addf %45, %51 : vector<1x256xf32>
      %53 = math.rsqrt %52 : vector<1x256xf32>
      %54 = vector.broadcast %53 : vector<1x256xf32> to vector<2x256xf32>
      %55 = arith.mulf %50, %54 : vector<2x256xf32>
      %c0_33 = arith.constant 0 : index
      %c0_34 = arith.constant 0 : index
      %56 = vector.load %arg4[%c0_33, %c0_34] : memref<1x256xf32, #tpu.memory_space<vmem>>, vector<1x256xf32>
      %57 = vector.broadcast %56 : vector<1x256xf32> to vector<2x256xf32>
      %58 = arith.addf %55, %57 : vector<2x256xf32>
      %59 = arith.mulf %58, %58 : vector<2x256xf32>
      %cst_35 = arith.constant dense<0.000000e+00> : vector<2xf32>
      %60 = vector.multi_reduction <add>, %59, %cst_35 [1] : vector<2x256xf32> to vector<2xf32>
      %61 = vector.shape_cast %60 : vector<2xf32> to vector<2x1xf32>
      %62 = math.rsqrt %61 : vector<2x1xf32>
      %63 = vector.broadcast %62 : vector<2x1xf32> to vector<2x256xf32>
      %64 = arith.mulf %58, %63 : vector<2x256xf32>
      %65 = arith.mulf %64, %64 : vector<2x256xf32>
      %cst_36 = arith.constant dense<0.000000e+00> : vector<2xf32>
      %66 = vector.multi_reduction <add>, %65, %cst_36 [1] : vector<2x256xf32> to vector<2xf32>
      %67 = vector.shape_cast %66 : vector<2xf32> to vector<2x1xf32>
      %cst_37 = arith.constant 1.000000e-24 : f32
      %68 = vector.broadcast %cst_37 : f32 to vector<2x1xf32>
      %69 = arith.maximumf %67, %68 : vector<2x1xf32>
      %70 = math.rsqrt %69 : vector<2x1xf32>
      %71 = vector.broadcast %70 : vector<2x1xf32> to vector<2x256xf32>
      %72 = arith.mulf %64, %71 : vector<2x256xf32>
      %c0_38 = arith.constant 0 : index
      %c0_39 = arith.constant 0 : index
      %73 = vector.load %arg5[%c0_38, %c0_39] : memref<256x128xf32, #tpu.memory_space<vmem>>, vector<256x128xf32>
      %cst_40 = arith.constant dense<0.000000e+00> : vector<2x128xf32>
      %74 = tpu.matmul %72, %73, %cst_40 {dimension_numbers = #tpu.dot_dimension_numbers<[1], [0], [0], [1], [0, 0, 1, 1], [], []>} : vector<2x256xf32>, vector<256x128xf32>, vector<2x128xf32> -> vector<2x128xf32>
      %cst_41 = arith.constant 3.000000e+01 : f32
      %75 = vector.broadcast %cst_41 : f32 to vector<2x128xf32>
      %76 = arith.mulf %75, %74 : vector<2x128xf32>
      %c0_42 = arith.constant 0 : index
      %c0_43 = arith.constant 0 : index
      %77 = vector.load %arg6[%c0_42, %c0_43] : memref<2x128xf32, #tpu.memory_space<vmem>>, vector<2x128xf32>
      tpu.vector_store %arg6[%c0_42, %c0_43], %76 {strides = array<i32>} : memref<2x128xf32, #tpu.memory_space<vmem>>, vector<2x128xf32>,
      %c0_44 = arith.constant 0 : index
      %c0_45 = arith.constant 0 : index
      %78 = vector.load %arg7[%c0_44, %c0_45] : memref<2x256xf32, #tpu.memory_space<vmem>>, vector<2x256xf32>
      tpu.vector_store %arg7[%c0_44, %c0_45], %72 {strides = array<i32>} : memref<2x256xf32, #tpu.memory_space<vmem>>, vector<2x256xf32>,
    } else {
    }
    return
  }
  func.func @transform_0(%arg0: i32) -> (i32, i32, i32) {
    %c0_i32 = arith.constant 0 : i32
    %c0_i32_0 = arith.constant 0 : i32
    %c0_i32_1 = arith.constant 0 : i32
    return %c0_i32, %arg0, %c0_i32_0 : i32, i32, i32
  }
  func.func @transform_1(%arg0: i32) -> (i32, i32) {
    %c0_i32 = arith.constant 0 : i32
    %c0_i32_0 = arith.constant 0 : i32
    %c0_i32_1 = arith.constant 0 : i32
    return %c0_i32, %c0_i32_0 : i32, i32
  }
  func.func @transform_2(%arg0: i32) -> (i32, i32) {
    %c0_i32 = arith.constant 0 : i32
    %c0_i32_0 = arith.constant 0 : i32
    %c0_i32_1 = arith.constant 0 : i32
    return %c0_i32, %c0_i32_0 : i32, i32
  }
  func.func @transform_3(%arg0: i32) -> (i32, i32) {
    %c0_i32 = arith.constant 0 : i32
    %c0_i32_0 = arith.constant 0 : i32
    %c0_i32_1 = arith.constant 0 : i32
    return %c0_i32, %c0_i32_0 : i32, i32
  }
  func.func @transform_4(%arg0: i32) -> (i32, i32) {
    %c0_i32 = arith.constant 0 : i32
    %c0_i32_0 = arith.constant 0 : i32
    %c0_i32_1 = arith.constant 0 : i32
    return %c0_i32, %c0_i32_0 : i32, i32
  }
  func.func @transform_5(%arg0: i32) -> (i32, i32) {
    %c0_i32 = arith.constant 0 : i32
    %c0_i32_0 = arith.constant 0 : i32
    %c0_i32_1 = arith.constant 0 : i32
    return %c0_i32, %c0_i32_0 : i32, i32
  }
  func.func @transform_6(%arg0: i32) -> (i32, i32) {
    %c0_i32 = arith.constant 0 : i32
    %c0_i32_0 = arith.constant 0 : i32
    %c0_i32_1 = arith.constant 0 : i32
    return %c0_i32, %c0_i32_0 : i32, i32
  }
}

</mosaic_0001>

<bundles_post_ra>
// kernel: xtractor_forward.1
= control target key start
LH: loop header
LB: loop body
LE: loop exit
PB: predicated region body
PF: predicated region fallthrough
CT: control target
= control target key end

     0   :  { %12 = vsyncpa [#allocation6], 0  ;;  %s7545_s0 = inlined_call_operand.vmem [shape: bf16[2,256,1024], index: 0, kind: input, shape index: {}]   ;;  %s7546_s1 = inlined_call_operand.vmem [shape: f32[2048,256], index: 1, kind: input, shape index: {}]   ;;  %s7547_s2 = inlined_call_operand.vmem [shape: f32[1,256], index: 2, kind: input, shape index: {}]   ;;  %s7548_s3 = inlined_call_operand.vmem [shape: f32[1,256], index: 3, kind: input, shape index: {}]   ;;  %s7549_s4 = inlined_call_operand.vmem [shape: f32[256,128], index: 4, kind: input, shape index: {}]   ;;  %s7550_s5 = inlined_call_operand.hbm [shape: f32[2,128], index: 5, kind: output, shape index: {0}]   ;;  %s7551_s6 = inlined_call_operand.hbm [shape: f32[2,256], index: 6, kind: output, shape index: {1}]  }
   0x1   :  { %13 = vsyncpa [#allocation8], 0  ;;  %s4019_s21 = smov 0   ;;  %s4021_s22 = smov 0  }
   0x2   :  { %s4023_s23 = smov 0  }
   0x3 LB: > { %s4035_s24 = sadd.s32 4294967295, %s3977_s23   ;;  %s4038_s25 = sadd.s32 1, %s3977_s23   ;;  %s3977_s23 = sphi %s4023_s23, %s8371_s23   ;;  %s3973_s22 = sphi %s4021_s22, %s8370_s22   ;;  %s3969_s21 = sphi %s4019_s21, %s8369_s21  }
   0x4   : > { %s23_s26 = ssub.s32 %s3977_s23, %s4038_s25  ;;  %s26_s27 = sadd.s32 1, %s3973_s22 }
   0x5   : > { %p24_p0 = scmp.eq.s32.totalorder %s23_s26, 0  ;;  %p33_p1 = scmp.ne.s32.totalorder %s3973_s22, %s3969_s21 }
   0x6   : > { %p34_p2 = scmp.eq.s32.totalorder %s3977_s23, 0  ;;  %p3538_p4 = scmp.ge.s32.totalorder %s3977_s23, 2 }
   0x7   : > { %s4047_s28 = scalar_select %p24_p0, %s3973_s22, %s26_s27  }
   0x8   : > { %p35_p3 = por %p34_p2, %p33_p1  ;;  %197 = sbr.rel (%p3538_p4) target bundleno = 81 (0x51), region = 32 }
   0xd   : > { %200 = sbr.rel (!%p35_p3) target bundleno = 81 (0x51), region = 36  ;;  %s202_s29 = sand.u32 (%p35_p3), 1, %s3973_s22  }
   0xe   : > { %s3555_s30 = sshll.u32 (%p35_p3), %s3977_s23, 9  ;;  %s3539_s7 = sshll.u32 (%p35_p3), %s202_s29, 10 }
   0xf   : > { %s4055_s10 = scalar_lea.vmem (%p35_p3), %s7545_s0, %s3555_s30  ;;  %s4060_s11 = scalar_lea.vmem (%p35_p3), [#allocation4], %s3539_s7 }
  0x10   : > { %v221_v0 = vld [vmem:[%s4055_s10] sm:$0xff] (%p35_p3)  ;;  %v223_v1 = vld [vmem:[%s4055_s10 + $0x8] sm:$0xff] (%p35_p3)  ;;  %v225_v2 = vld [vmem:[%s4055_s10 + $0x10] sm:$0xff] (%p35_p3) }
  0x11   : > { %222 = vst [vmem:[%s4060_s11] sm:$0xff] (%p35_p3), %v221_v0  ;;  %224 = vst [vmem:[%s4060_s11 + $0x8] sm:$0xff] (%p35_p3), %v223_v1  ;;  %v227_v3 = vld [vmem:[%s4055_s10 + $0x18] sm:$0xff] (%p35_p3)  ;;  %v229_v4 = vld [vmem:[%s4055_s10 + $0x20] sm:$0xff] (%p35_p3) }
  0x12   : > { %226 = vst [vmem:[%s4060_s11 + $0x10] sm:$0xff] %v225_v2  ;;  %v231_v5 = vld [vmem:[%s4055_s10 + $0x28] sm:$0xff]  ;;  %228 = vst [vmem:[%s4060_s11 + $0x18] sm:$0xff] %v227_v3  ;;  %v233_v6 = vld [vmem:[%s4055_s10 + $0x30] sm:$0xff] }
  0x13   : > { %230 = vst [vmem:[%s4060_s11 + $0x20] sm:$0xff] %v229_v4  ;;  %232 = vst [vmem:[%s4060_s11 + $0x28] sm:$0xff] %v231_v5  ;;  %v235_v7 = vld [vmem:[%s4055_s10 + $0x38] sm:$0xff]  ;;  %v237_v8 = vld [vmem:[%s4055_s10 + $0x40] sm:$0xff] }
  0x14   : > { %234 = vst [vmem:[%s4060_s11 + $0x30] sm:$0xff] %v233_v6  ;;  %236 = vst [vmem:[%s4060_s11 + $0x38] sm:$0xff] %v235_v7  ;;  %v239_v9 = vld [vmem:[%s4055_s10 + $0x48] sm:$0xff]  ;;  %v241_v10 = vld [vmem:[%s4055_s10 + $0x50] sm:$0xff] }
  0x15   : > { %238 = vst [vmem:[%s4060_s11 + $0x40] sm:$0xff] %v237_v8  ;;  %v243_v11 = vld [vmem:[%s4055_s10 + $0x58] sm:$0xff]  ;;  %240 = vst [vmem:[%s4060_s11 + $0x48] sm:$0xff] %v239_v9  ;;  %v245_v12 = vld [vmem:[%s4055_s10 + $0x60] sm:$0xff] }
  0x16   : > { %242 = vst [vmem:[%s4060_s11 + $0x50] sm:$0xff] %v241_v10  ;;  %244 = vst [vmem:[%s4060_s11 + $0x58] sm:$0xff] %v243_v11  ;;  %v247_v13 = vld [vmem:[%s4055_s10 + $0x68] sm:$0xff]  ;;  %v249_v14 = vld [vmem:[%s4055_s10 + $0x70] sm:$0xff] }
  0x17   : > { %246 = vst [vmem:[%s4060_s11 + $0x60] sm:$0xff] %v245_v12  ;;  %248 = vst [vmem:[%s4060_s11 + $0x68] sm:$0xff] %v247_v13  ;;  %v251_v15 = vld [vmem:[%s4055_s10 + $0x78] sm:$0xff]  ;;  %v253_v16 = vld [vmem:[%s4055_s10 + $0x80] sm:$0xff] }
  0x18   : > { %250 = vst [vmem:[%s4060_s11 + $0x70] sm:$0xff] %v249_v14  ;;  %v255_v17 = vld [vmem:[%s4055_s10 + $0x88] sm:$0xff]  ;;  %252 = vst [vmem:[%s4060_s11 + $0x78] sm:$0xff] %v251_v15  ;;  %v257_v18 = vld [vmem:[%s4055_s10 + $0x90] sm:$0xff] }
  0x19   : > { %254 = vst [vmem:[%s4060_s11 + $0x80] sm:$0xff] %v253_v16  ;;  %256 = vst [vmem:[%s4060_s11 + $0x88] sm:$0xff] %v255_v17  ;;  %v259_v19 = vld [vmem:[%s4055_s10 + $0x98] sm:$0xff]  ;;  %v261_v20 = vld [vmem:[%s4055_s10 + $0xa0] sm:$0xff] }
  0x1a   : > { %258 = vst [vmem:[%s4060_s11 + $0x90] sm:$0xff] %v257_v18  ;;  %260 = vst [vmem:[%s4060_s11 + $0x98] sm:$0xff] %v259_v19  ;;  %v263_v21 = vld [vmem:[%s4055_s10 + $0xa8] sm:$0xff]  ;;  %v265_v22 = vld [vmem:[%s4055_s10 + $0xb0] sm:$0xff] }
  0x1b   : > { %262 = vst [vmem:[%s4060_s11 + $0xa0] sm:$0xff] %v261_v20  ;;  %v267_v23 = vld [vmem:[%s4055_s10 + $0xb8] sm:$0xff]  ;;  %264 = vst [vmem:[%s4060_s11 + $0xa8] sm:$0xff] %v263_v21  ;;  %v269_v24 = vld [vmem:[%s4055_s10 + $0xc0] sm:$0xff] }
  0x1c   : > { %266 = vst [vmem:[%s4060_s11 + $0xb0] sm:$0xff] %v265_v22  ;;  %268 = vst [vmem:[%s4060_s11 + $0xb8] sm:$0xff] %v267_v23  ;;  %v271_v25 = vld [vmem:[%s4055_s10 + $0xc8] sm:$0xff]  ;;  %v273_v26 = vld [vmem:[%s4055_s10 + $0xd0] sm:$0xff] }
  0x1d   : > { %270 = vst [vmem:[%s4060_s11 + $0xc0] sm:$0xff] %v269_v24  ;;  %272 = vst [vmem:[%s4060_s11 + $0xc8] sm:$0xff] %v271_v25  ;;  %v275_v27 = vld [vmem:[%s4055_s10 + $0xd8] sm:$0xff]  ;;  %v277_v28 = vld [vmem:[%s4055_s10 + $0xe0] sm:$0xff] }
  0x1e   : > { %274 = vst [vmem:[%s4060_s11 + $0xd0] sm:$0xff] %v273_v26  ;;  %v279_v29 = vld [vmem:[%s4055_s10 + $0xe8] sm:$0xff]  ;;  %276 = vst [vmem:[%s4060_s11 + $0xd8] sm:$0xff] %v275_v27  ;;  %v281_v30 = vld [vmem:[%s4055_s10 + $0xf0] sm:$0xff] }
  0x1f   : > { %278 = vst [vmem:[%s4060_s11 + $0xe0] sm:$0xff] %v277_v28  ;;  %280 = vst [vmem:[%s4060_s11 + $0xe8] sm:$0xff] %v279_v29  ;;  %v283_v31 = vld [vmem:[%s4055_s10 + $0xf8] sm:$0xff]  ;;  %v285_v32 = vld [vmem:[%s4055_s10 + $0x100] sm:$0xff] }
  0x20   : > { %282 = vst [vmem:[%s4060_s11 + $0xf0] sm:$0xff] %v281_v30  ;;  %284 = vst [vmem:[%s4060_s11 + $0xf8] sm:$0xff] %v283_v31  ;;  %v287_v33 = vld [vmem:[%s4055_s10 + $0x108] sm:$0xff]  ;;  %v289_v34 = vld [vmem:[%s4055_s10 + $0x110] sm:$0xff] }
  0x21   : > { %286 = vst [vmem:[%s4060_s11 + $0x100] sm:$0xff] %v285_v32  ;;  %v291_v35 = vld [vmem:[%s4055_s10 + $0x118] sm:$0xff]  ;;  %288 = vst [vmem:[%s4060_s11 + $0x108] sm:$0xff] %v287_v33  ;;  %v293_v36 = vld [vmem:[%s4055_s10 + $0x120] sm:$0xff] }
  0x22   : > { %290 = vst [vmem:[%s4060_s11 + $0x110] sm:$0xff] %v289_v34  ;;  %292 = vst [vmem:[%s4060_s11 + $0x118] sm:$0xff] %v291_v35  ;;  %v295_v37 = vld [vmem:[%s4055_s10 + $0x128] sm:$0xff]  ;;  %v297_v38 = vld [vmem:[%s4055_s10 + $0x130] sm:$0xff] }
  0x23   : > { %294 = vst [vmem:[%s4060_s11 + $0x120] sm:$0xff] %v293_v36  ;;  %296 = vst [vmem:[%s4060_s11 + $0x128] sm:$0xff] %v295_v37  ;;  %v299_v39 = vld [vmem:[%s4055_s10 + $0x138] sm:$0xff]  ;;  %v301_v40 = vld [vmem:[%s4055_s10 + $0x140] sm:$0xff] }
  0x24   : > { %298 = vst [vmem:[%s4060_s11 + $0x130] sm:$0xff] %v297_v38  ;;  %v303_v41 = vld [vmem:[%s4055_s10 + $0x148] sm:$0xff]  ;;  %300 = vst [vmem:[%s4060_s11 + $0x138] sm:$0xff] %v299_v39  ;;  %v305_v42 = vld [vmem:[%s4055_s10 + $0x150] sm:$0xff] }
  0x25   : > { %302 = vst [vmem:[%s4060_s11 + $0x140] sm:$0xff] %v301_v40  ;;  %304 = vst [vmem:[%s4060_s11 + $0x148] sm:$0xff] %v303_v41  ;;  %v307_v43 = vld [vmem:[%s4055_s10 + $0x158] sm:$0xff]  ;;  %v309_v44 = vld [vmem:[%s4055_s10 + $0x160] sm:$0xff] }
  0x26   : > { %306 = vst [vmem:[%s4060_s11 + $0x150] sm:$0xff] %v305_v42  ;;  %308 = vst [vmem:[%s4060_s11 + $0x158] sm:$0xff] %v307_v43  ;;  %v311_v45 = vld [vmem:[%s4055_s10 + $0x168] sm:$0xff]  ;;  %v313_v46 = vld [vmem:[%s4055_s10 + $0x170] sm:$0xff] }
  0x27   : > { %310 = vst [vmem:[%s4060_s11 + $0x160] sm:$0xff] %v309_v44  ;;  %v315_v47 = vld [vmem:[%s4055_s10 + $0x178] sm:$0xff]  ;;  %312 = vst [vmem:[%s4060_s11 + $0x168] sm:$0xff] %v311_v45  ;;  %v317_v48 = vld [vmem:[%s4055_s10 + $0x180] sm:$0xff] }
  0x28   : > { %314 = vst [vmem:[%s4060_s11 + $0x170] sm:$0xff] %v313_v46  ;;  %316 = vst [vmem:[%s4060_s11 + $0x178] sm:$0xff] %v315_v47  ;;  %v319_v49 = vld [vmem:[%s4055_s10 + $0x188] sm:$0xff]  ;;  %v321_v50 = vld [vmem:[%s4055_s10 + $0x190] sm:$0xff] }
  0x29   : > { %318 = vst [vmem:[%s4060_s11 + $0x180] sm:$0xff] %v317_v48  ;;  %320 = vst [vmem:[%s4060_s11 + $0x188] sm:$0xff] %v319_v49  ;;  %v323_v51 = vld [vmem:[%s4055_s10 + $0x198] sm:$0xff]  ;;  %v325_v52 = vld [vmem:[%s4055_s10 + $0x1a0] sm:$0xff] }
  0x2a   : > { %322 = vst [vmem:[%s4060_s11 + $0x190] sm:$0xff] %v321_v50  ;;  %v327_v53 = vld [vmem:[%s4055_s10 + $0x1a8] sm:$0xff]  ;;  %324 = vst [vmem:[%s4060_s11 + $0x198] sm:$0xff] %v323_v51  ;;  %v329_v54 = vld [vmem:[%s4055_s10 + $0x1b0] sm:$0xff] }
  0x2b   : > { %326 = vst [vmem:[%s4060_s11 + $0x1a0] sm:$0xff] %v325_v52  ;;  %328 = vst [vmem:[%s4060_s11 + $0x1a8] sm:$0xff] %v327_v53  ;;  %v331_v55 = vld [vmem:[%s4055_s10 + $0x1b8] sm:$0xff]  ;;  %v333_v56 = vld [vmem:[%s4055_s10 + $0x1c0] sm:$0xff] }
  0x2c   : > { %330 = vst [vmem:[%s4060_s11 + $0x1b0] sm:$0xff] %v329_v54  ;;  %332 = vst [vmem:[%s4060_s11 + $0x1b8] sm:$0xff] %v331_v55  ;;  %v335_v57 = vld [vmem:[%s4055_s10 + $0x1c8] sm:$0xff]  ;;  %v337_v58 = vld [vmem:[%s4055_s10 + $0x1d0] sm:$0xff] }
  0x2d   : > { %334 = vst [vmem:[%s4060_s11 + $0x1c0] sm:$0xff] %v333_v56  ;;  %v339_v59 = vld [vmem:[%s4055_s10 + $0x1d8] sm:$0xff]  ;;  %336 = vst [vmem:[%s4060_s11 + $0x1c8] sm:$0xff] %v335_v57  ;;  %v341_v60 = vld [vmem:[%s4055_s10 + $0x1e0] sm:$0xff] }
  0x2e   : > { %338 = vst [vmem:[%s4060_s11 + $0x1d0] sm:$0xff] %v337_v58  ;;  %340 = vst [vmem:[%s4060_s11 + $0x1d8] sm:$0xff] %v339_v59  ;;  %v343_v61 = vld [vmem:[%s4055_s10 + $0x1e8] sm:$0xff]  ;;  %v345_v62 = vld [vmem:[%s4055_s10 + $0x1f0] sm:$0xff] }
  0x2f   : > { %342 = vst [vmem:[%s4060_s11 + $0x1e0] sm:$0xff] %v341_v60  ;;  %344 = vst [vmem:[%s4060_s11 + $0x1e8] sm:$0xff] %v343_v61  ;;  %v347_v63 = vld [vmem:[%s4055_s10 + $0x1f8] sm:$0xff]  ;;  %v349_v0 = vld [vmem:[%s4055_s10 + $0x400] sm:$0xff] }
  0x30   : > { %346 = vst [vmem:[%s4060_s11 + $0x1f0] sm:$0xff] %v345_v62  ;;  %v351_v1 = vld [vmem:[%s4055_s10 + $0x408] sm:$0xff]  ;;  %348 = vst [vmem:[%s4060_s11 + $0x1f8] sm:$0xff] %v347_v63  ;;  %v353_v2 = vld [vmem:[%s4055_s10 + $0x410] sm:$0xff] }
  0x31   : > { %350 = vst [vmem:[%s4060_s11 + $0x200] sm:$0xff] %v349_v0  ;;  %352 = vst [vmem:[%s4060_s11 + $0x208] sm:$0xff] %v351_v1  ;;  %v355_v3 = vld [vmem:[%s4055_s10 + $0x418] sm:$0xff]  ;;  %v357_v4 = vld [vmem:[%s4055_s10 + $0x420] sm:$0xff] }
  0x32   : > { %354 = vst [vmem:[%s4060_s11 + $0x210] sm:$0xff] %v353_v2  ;;  %356 = vst [vmem:[%s4060_s11 + $0x218] sm:$0xff] %v355_v3  ;;  %v359_v5 = vld [vmem:[%s4055_s10 + $0x428] sm:$0xff]  ;;  %v361_v6 = vld [vmem:[%s4055_s10 + $0x430] sm:$0xff] }
  0x33   : > { %358 = vst [vmem:[%s4060_s11 + $0x220] sm:$0xff] %v357_v4  ;;  %v363_v7 = vld [vmem:[%s4055_s10 + $0x438] sm:$0xff]  ;;  %360 = vst [vmem:[%s4060_s11 + $0x228] sm:$0xff] %v359_v5  ;;  %v365_v8 = vld [vmem:[%s4055_s10 + $0x440] sm:$0xff] }
  0x34   : > { %362 = vst [vmem:[%s4060_s11 + $0x230] sm:$0xff] %v361_v6  ;;  %364 = vst [vmem:[%s4060_s11 + $0x238] sm:$0xff] %v363_v7  ;;  %v367_v9 = vld [vmem:[%s4055_s10 + $0x448] sm:$0xff]  ;;  %v369_v10 = vld [vmem:[%s4055_s10 + $0x450] sm:$0xff] }
  0x35   : > { %366 = vst [vmem:[%s4060_s11 + $0x240] sm:$0xff] %v365_v8  ;;  %368 = vst [vmem:[%s4060_s11 + $0x248] sm:$0xff] %v367_v9  ;;  %v371_v11 = vld [vmem:[%s4055_s10 + $0x458] sm:$0xff]  ;;  %v373_v12 = vld [vmem:[%s4055_s10 + $0x460] sm:$0xff] }
  0x36   : > { %370 = vst [vmem:[%s4060_s11 + $0x250] sm:$0xff] %v369_v10  ;;  %v375_v13 = vld [vmem:[%s4055_s10 + $0x468] sm:$0xff]  ;;  %372 = vst [vmem:[%s4060_s11 + $0x258] sm:$0xff] %v371_v11  ;;  %v377_v14 = vld [vmem:[%s4055_s10 + $0x470] sm:$0xff] }
  0x37   : > { %374 = vst [vmem:[%s4060_s11 + $0x260] sm:$0xff] %v373_v12  ;;  %376 = vst [vmem:[%s4060_s11 + $0x268] sm:$0xff] %v375_v13  ;;  %v379_v15 = vld [vmem:[%s4055_s10 + $0x478] sm:$0xff]  ;;  %v381_v16 = vld [vmem:[%s4055_s10 + $0x480] sm:$0xff] }
  0x38   : > { %378 = vst [vmem:[%s4060_s11 + $0x270] sm:$0xff] %v377_v14  ;;  %380 = vst [vmem:[%s4060_s11 + $0x278] sm:$0xff] %v379_v15  ;;  %v383_v17 = vld [vmem:[%s4055_s10 + $0x488] sm:$0xff]  ;;  %v385_v18 = vld [vmem:[%s4055_s10 + $0x490] sm:$0xff] }
  0x39   : > { %382 = vst [vmem:[%s4060_s11 + $0x280] sm:$0xff] %v381_v16  ;;  %v387_v19 = vld [vmem:[%s4055_s10 + $0x498] sm:$0xff]  ;;  %384 = vst [vmem:[%s4060_s11 + $0x288] sm:$0xff] %v383_v17  ;;  %v389_v20 = vld [vmem:[%s4055_s10 + $0x4a0] sm:$0xff] }
  0x3a   : > { %386 = vst [vmem:[%s4060_s11 + $0x290] sm:$0xff] %v385_v18  ;;  %388 = vst [vmem:[%s4060_s11 + $0x298] sm:$0xff] %v387_v19  ;;  %v391_v21 = vld [vmem:[%s4055_s10 + $0x4a8] sm:$0xff]  ;;  %v393_v22 = vld [vmem:[%s4055_s10 + $0x4b0] sm:$0xff] }
  0x3b   : > { %390 = vst [vmem:[%s4060_s11 + $0x2a0] sm:$0xff] %v389_v20  ;;  %392 = vst [vmem:[%s4060_s11 + $0x2a8] sm:$0xff] %v391_v21  ;;  %v395_v23 = vld [vmem:[%s4055_s10 + $0x4b8] sm:$0xff]  ;;  %v397_v24 = vld [vmem:[%s4055_s10 + $0x4c0] sm:$0xff] }
  0x3c   : > { %394 = vst [vmem:[%s4060_s11 + $0x2b0] sm:$0xff] %v393_v22  ;;  %v399_v25 = vld [vmem:[%s4055_s10 + $0x4c8] sm:$0xff]  ;;  %396 = vst [vmem:[%s4060_s11 + $0x2b8] sm:$0xff] %v395_v23  ;;  %v401_v26 = vld [vmem:[%s4055_s10 + $0x4d0] sm:$0xff] }
  0x3d   : > { %398 = vst [vmem:[%s4060_s11 + $0x2c0] sm:$0xff] %v397_v24  ;;  %400 = vst [vmem:[%s4060_s11 + $0x2c8] sm:$0xff] %v399_v25  ;;  %v403_v27 = vld [vmem:[%s4055_s10 + $0x4d8] sm:$0xff]  ;;  %v405_v28 = vld [vmem:[%s4055_s10 + $0x4e0] sm:$0xff] }
  0x3e   : > { %402 = vst [vmem:[%s4060_s11 + $0x2d0] sm:$0xff] %v401_v26  ;;  %404 = vst [vmem:[%s4060_s11 + $0x2d8] sm:$0xff] %v403_v27  ;;  %v407_v29 = vld [vmem:[%s4055_s10 + $0x4e8] sm:$0xff]  ;;  %v409_v30 = vld [vmem:[%s4055_s10 + $0x4f0] sm:$0xff] }
  0x3f   : > { %406 = vst [vmem:[%s4060_s11 + $0x2e0] sm:$0xff] %v405_v28  ;;  %v411_v31 = vld [vmem:[%s4055_s10 + $0x4f8] sm:$0xff]  ;;  %408 = vst [vmem:[%s4060_s11 + $0x2e8] sm:$0xff] %v407_v29  ;;  %v413_v32 = vld [vmem:[%s4055_s10 + $0x500] sm:$0xff] }
  0x40   : > { %410 = vst [vmem:[%s4060_s11 + $0x2f0] sm:$0xff] %v409_v30  ;;  %412 = vst [vmem:[%s4060_s11 + $0x2f8] sm:$0xff] %v411_v31  ;;  %v415_v33 = vld [vmem:[%s4055_s10 + $0x508] sm:$0xff]  ;;  %v417_v34 = vld [vmem:[%s4055_s10 + $0x510] sm:$0xff] }
  0x41   : > { %414 = vst [vmem:[%s4060_s11 + $0x300] sm:$0xff] %v413_v32  ;;  %416 = vst [vmem:[%s4060_s11 + $0x308] sm:$0xff] %v415_v33  ;;  %v419_v35 = vld [vmem:[%s4055_s10 + $0x518] sm:$0xff]  ;;  %v421_v36 = vld [vmem:[%s4055_s10 + $0x520] sm:$0xff] }
  0x42   : > { %418 = vst [vmem:[%s4060_s11 + $0x310] sm:$0xff] %v417_v34  ;;  %v423_v37 = vld [vmem:[%s4055_s10 + $0x528] sm:$0xff]  ;;  %420 = vst [vmem:[%s4060_s11 + $0x318] sm:$0xff] %v419_v35  ;;  %v425_v38 = vld [vmem:[%s4055_s10 + $0x530] sm:$0xff] }
  0x43   : > { %422 = vst [vmem:[%s4060_s11 + $0x320] sm:$0xff] %v421_v36  ;;  %424 = vst [vmem:[%s4060_s11 + $0x328] sm:$0xff] %v423_v37  ;;  %v427_v39 = vld [vmem:[%s4055_s10 + $0x538] sm:$0xff]  ;;  %v429_v40 = vld [vmem:[%s4055_s10 + $0x540] sm:$0xff] }
  0x44   : > { %426 = vst [vmem:[%s4060_s11 + $0x330] sm:$0xff] %v425_v38  ;;  %428 = vst [vmem:[%s4060_s11 + $0x338] sm:$0xff] %v427_v39  ;;  %v431_v41 = vld [vmem:[%s4055_s10 + $0x548] sm:$0xff]  ;;  %v433_v42 = vld [vmem:[%s4055_s10 + $0x550] sm:$0xff] }
  0x45   : > { %430 = vst [vmem:[%s4060_s11 + $0x340] sm:$0xff] %v429_v40  ;;  %v435_v43 = vld [vmem:[%s4055_s10 + $0x558] sm:$0xff]  ;;  %432 = vst [vmem:[%s4060_s11 + $0x348] sm:$0xff] %v431_v41  ;;  %v437_v44 = vld [vmem:[%s4055_s10 + $0x560] sm:$0xff] }
  0x46   : > { %434 = vst [vmem:[%s4060_s11 + $0x350] sm:$0xff] %v433_v42  ;;  %436 = vst [vmem:[%s4060_s11 + $0x358] sm:$0xff] %v435_v43  ;;  %v439_v45 = vld [vmem:[%s4055_s10 + $0x568] sm:$0xff]  ;;  %v441_v46 = vld [vmem:[%s4055_s10 + $0x570] sm:$0xff] }
  0x47   : > { %438 = vst [vmem:[%s4060_s11 + $0x360] sm:$0xff] %v437_v44  ;;  %440 = vst [vmem:[%s4060_s11 + $0x368] sm:$0xff] %v439_v45  ;;  %v443_v47 = vld [vmem:[%s4055_s10 + $0x578] sm:$0xff]  ;;  %v445_v48 = vld [vmem:[%s4055_s10 + $0x580] sm:$0xff] }
  0x48   : > { %442 = vst [vmem:[%s4060_s11 + $0x370] sm:$0xff] %v441_v46  ;;  %v447_v49 = vld [vmem:[%s4055_s10 + $0x588] sm:$0xff]  ;;  %444 = vst [vmem:[%s4060_s11 + $0x378] sm:$0xff] %v443_v47  ;;  %v449_v50 = vld [vmem:[%s4055_s10 + $0x590] sm:$0xff] }
  0x49   : > { %446 = vst [vmem:[%s4060_s11 + $0x380] sm:$0xff] %v445_v48  ;;  %448 = vst [vmem:[%s4060_s11 + $0x388] sm:$0xff] %v447_v49  ;;  %v451_v51 = vld [vmem:[%s4055_s10 + $0x598] sm:$0xff]  ;;  %v453_v52 = vld [vmem:[%s4055_s10 + $0x5a0] sm:$0xff] }
  0x4a   : > { %450 = vst [vmem:[%s4060_s11 + $0x390] sm:$0xff] %v449_v50  ;;  %452 = vst [vmem:[%s4060_s11 + $0x398] sm:$0xff] %v451_v51  ;;  %v455_v53 = vld [vmem:[%s4055_s10 + $0x5a8] sm:$0xff]  ;;  %v457_v54 = vld [vmem:[%s4055_s10 + $0x5b0] sm:$0xff] }
  0x4b   : > { %454 = vst [vmem:[%s4060_s11 + $0x3a0] sm:$0xff] %v453_v52  ;;  %v459_v55 = vld [vmem:[%s4055_s10 + $0x5b8] sm:$0xff]  ;;  %456 = vst [vmem:[%s4060_s11 + $0x3a8] sm:$0xff] %v455_v53  ;;  %v461_v56 = vld [vmem:[%s4055_s10 + $0x5c0] sm:$0xff] }
  0x4c   : > { %458 = vst [vmem:[%s4060_s11 + $0x3b0] sm:$0xff] %v457_v54  ;;  %460 = vst [vmem:[%s4060_s11 + $0x3b8] sm:$0xff] %v459_v55  ;;  %v463_v57 = vld [vmem:[%s4055_s10 + $0x5c8] sm:$0xff]  ;;  %v465_v58 = vld [vmem:[%s4055_s10 + $0x5d0] sm:$0xff] }
  0x4d   : > { %462 = vst [vmem:[%s4060_s11 + $0x3c0] sm:$0xff] %v461_v56  ;;  %464 = vst [vmem:[%s4060_s11 + $0x3c8] sm:$0xff] %v463_v57  ;;  %v467_v59 = vld [vmem:[%s4055_s10 + $0x5d8] sm:$0xff]  ;;  %v469_v60 = vld [vmem:[%s4055_s10 + $0x5e0] sm:$0xff] }
  0x4e   : > { %466 = vst [vmem:[%s4060_s11 + $0x3d0] sm:$0xff] %v465_v58  ;;  %v471_v61 = vld [vmem:[%s4055_s10 + $0x5e8] sm:$0xff]  ;;  %468 = vst [vmem:[%s4060_s11 + $0x3d8] sm:$0xff] %v467_v59  ;;  %v473_v62 = vld [vmem:[%s4055_s10 + $0x5f0] sm:$0xff] }
  0x4f   : > { %470 = vst [vmem:[%s4060_s11 + $0x3e0] sm:$0xff] %v469_v60  ;;  %472 = vst [vmem:[%s4060_s11 + $0x3e8] sm:$0xff] %v471_v61  ;;  %v475_v63 = vld [vmem:[%s4055_s10 + $0x5f8] sm:$0xff] }
  0x50   : > { %474 = vst [vmem:[%s4060_s11 + $0x3f0] sm:$0xff] %v473_v62  ;;  %476 = vst [vmem:[%s4060_s11 + $0x3f8] sm:$0xff] %v475_v63 }
  0x51 PF: > { %p3543_p5 = scmp.ge.s32.totalorder %s3977_s23, 1  ;;  %p481_p6 = scmp.lt.s32.totalorder %s3977_s23, 3 }
  0x53   : > { %p482_p7 = pnand %p3543_p5, %p481_p6 }
  0x55   : > { %485 = sbr.rel (%p482_p7) target bundleno = 1468 (0x5bc), region = 59 }
  0x5a   : > { %s488_s12 = sand.u32 1, %s3969_s21   ;;  %p3545_p8 = scmp.ne.s32.totalorder %s4035_s24, 0 }
  0x5b   : > { %s3544_s13 = sshll.u32 %s488_s12, 10 }
  0x5c   : > { %s4318_s14 = scalar_lea.vmem [#allocation4], %s3544_s13  ;;  %516 = sbr.rel (%p3545_p8) target bundleno = 100 (0x64), region = 67 }
  0x61   : > { %v3979_v0 = vmov 0.0  }
  0x62   : > { %517 = vst [vmem:[#allocation2] sm:$0xff] %v3979_v0  ;;  %518 = vst [vmem:[#allocation2 + $0x8] sm:$0xff] %v3979_v0 }
  0x63   : > { %519 = vst [vmem:[#allocation3 + $0x8] sm:$0xff] %v3979_v0  ;;  %520 = vst [vmem:[#allocation3] sm:$0xff] %v3979_v0 }
  0x64 PF: > { %v4322_v1 = vld [vmem:[%s4318_s14] sm:$0xff]  ;;  %v4325_v2 = vld [vmem:[%s4318_s14 + $0x8] sm:$0xff]  ;;  %v4328_v3 = vld [vmem:[%s4318_s14 + $0x10] sm:$0xff]  ;;  %vm1332_vm0 = vcmask 1041409   ;;  %vm1334_vm1 = vcmask 1043459   ;;  %vm1336_vm2 = vcmask 1045509  }
  0x65   : > { %7818 = vst [vmem:[#allocation11_spill] sm:$0xff] %v4322_v1  ;;  %7819 = vst [vmem:[#allocation12_spill] sm:$0xff] %v4325_v2  ;;  %v4331_v4 = vld [vmem:[%s4318_s14 + $0x18] sm:$0xff]  ;;  %v4334_v5 = vld [vmem:[%s4318_s14 + $0x20] sm:$0xff]  ;;  %vm1338_vm3 = vcmask 1047559   ;;  %p3546_p9 = scmp.ne.s32.totalorder %s4035_s24, 1 }
  0x66   : > { %7820 = vst [vmem:[#allocation13_spill] sm:$0xff] %v4328_v3  ;;  %7821 = vst [vmem:[#allocation14_spill] sm:$0xff] %v4331_v4  ;;  %v4337_v6 = vld [vmem:[%s4318_s14 + $0x28] sm:$0xff]  ;;  %v4344_v11 = vld [vmem:[%s4318_s14 + $0x30] sm:$0xff] }
  0x67   : > { %7822 = vst [vmem:[#allocation15_spill] sm:$0xff] %v4334_v5  ;;  %7823 = vst [vmem:[#allocation16_spill] sm:$0xff] %v4337_v6  ;;  %v4347_v12 = vld [vmem:[%s4318_s14 + $0x38] sm:$0xff]  ;;  %v4350_v13 = vld [vmem:[%s4318_s14 + $0x40] sm:$0xff] }
  0x68   : > { %7824 = vst [vmem:[#allocation17_spill] sm:$0xff] %v4344_v11  ;;  %v4357_v18 = vld [vmem:[%s4318_s14 + $0x48] sm:$0xff]  ;;  %v4360_v19 = vld [vmem:[%s4318_s14 + $0x50] sm:$0xff]  ;;  %v4363_v20 = vld [vmem:[%s4318_s14 + $0x58] sm:$0xff] }
  0x69   : > { %v4370_v25 = vld [vmem:[%s4318_s14 + $0x60] sm:$0xff]  ;;  %v4373_v26 = vld [vmem:[%s4318_s14 + $0x68] sm:$0xff]  ;;  %v4380_v31 = vld [vmem:[%s4318_s14 + $0x70] sm:$0xff] }
  0x6a   : > { %v4383_v32 = vld [vmem:[%s4318_s14 + $0x78] sm:$0xff]  ;;  %v4390_v37 = vld [vmem:[%s4318_s14 + $0x80] sm:$0xff]  ;;  %v4393_v38 = vld [vmem:[%s4318_s14 + $0x88] sm:$0xff] }
  0x6b   : > { %v4400_v43 = vld [vmem:[%s4318_s14 + $0x90] sm:$0xff]  ;;  %v4403_v44 = vld [vmem:[%s4318_s14 + $0x98] sm:$0xff]  ;;  %v4410_v49 = vld [vmem:[%s4318_s14 + $0xa0] sm:$0xff] }
  0x6c   : > { %v4413_v50 = vld [vmem:[%s4318_s14 + $0xa8] sm:$0xff]  ;;  %v4420_v55 = vld [vmem:[%s4318_s14 + $0xb0] sm:$0xff]  ;;  %v4423_v56 = vld [vmem:[%s4318_s14 + $0xb8] sm:$0xff] }
  0x6d   : > { %v4430_v61 = vld [vmem:[%s4318_s14 + $0xc0] sm:$0xff]  ;;  %v4433_v62 = vld [vmem:[%s4318_s14 + $0xc8] sm:$0xff]  ;;  %v4440_v58 = vld [vmem:[%s4318_s14 + $0xd0] sm:$0xff] }
  0x6e   : > { %v4443_v53 = vld [vmem:[%s4318_s14 + $0xd8] sm:$0xff]  ;;  %v4450_v0 = vld [vmem:[%s4318_s14 + $0xe0] sm:$0xff]  ;;  %v4453_v51 = vld [vmem:[%s4318_s14 + $0xe8] sm:$0xff] }
  0x6f   : > { %7825 = vst [vmem:[#allocation18_spill] sm:$0xff] %v4443_v53  ;;  %7826 = vst [vmem:[#allocation19_spill] sm:$0xff] %v4450_v0  ;;  %v4460_v59 = vld [vmem:[%s4318_s14 + $0xf0] sm:$0xff]  ;;  %v4463_v47 = vld [vmem:[%s4318_s14 + $0xf8] sm:$0xff] }
  0x70   : > { %7827 = vst [vmem:[#allocation20_spill] sm:$0xff] %v4453_v51  ;;  %7828 = vst [vmem:[#allocation21_spill] sm:$0xff] %v4460_v59  ;;  %v4470_v57 = vld [vmem:[%s4318_s14 + $0x100] sm:$0xff]  ;;  %v4473_v45 = vld [vmem:[%s4318_s14 + $0x108] sm:$0xff] }
  0x71   : > { %7829 = vst [vmem:[#allocation22_spill] sm:$0xff] %v4463_v47  ;;  %7830 = vst [vmem:[#allocation23_spill] sm:$0xff] %v4470_v57  ;;  %v4480_v63 = vld [vmem:[%s4318_s14 + $0x110] sm:$0xff]  ;;  %v4483_v41 = vld [vmem:[%s4318_s14 + $0x118] sm:$0xff] }
  0x72   : > { %7831 = vst [vmem:[#allocation24_spill] sm:$0xff] %v4473_v45  ;;  %7832 = vst [vmem:[#allocation25_spill] sm:$0xff] %v4480_v63  ;;  %v4490_v60 = vld [vmem:[%s4318_s14 + $0x120] sm:$0xff]  ;;  %v4493_v39 = vld [vmem:[%s4318_s14 + $0x128] sm:$0xff] }
  0x73   : > { %7833 = vst [vmem:[#allocation26_spill] sm:$0xff] %v4483_v41  ;;  %7834 = vst [vmem:[#allocation27_spill] sm:$0xff] %v4490_v60  ;;  %v4500_v54 = vld [vmem:[%s4318_s14 + $0x130] sm:$0xff]  ;;  %v4503_v35 = vld [vmem:[%s4318_s14 + $0x138] sm:$0xff] }
  0x74   : > { %7835 = vst [vmem:[#allocation28_spill] sm:$0xff] %v4493_v39  ;;  %7836 = vst [vmem:[#allocation29_spill] sm:$0xff] %v4500_v54  ;;  %v4510_v52 = vld [vmem:[%s4318_s14 + $0x140] sm:$0xff]  ;;  %v4513_v33 = vld [vmem:[%s4318_s14 + $0x148] sm:$0xff] }
  0x75   : > { %7837 = vst [vmem:[#allocation30_spill] sm:$0xff] %v4503_v35  ;;  %7838 = vst [vmem:[#allocation31_spill] sm:$0xff] %v4510_v52  ;;  %v4520_v48 = vld [vmem:[%s4318_s14 + $0x150] sm:$0xff]  ;;  %v4523_v17 = vld [vmem:[%s4318_s14 + $0x158] sm:$0xff] }
  0x76   : > { %7839 = vst [vmem:[#allocation32_spill] sm:$0xff] %v4513_v33  ;;  %7840 = vst [vmem:[#allocation33_spill] sm:$0xff] %v4520_v48  ;;  %v4530_v46 = vld [vmem:[%s4318_s14 + $0x160] sm:$0xff]  ;;  %v4533_v16 = vld [vmem:[%s4318_s14 + $0x168] sm:$0xff] }
  0x77   : > { %7841 = vst [vmem:[#allocation34_spill] sm:$0xff] %v4523_v17  ;;  %7842 = vst [vmem:[#allocation35_spill] sm:$0xff] %v4530_v46  ;;  %v4540_v42 = vld [vmem:[%s4318_s14 + $0x170] sm:$0xff]  ;;  %v4543_v15 = vld [vmem:[%s4318_s14 + $0x178] sm:$0xff] }
  0x78   : > { %7843 = vst [vmem:[#allocation36_spill] sm:$0xff] %v4533_v16  ;;  %7844 = vst [vmem:[#allocation37_spill] sm:$0xff] %v4540_v42  ;;  %v4550_v40 = vld [vmem:[%s4318_s14 + $0x180] sm:$0xff]  ;;  %v4553_v14 = vld [vmem:[%s4318_s14 + $0x188] sm:$0xff] }
  0x79   : > { %7845 = vst [vmem:[#allocation38_spill] sm:$0xff] %v4543_v15  ;;  %7846 = vst [vmem:[#allocation39_spill] sm:$0xff] %v4550_v40  ;;  %v4560_v36 = vld [vmem:[%s4318_s14 + $0x190] sm:$0xff]  ;;  %v4563_v10 = vld [vmem:[%s4318_s14 + $0x198] sm:$0xff] }
  0x7a   : > { %7847 = vst [vmem:[#allocation40_spill] sm:$0xff] %v4553_v14  ;;  %7848 = vst [vmem:[#allocation41_spill] sm:$0xff] %v4560_v36  ;;  %v4570_v34 = vld [vmem:[%s4318_s14 + $0x1a0] sm:$0xff]  ;;  %v4573_v9 = vld [vmem:[%s4318_s14 + $0x1a8] sm:$0xff] }
  0x7b   : > { %7849 = vst [vmem:[#allocation42_spill] sm:$0xff] %v4563_v10  ;;  %7850 = vst [vmem:[#allocation43_spill] sm:$0xff] %v4570_v34  ;;  %v4580_v30 = vld [vmem:[%s4318_s14 + $0x1b0] sm:$0xff]  ;;  %v4583_v8 = vld [vmem:[%s4318_s14 + $0x1b8] sm:$0xff] }
  0x7c   : > { %7851 = vst [vmem:[#allocation44_spill] sm:$0xff] %v4573_v9  ;;  %7852 = vst [vmem:[#allocation45_spill] sm:$0xff] %v4580_v30  ;;  %v4590_v29 = vld [vmem:[%s4318_s14 + $0x1c0] sm:$0xff]  ;;  %v4593_v7 = vld [vmem:[%s4318_s14 + $0x1c8] sm:$0xff] }
  0x7d   : > { %7853 = vst [vmem:[#allocation46_spill] sm:$0xff] %v4583_v8  ;;  %7854 = vst [vmem:[#allocation47_spill] sm:$0xff] %v4590_v29  ;;  %v4600_v28 = vld [vmem:[%s4318_s14 + $0x1d0] sm:$0xff]  ;;  %v4603_v40 = vld [vmem:[%s4318_s14 + $0x1d8] sm:$0xff] }
  0x7e   : > { %7855 = vst [vmem:[#allocation48_spill] sm:$0xff] %v4593_v7  ;;  %7856 = vst [vmem:[#allocation49_spill] sm:$0xff] %v4600_v28  ;;  %v4610_v27 = vld [vmem:[%s4318_s14 + $0x1e0] sm:$0xff]  ;;  %v4613_v36 = vld [vmem:[%s4318_s14 + $0x1e8] sm:$0xff] }
  0x7f   : > { %7857 = vst [vmem:[#allocation50_spill] sm:$0xff] %v4603_v40  ;;  %7858 = vst [vmem:[#allocation51_spill] sm:$0xff] %v4610_v27  ;;  %v4620_v24 = vld [vmem:[%s4318_s14 + $0x1f0] sm:$0xff]  ;;  %v4623_v34 = vld [vmem:[%s4318_s14 + $0x1f8] sm:$0xff] }
  0x80   : > { %7859 = vst [vmem:[#allocation52_spill] sm:$0xff] %v4613_v36  ;;  %7860 = vst [vmem:[#allocation53_spill] sm:$0xff] %v4620_v24  ;;  %v4630_v23 = vld [vmem:[%s4318_s14 + $0x200] sm:$0xff]  ;;  %v4633_v30 = vld [vmem:[%s4318_s14 + $0x208] sm:$0xff] }
  0x81   : > { %7861 = vst [vmem:[#allocation54_spill] sm:$0xff] %v4623_v34  ;;  %7862 = vst [vmem:[#allocation55_spill] sm:$0xff] %v4630_v23  ;;  %v4640_v22 = vld [vmem:[%s4318_s14 + $0x210] sm:$0xff]  ;;  %v4643_v29 = vld [vmem:[%s4318_s14 + $0x218] sm:$0xff] }
  0x82   : > { %7863 = vst [vmem:[#allocation56_spill] sm:$0xff] %v4633_v30  ;;  %7864 = vst [vmem:[#allocation57_spill] sm:$0xff] %v4640_v22  ;;  %v4650_v21 = vld [vmem:[%s4318_s14 + $0x220] sm:$0xff]  ;;  %v4653_v28 = vld [vmem:[%s4318_s14 + $0x228] sm:$0xff] }
  0x83   : > { %7865 = vst [vmem:[#allocation58_spill] sm:$0xff] %v4643_v29  ;;  %7866 = vst [vmem:[#allocation59_spill] sm:$0xff] %v4650_v21  ;;  %v4660_v15 = vld [vmem:[%s4318_s14 + $0x230] sm:$0xff]  ;;  %v4663_v27 = vld [vmem:[%s4318_s14 + $0x238] sm:$0xff] }
  0x84   : > { %7867 = vst [vmem:[#allocation60_spill] sm:$0xff] %v4653_v28  ;;  %7868 = vst [vmem:[#allocation61_spill] sm:$0xff] %v4660_v15  ;;  %v4670_v14 = vld [vmem:[%s4318_s14 + $0x240] sm:$0xff]  ;;  %v4673_v24 = vld [vmem:[%s4318_s14 + $0x248] sm:$0xff] }
  0x85   : > { %7869 = vst [vmem:[#allocation62_spill] sm:$0xff] %v4663_v27  ;;  %7870 = vst [vmem:[#allocation63_spill] sm:$0xff] %v4670_v14  ;;  %v4680_v10 = vld [vmem:[%s4318_s14 + $0x250] sm:$0xff]  ;;  %v4683_v23 = vld [vmem:[%s4318_s14 + $0x258] sm:$0xff] }
  0x86   : > { %7871 = vst [vmem:[#allocation64_spill] sm:$0xff] %v4673_v24  ;;  %7872 = vst [vmem:[#allocation65_spill] sm:$0xff] %v4680_v10  ;;  %v4690_v9 = vld [vmem:[%s4318_s14 + $0x260] sm:$0xff]  ;;  %v4693_v22 = vld [vmem:[%s4318_s14 + $0x268] sm:$0xff] }
  0x87   : > { %7873 = vst [vmem:[#allocation66_spill] sm:$0xff] %v4683_v23  ;;  %7874 = vst [vmem:[#allocation67_spill] sm:$0xff] %v4690_v9  ;;  %v4700_v8 = vld [vmem:[%s4318_s14 + $0x270] sm:$0xff]  ;;  %v4703_v21 = vld [vmem:[%s4318_s14 + $0x278] sm:$0xff] }
  0x88   : > { %7875 = vst [vmem:[#allocation68_spill] sm:$0xff] %v4693_v22  ;;  %7876 = vst [vmem:[#allocation69_spill] sm:$0xff] %v4700_v8  ;;  %v4710_v7 = vld [vmem:[%s4318_s14 + $0x280] sm:$0xff]  ;;  %v4713_v15 = vld [vmem:[%s4318_s14 + $0x288] sm:$0xff] }
  0x89   : > { %7877 = vst [vmem:[#allocation70_spill] sm:$0xff] %v4703_v21  ;;  %7878 = vst [vmem:[#allocation71_spill] sm:$0xff] %v4710_v7  ;;  %v4720_v40 = vld [vmem:[%s4318_s14 + $0x290] sm:$0xff]  ;;  %v4723_v14 = vld [vmem:[%s4318_s14 + $0x298] sm:$0xff] }
  0x8a   : > { %7879 = vst [vmem:[#allocation72_spill] sm:$0xff] %v4713_v15  ;;  %7880 = vst [vmem:[#allocation73_spill] sm:$0xff] %v4720_v40  ;;  %v4730_v36 = vld [vmem:[%s4318_s14 + $0x2a0] sm:$0xff]  ;;  %v4733_v10 = vld [vmem:[%s4318_s14 + $0x2a8] sm:$0xff] }
  0x8b   : > { %7881 = vst [vmem:[#allocation74_spill] sm:$0xff] %v4723_v14  ;;  %7882 = vst [vmem:[#allocation75_spill] sm:$0xff] %v4730_v36  ;;  %v4740_v34 = vld [vmem:[%s4318_s14 + $0x2b0] sm:$0xff]  ;;  %v4743_v9 = vld [vmem:[%s4318_s14 + $0x2b8] sm:$0xff] }
  0x8c   : > { %7883 = vst [vmem:[#allocation76_spill] sm:$0xff] %v4733_v10  ;;  %7884 = vst [vmem:[#allocation77_spill] sm:$0xff] %v4740_v34  ;;  %v4750_v30 = vld [vmem:[%s4318_s14 + $0x2c0] sm:$0xff]  ;;  %v4753_v8 = vld [vmem:[%s4318_s14 + $0x2c8] sm:$0xff] }
  0x8d   : > { %7885 = vst [vmem:[#allocation78_spill] sm:$0xff] %v4743_v9  ;;  %7886 = vst [vmem:[#allocation79_spill] sm:$0xff] %v4750_v30  ;;  %v4760_v29 = vld [vmem:[%s4318_s14 + $0x2d0] sm:$0xff]  ;;  %v4763_v7 = vld [vmem:[%s4318_s14 + $0x2d8] sm:$0xff] }
  0x8e   : > { %7887 = vst [vmem:[#allocation80_spill] sm:$0xff] %v4753_v8  ;;  %7888 = vst [vmem:[#allocation81_spill] sm:$0xff] %v4760_v29  ;;  %v4770_v28 = vld [vmem:[%s4318_s14 + $0x2e0] sm:$0xff]  ;;  %v4773_v40 = vld [vmem:[%s4318_s14 + $0x2e8] sm:$0xff] }
  0x8f   : > { %7889 = vst [vmem:[#allocation82_spill] sm:$0xff] %v4763_v7  ;;  %7890 = vst [vmem:[#allocation83_spill] sm:$0xff] %v4770_v28  ;;  %v4780_v27 = vld [vmem:[%s4318_s14 + $0x2f0] sm:$0xff]  ;;  %v4783_v36 = vld [vmem:[%s4318_s14 + $0x2f8] sm:$0xff] }
  0x90   : > { %7891 = vst [vmem:[#allocation84_spill] sm:$0xff] %v4773_v40  ;;  %7892 = vst [vmem:[#allocation85_spill] sm:$0xff] %v4780_v27  ;;  %v4790_v24 = vld [vmem:[%s4318_s14 + $0x300] sm:$0xff]  ;;  %v4793_v34 = vld [vmem:[%s4318_s14 + $0x308] sm:$0xff] }
  0x91   : > { %7893 = vst [vmem:[#allocation86_spill] sm:$0xff] %v4783_v36  ;;  %7894 = vst [vmem:[#allocation87_spill] sm:$0xff] %v4790_v24  ;;  %v4800_v23 = vld [vmem:[%s4318_s14 + $0x310] sm:$0xff]  ;;  %v4803_v30 = vld [vmem:[%s4318_s14 + $0x318] sm:$0xff] }
  0x92   : > { %7895 = vst [vmem:[#allocation88_spill] sm:$0xff] %v4793_v34  ;;  %7896 = vst [vmem:[#allocation89_spill] sm:$0xff] %v4800_v23  ;;  %v4810_v22 = vld [vmem:[%s4318_s14 + $0x320] sm:$0xff]  ;;  %v4813_v29 = vld [vmem:[%s4318_s14 + $0x328] sm:$0xff] }
  0x93   : > { %7897 = vst [vmem:[#allocation90_spill] sm:$0xff] %v4803_v30  ;;  %7898 = vst [vmem:[#allocation91_spill] sm:$0xff] %v4810_v22  ;;  %v4820_v21 = vld [vmem:[%s4318_s14 + $0x330] sm:$0xff]  ;;  %v4823_v28 = vld [vmem:[%s4318_s14 + $0x338] sm:$0xff] }
  0x94   : > { %7899 = vst [vmem:[#allocation92_spill] sm:$0xff] %v4813_v29  ;;  %7900 = vst [vmem:[#allocation93_spill] sm:$0xff] %v4820_v21  ;;  %v4830_v15 = vld [vmem:[%s4318_s14 + $0x340] sm:$0xff]  ;;  %v4833_v27 = vld [vmem:[%s4318_s14 + $0x348] sm:$0xff] }
  0x95   : > { %7901 = vst [vmem:[#allocation94_spill] sm:$0xff] %v4823_v28  ;;  %7902 = vst [vmem:[#allocation95_spill] sm:$0xff] %v4830_v15  ;;  %v4840_v14 = vld [vmem:[%s4318_s14 + $0x350] sm:$0xff]  ;;  %v4843_v24 = vld [vmem:[%s4318_s14 + $0x358] sm:$0xff]  ;;  %v7931_v28 = vunpack.c.l.bf16 %v4337_v6 }
  0x96   : > { %7903 = vst [vmem:[#allocation96_spill] sm:$0xff] %v4833_v27  ;;  %7904 = vst [vmem:[#allocation97_spill] sm:$0xff] %v4840_v14  ;;  %v4850_v10 = vld [vmem:[%s4318_s14 + $0x360] sm:$0xff]  ;;  %v4853_v23 = vld [vmem:[%s4318_s14 + $0x368] sm:$0xff]  ;;  %v7933_v27 = vunpack.c.h.bf16 %v4337_v6  ;;  %v7941_v6 = vunpack.c.h.bf16 %v4347_v12 }
  0x97   : > { %7905 = vst [vmem:[#allocation98_spill] sm:$0xff] %v4843_v24  ;;  %7906 = vst [vmem:[#allocation99_spill] sm:$0xff] %v4850_v10  ;;  %v4860_v9 = vld [vmem:[%s4318_s14 + $0x370] sm:$0xff]  ;;  %v4863_v22 = vld [vmem:[%s4318_s14 + $0x378] sm:$0xff]  ;;  %v7930_v24 = vunpack.c.l.bf16 %v4325_v2 }
  0x98   : > { %7907 = vst [vmem:[#allocation100_spill] sm:$0xff] %v4853_v23  ;;  %7908 = vst [vmem:[#allocation101_spill] sm:$0xff] %v4860_v9  ;;  %v4870_v8 = vld [vmem:[%s4318_s14 + $0x380] sm:$0xff]  ;;  %v4873_v21 = vld [vmem:[%s4318_s14 + $0x388] sm:$0xff] }
  0x99   : > { %7909 = vst [vmem:[#allocation102_spill] sm:$0xff] %v4863_v22  ;;  %7910 = vst [vmem:[#allocation103_spill] sm:$0xff] %v4870_v8  ;;  %v4880_v7 = vld [vmem:[%s4318_s14 + $0x390] sm:$0xff]  ;;  %v4883_v15 = vld [vmem:[%s4318_s14 + $0x398] sm:$0xff] }
  0x9a   : > { %7911 = vst [vmem:[#allocation104_spill] sm:$0xff] %v4873_v21  ;;  %7912 = vst [vmem:[#allocation105_spill] sm:$0xff] %v4880_v7  ;;  %v4890_v40 = vld [vmem:[%s4318_s14 + $0x3a0] sm:$0xff]  ;;  %v4893_v14 = vld [vmem:[%s4318_s14 + $0x3a8] sm:$0xff]  ;;  %v7927_v7 = vunpack.c.l.bf16 %v4334_v5 }
  0x9b   : > { %7913 = vst [vmem:[#allocation106_spill] sm:$0xff] %v4883_v15  ;;  %7914 = vst [vmem:[#allocation107_spill] sm:$0xff] %v4890_v40  ;;  %v4900_v36 = vld [vmem:[%s4318_s14 + $0x3b0] sm:$0xff]  ;;  %v4903_v10 = vld [vmem:[%s4318_s14 + $0x3b8] sm:$0xff]  ;;  %v7926_v15 = vunpack.c.l.bf16 %v4322_v1 }
  0x9c   : > { %7915 = vst [vmem:[#allocation108_spill] sm:$0xff] %v4893_v14  ;;  %7916 = vst [vmem:[#allocation109_spill] sm:$0xff] %v4900_v36  ;;  %v4910_v34 = vld [vmem:[%s4318_s14 + $0x3c0] sm:$0xff]  ;;  %v4913_v9 = vld [vmem:[%s4318_s14 + $0x3c8] sm:$0xff]  ;;  %v7929_v36 = vunpack.c.h.bf16 %v4334_v5  ;;  %v7932_v14 = vunpack.c.h.bf16 %v4325_v2  ;;  %v7937_v5 = vunpack.c.h.bf16 %v4344_v11 }
  0x9d   : > { %7917 = vst [vmem:[#allocation110_spill] sm:$0xff] %v4903_v10  ;;  %7918 = vst [vmem:[#allocation111_spill] sm:$0xff] %v4910_v34  ;;  %v4920_v30 = vld [vmem:[%s4318_s14 + $0x3d0] sm:$0xff]  ;;  %v4923_v8 = vld [vmem:[%s4318_s14 + $0x3d8] sm:$0xff]  ;;  %v7928_v10 = vunpack.c.h.bf16 %v4322_v1  ;;  %v7939_v1 = vunpack.c.l.bf16 %v4347_v12 }
  0x9e   : > { %7919 = vst [vmem:[#allocation112_spill] sm:$0xff] %v4913_v9  ;;  %7920 = vst [vmem:[#allocation113_spill] sm:$0xff] %v4920_v30  ;;  %v4930_v42 = vld [vmem:[%s4318_s14 + $0x3e0] sm:$0xff]  ;;  %v4933_v29 = vld [vmem:[%s4318_s14 + $0x3e8] sm:$0xff]  ;;  %v970_v22 = vadd.f32 %v7933_v27, %v7932_v14  ;;  %v7942_v27 = vunpack.c.l.bf16 %v4350_v13 }
  0x9f   : > { %7921 = vst [vmem:[#allocation114_spill] sm:$0xff] %v4923_v8  ;;  %7922 = vst [vmem:[#allocation115_spill] sm:$0xff] %v4930_v42  ;;  %v4940_v16 = vld [vmem:[%s4318_s14 + $0x3f0] sm:$0xff]  ;;  %v4943_v23 = vld [vmem:[%s4318_s14 + $0x3f8] sm:$0xff]  ;;  %v907_v8 = vadd.f32 %v7927_v7, %v7926_v15  ;;  %v928_v21 = vadd.f32 %v7929_v36, %v7928_v10  ;;  %v7936_v15 = vunpack.c.h.bf16 %v4328_v3  ;;  %v7938_v36 = vunpack.c.l.bf16 %v4331_v4 }
  0xa0   : > { %7923 = vst [vmem:[#allocation116_spill] sm:$0xff] %v4933_v29  ;;  %7924 = vst [vmem:[#allocation117_spill] sm:$0xff] %v4940_v16  ;;  %v949_v29 = vadd.f32 %v7931_v28, %v7930_v24  ;;  %v7935_v16 = vunpack.c.l.bf16 %v4344_v11  ;;  %v7940_v28 = vunpack.c.h.bf16 %v4331_v4  ;;  %v7946_v42 = vunpack.c.l.bf16 %v4360_v19 }
  0xa1   : > { %7925 = vst [vmem:[#allocation118_spill] sm:$0xff] %v4943_v23  ;;  %v7934_v23 = vunpack.c.l.bf16 %v4328_v3  ;;  %v1012_v10 = vadd.f32 %v7937_v5, %v7936_v15  ;;  %v1033_v24 = vadd.f32 %v7939_v1, %v7938_v36  ;;  %v908_v2 = vadd.f32 %v907_v8, %v7942_v27 }
  0xa2   : > { %v1054_v14 = vadd.f32 %v7941_v6, %v7940_v28  ;;  %v7944_v3 = vunpack.c.l.bf16 %v4357_v18  ;;  %v7945_v5 = vunpack.c.h.bf16 %v4357_v18  ;;  %v7947_v36 = vunpack.c.h.bf16 %v4360_v19 }
  0xa3   : > { %v991_v7 = vadd.f32 %v7935_v16, %v7934_v23  ;;  %v7943_v16 = vunpack.c.h.bf16 %v4350_v13  ;;  %v7948_v6 = vunpack.c.l.bf16 %v4363_v20  ;;  %v7949_v8 = vunpack.c.h.bf16 %v4363_v20 }
  0xa4   : > { %v950_v11 = vadd.f32 %v949_v29, %v7944_v3  ;;  %v971_v15 = vadd.f32 %v970_v22, %v7945_v5  ;;  %v1013_v4 = vadd.f32 %v1012_v10, %v7947_v36  ;;  %v7951_v3 = vunpack.c.h.bf16 %v4370_v25 }
  0xa5   : > { %v929_v23 = vadd.f32 %v928_v21, %v7943_v16  ;;  %v992_v1 = vadd.f32 %v991_v7, %v7946_v42  ;;  %v1034_v28 = vadd.f32 %v1033_v24, %v7948_v6  ;;  %v1055_v27 = vadd.f32 %v1054_v14, %v7949_v8 }
  0xa6   : > { %v7950_v21 = vunpack.c.l.bf16 %v4370_v25  ;;  %v7952_v22 = vunpack.c.l.bf16 %v4373_v26  ;;  %v7953_v42 = vunpack.c.h.bf16 %v4373_v26  ;;  %v7954_v10 = vunpack.c.l.bf16 %v4380_v31 }
  0xa7   : > { %v930_v29 = vadd.f32 %v929_v23, %v7951_v3  ;;  %v7955_v24 = vunpack.c.h.bf16 %v4380_v31  ;;  %v7956_v14 = vunpack.c.l.bf16 %v4383_v32  ;;  %v7958_v23 = vunpack.c.l.bf16 %v4390_v37 }
  0xa8   : > { %v909_v16 = vadd.f32 %v908_v2, %v7950_v21  ;;  %v951_v5 = vadd.f32 %v950_v11, %v7952_v22  ;;  %v972_v7 = vadd.f32 %v971_v15, %v7953_v42  ;;  %v993_v36 = vadd.f32 %v992_v1, %v7954_v10 }
  0xa9   : > { %v1014_v6 = vadd.f32 %v1013_v4, %v7955_v24  ;;  %v1035_v8 = vadd.f32 %v1034_v28, %v7956_v14  ;;  %v7957_v2 = vunpack.c.h.bf16 %v4383_v32  ;;  %v7959_v11 = vunpack.c.h.bf16 %v4390_v37 }
  0xaa   : > { %v910_v3 = vadd.f32 %v909_v16, %v7958_v23  ;;  %v7960_v15 = vunpack.c.l.bf16 %v4393_v38  ;;  %v7961_v1 = vunpack.c.h.bf16 %v4393_v38  ;;  %v7962_v4 = vunpack.c.l.bf16 %v4400_v43 }
  0xab   : > { %v1056_v21 = vadd.f32 %v1055_v27, %v7957_v2  ;;  %v931_v22 = vadd.f32 %v930_v29, %v7959_v11  ;;  %v7963_v28 = vunpack.c.h.bf16 %v4400_v43  ;;  %v7964_v27 = vunpack.c.l.bf16 %v4403_v44 }
  0xac   : > { %v952_v42 = vadd.f32 %v951_v5, %v7960_v15  ;;  %v973_v10 = vadd.f32 %v972_v7, %v7961_v1  ;;  %v994_v24 = vadd.f32 %v993_v36, %v7962_v4  ;;  %v7965_v16 = vunpack.c.h.bf16 %v4403_v44 }
  0xad   : > { %v1015_v14 = vadd.f32 %v1014_v6, %v7963_v28  ;;  %v1036_v2 = vadd.f32 %v1035_v8, %v7964_v27  ;;  %v7966_v29 = vunpack.c.l.bf16 %v4410_v49  ;;  %v7967_v5 = vunpack.c.h.bf16 %v4410_v49 }
  0xae   : > { %v1057_v23 = vadd.f32 %v1056_v21, %v7965_v16  ;;  %v7968_v7 = vunpack.c.l.bf16 %v4413_v50  ;;  %v7969_v36 = vunpack.c.h.bf16 %v4413_v50  ;;  %v7970_v6 = vunpack.c.l.bf16 %v4420_v55 }
  0xaf   : > { %v911_v11 = vadd.f32 %v910_v3, %v7966_v29  ;;  %v932_v15 = vadd.f32 %v931_v22, %v7967_v5  ;;  %v7971_v8 = vunpack.c.h.bf16 %v4420_v55  ;;  %v7972_v21 = vunpack.c.l.bf16 %v4423_v56 }
  0xb0   : > { %v953_v1 = vadd.f32 %v952_v42, %v7968_v7  ;;  %v974_v4 = vadd.f32 %v973_v10, %v7969_v36  ;;  %v995_v28 = vadd.f32 %v994_v24, %v7970_v6  ;;  %v7973_v3 = vunpack.c.h.bf16 %v4423_v56 }
  0xb1   : > { %v1016_v27 = vadd.f32 %v1015_v14, %v7971_v8  ;;  %v1037_v16 = vadd.f32 %v1036_v2, %v7972_v21  ;;  %v7974_v22 = vunpack.c.l.bf16 %v4430_v61  ;;  %v7975_v42 = vunpack.c.h.bf16 %v4430_v61 }
  0xb2   : > { %v1058_v29 = vadd.f32 %v1057_v23, %v7973_v3  ;;  %v7976_v10 = vunpack.c.l.bf16 %v4433_v62  ;;  %v7977_v24 = vunpack.c.h.bf16 %v4433_v62  ;;  %v7978_v14 = vunpack.c.l.bf16 %v4440_v58 }
  0xb3   : > { %v912_v5 = vadd.f32 %v911_v11, %v7974_v22  ;;  %v933_v7 = vadd.f32 %v932_v15, %v7975_v42  ;;  %v7979_v2 = vunpack.c.h.bf16 %v4440_v58  ;;  %v7980_v23 = vunpack.c.l.bf16 %v4443_v53 }
  0xb4   : > { %v954_v36 = vadd.f32 %v953_v1, %v7976_v10  ;;  %v975_v6 = vadd.f32 %v974_v4, %v7977_v24  ;;  %v996_v8 = vadd.f32 %v995_v28, %v7978_v14  ;;  %v7981_v11 = vunpack.c.h.bf16 %v4443_v53 }
  0xb5   : > { %v1017_v21 = vadd.f32 %v1016_v27, %v7979_v2  ;;  %v1038_v3 = vadd.f32 %v1037_v16, %v7980_v23  ;;  %v7982_v15 = vunpack.c.l.bf16 %v4450_v0  ;;  %v7983_v1 = vunpack.c.h.bf16 %v4450_v0 }
  0xb6   : > { %v1059_v22 = vadd.f32 %v1058_v29, %v7981_v11  ;;  %v7984_v4 = vunpack.c.l.bf16 %v4453_v51  ;;  %v7985_v28 = vunpack.c.h.bf16 %v4453_v51  ;;  %v7986_v27 = vunpack.c.l.bf16 %v4460_v59 }
  0xb7   : > { %v913_v42 = vadd.f32 %v912_v5, %v7982_v15  ;;  %v934_v10 = vadd.f32 %v933_v7, %v7983_v1  ;;  %v7987_v16 = vunpack.c.h.bf16 %v4460_v59  ;;  %v7988_v29 = vunpack.c.l.bf16 %v4463_v47 }
  0xb8   : > { %v955_v24 = vadd.f32 %v954_v36, %v7984_v4  ;;  %v976_v14 = vadd.f32 %v975_v6, %v7985_v28  ;;  %v997_v2 = vadd.f32 %v996_v8, %v7986_v27  ;;  %v7989_v5 = vunpack.c.h.bf16 %v4463_v47 }
  0xb9   : > { %v1018_v23 = vadd.f32 %v1017_v21, %v7987_v16  ;;  %v1039_v11 = vadd.f32 %v1038_v3, %v7988_v29  ;;  %v7990_v7 = vunpack.c.l.bf16 %v4470_v57  ;;  %v7991_v36 = vunpack.c.h.bf16 %v4470_v57 }
  0xba   : > { %v1060_v15 = vadd.f32 %v1059_v22, %v7989_v5  ;;  %v7992_v6 = vunpack.c.l.bf16 %v4473_v45  ;;  %v7993_v8 = vunpack.c.h.bf16 %v4473_v45  ;;  %v7994_v21 = vunpack.c.l.bf16 %v4480_v63 }
  0xbb   : > { %v914_v1 = vadd.f32 %v913_v42, %v7990_v7  ;;  %v935_v4 = vadd.f32 %v934_v10, %v7991_v36  ;;  %v7995_v3 = vunpack.c.h.bf16 %v4480_v63  ;;  %v7996_v22 = vunpack.c.l.bf16 %v4483_v41 }
  0xbc   : > { %v956_v28 = vadd.f32 %v955_v24, %v7992_v6  ;;  %v977_v27 = vadd.f32 %v976_v14, %v7993_v8  ;;  %v998_v16 = vadd.f32 %v997_v2, %v7994_v21  ;;  %v7997_v42 = vunpack.c.h.bf16 %v4483_v41 }
  0xbd   : > { %v1019_v29 = vadd.f32 %v1018_v23, %v7995_v3  ;;  %v1040_v5 = vadd.f32 %v1039_v11, %v7996_v22  ;;  %v7998_v10 = vunpack.c.l.bf16 %v4490_v60  ;;  %v7999_v24 = vunpack.c.h.bf16 %v4490_v60 }
  0xbe   : > { %v1061_v7 = vadd.f32 %v1060_v15, %v7997_v42  ;;  %v8000_v14 = vunpack.c.l.bf16 %v4493_v39  ;;  %v8001_v2 = vunpack.c.h.bf16 %v4493_v39  ;;  %v8002_v23 = vunpack.c.l.bf16 %v4500_v54 }
  0xbf   : > { %v915_v36 = vadd.f32 %v914_v1, %v7998_v10  ;;  %v936_v6 = vadd.f32 %v935_v4, %v7999_v24  ;;  %v8003_v11 = vunpack.c.h.bf16 %v4500_v54  ;;  %v8004_v15 = vunpack.c.l.bf16 %v4503_v35 }
  0xc0   : > { %v957_v8 = vadd.f32 %v956_v28, %v8000_v14  ;;  %v978_v21 = vadd.f32 %v977_v27, %v8001_v2  ;;  %v999_v3 = vadd.f32 %v998_v16, %v8002_v23  ;;  %v8005_v1 = vunpack.c.h.bf16 %v4503_v35 }
  0xc1   : > { %v1020_v22 = vadd.f32 %v1019_v29, %v8003_v11  ;;  %v1041_v42 = vadd.f32 %v1040_v5, %v8004_v15  ;;  %v8006_v4 = vunpack.c.l.bf16 %v4510_v52  ;;  %v8007_v28 = vunpack.c.h.bf16 %v4510_v52 }
  0xc2   : > { %v1062_v10 = vadd.f32 %v1061_v7, %v8005_v1  ;;  %v8008_v27 = vunpack.c.l.bf16 %v4513_v33  ;;  %v8009_v16 = vunpack.c.h.bf16 %v4513_v33  ;;  %v8010_v29 = vunpack.c.l.bf16 %v4520_v48  ;;  %v8016_v33 = vld [vmem:[#allocation36_spill] sm:$0xff] }
  0xc3   : > { %v916_v24 = vadd.f32 %v915_v36, %v8006_v4  ;;  %v937_v14 = vadd.f32 %v936_v6, %v8007_v28  ;;  %v8011_v5 = vunpack.c.h.bf16 %v4520_v48  ;;  %v8012_v7 = vunpack.c.l.bf16 %v4523_v17  ;;  %v8019_v48 = vld [vmem:[#allocation37_spill] sm:$0xff] }
  0xc4   : > { %v958_v2 = vadd.f32 %v957_v8, %v8008_v27  ;;  %v979_v23 = vadd.f32 %v978_v21, %v8009_v16  ;;  %v1000_v11 = vadd.f32 %v999_v3, %v8010_v29  ;;  %v8013_v36 = vunpack.c.h.bf16 %v4523_v17  ;;  %v8022_v17 = vld [vmem:[#allocation38_spill] sm:$0xff] }
  0xc5   : > { %v1021_v15 = vadd.f32 %v1020_v22, %v8011_v5  ;;  %v1042_v1 = vadd.f32 %v1041_v42, %v8012_v7  ;;  %v8014_v6 = vunpack.c.l.bf16 %v4530_v46  ;;  %v8015_v8 = vunpack.c.h.bf16 %v4530_v46  ;;  %v8025_v46 = vld [vmem:[#allocation39_spill] sm:$0xff] }
  0xc6   : > { %v1063_v4 = vadd.f32 %v1062_v10, %v8013_v36  ;;  %v8017_v21 = vunpack.c.l.bf16 %v8016_v33  ;;  %v8018_v3 = vunpack.c.h.bf16 %v8016_v33  ;;  %v8020_v22 = vunpack.c.l.bf16 %v8019_v48  ;;  %v8028_v33 = vld [vmem:[#allocation40_spill] sm:$0xff] }
  0xc7   : > { %v917_v28 = vadd.f32 %v916_v24, %v8014_v6  ;;  %v938_v27 = vadd.f32 %v937_v14, %v8015_v8  ;;  %v8021_v42 = vunpack.c.h.bf16 %v8019_v48  ;;  %v8023_v10 = vunpack.c.l.bf16 %v8022_v17  ;;  %v8031_v48 = vld [vmem:[#allocation41_spill] sm:$0xff] }
  0xc8   : > { %v959_v16 = vadd.f32 %v958_v2, %v8017_v21  ;;  %v980_v29 = vadd.f32 %v979_v23, %v8018_v3  ;;  %v1001_v5 = vadd.f32 %v1000_v11, %v8020_v22  ;;  %v8024_v24 = vunpack.c.h.bf16 %v8022_v17  ;;  %v8034_v17 = vld [vmem:[#allocation42_spill] sm:$0xff] }
  0xc9   : > { %v1022_v7 = vadd.f32 %v1021_v15, %v8021_v42  ;;  %v1043_v36 = vadd.f32 %v1042_v1, %v8023_v10  ;;  %v8026_v14 = vunpack.c.l.bf16 %v8025_v46  ;;  %v8027_v2 = vunpack.c.h.bf16 %v8025_v46  ;;  %v8037_v46 = vld [vmem:[#allocation43_spill] sm:$0xff] }
  0xca   : > { %v1064_v6 = vadd.f32 %v1063_v4, %v8024_v24  ;;  %v8029_v23 = vunpack.c.l.bf16 %v8028_v33  ;;  %v8030_v11 = vunpack.c.h.bf16 %v8028_v33  ;;  %v8032_v15 = vunpack.c.l.bf16 %v8031_v48  ;;  %v8040_v33 = vld [vmem:[#allocation44_spill] sm:$0xff] }
  0xcb   : > { %v918_v8 = vadd.f32 %v917_v28, %v8026_v14  ;;  %v939_v21 = vadd.f32 %v938_v27, %v8027_v2  ;;  %v8033_v1 = vunpack.c.h.bf16 %v8031_v48  ;;  %v8035_v4 = vunpack.c.l.bf16 %v8034_v17  ;;  %v8043_v48 = vld [vmem:[#allocation45_spill] sm:$0xff] }
  0xcc   : > { %v960_v3 = vadd.f32 %v959_v16, %v8029_v23  ;;  %v981_v22 = vadd.f32 %v980_v29, %v8030_v11  ;;  %v1002_v42 = vadd.f32 %v1001_v5, %v8032_v15  ;;  %v8036_v28 = vunpack.c.h.bf16 %v8034_v17  ;;  %v8046_v17 = vld [vmem:[#allocation46_spill] sm:$0xff] }
  0xcd   : > { %v1023_v10 = vadd.f32 %v1022_v7, %v8033_v1  ;;  %v1044_v24 = vadd.f32 %v1043_v36, %v8035_v4  ;;  %v8038_v27 = vunpack.c.l.bf16 %v8037_v46  ;;  %v8039_v16 = vunpack.c.h.bf16 %v8037_v46  ;;  %v8049_v46 = vld [vmem:[#allocation47_spill] sm:$0xff] }
  0xce   : > { %v1065_v14 = vadd.f32 %v1064_v6, %v8036_v28  ;;  %v8041_v29 = vunpack.c.l.bf16 %v8040_v33  ;;  %v8042_v5 = vunpack.c.h.bf16 %v8040_v33  ;;  %v8044_v7 = vunpack.c.l.bf16 %v8043_v48  ;;  %v8052_v33 = vld [vmem:[#allocation48_spill] sm:$0xff] }
  0xcf   : > { %v919_v2 = vadd.f32 %v918_v8, %v8038_v27  ;;  %v940_v23 = vadd.f32 %v939_v21, %v8039_v16  ;;  %v8045_v36 = vunpack.c.h.bf16 %v8043_v48  ;;  %v8047_v6 = vunpack.c.l.bf16 %v8046_v17  ;;  %v8055_v48 = vld [vmem:[#allocation49_spill] sm:$0xff] }
  0xd0   : > { %v961_v11 = vadd.f32 %v960_v3, %v8041_v29  ;;  %v982_v15 = vadd.f32 %v981_v22, %v8042_v5  ;;  %v1003_v1 = vadd.f32 %v1002_v42, %v8044_v7  ;;  %v8048_v8 = vunpack.c.h.bf16 %v8046_v17  ;;  %v8058_v17 = vld [vmem:[#allocation50_spill] sm:$0xff] }
  0xd1   : > { %v1024_v4 = vadd.f32 %v1023_v10, %v8045_v36  ;;  %v1045_v28 = vadd.f32 %v1044_v24, %v8047_v6  ;;  %v8050_v21 = vunpack.c.l.bf16 %v8049_v46  ;;  %v8051_v3 = vunpack.c.h.bf16 %v8049_v46  ;;  %v8061_v46 = vld [vmem:[#allocation51_spill] sm:$0xff] }
  0xd2   : > { %v1066_v27 = vadd.f32 %v1065_v14, %v8048_v8  ;;  %v8053_v22 = vunpack.c.l.bf16 %v8052_v33  ;;  %v8054_v42 = vunpack.c.h.bf16 %v8052_v33  ;;  %v8056_v10 = vunpack.c.l.bf16 %v8055_v48  ;;  %v8064_v33 = vld [vmem:[#allocation52_spill] sm:$0xff] }
  0xd3   : > { %v920_v16 = vadd.f32 %v919_v2, %v8050_v21  ;;  %v941_v29 = vadd.f32 %v940_v23, %v8051_v3  ;;  %v8057_v24 = vunpack.c.h.bf16 %v8055_v48  ;;  %v8059_v14 = vunpack.c.l.bf16 %v8058_v17  ;;  %v8067_v48 = vld [vmem:[#allocation53_spill] sm:$0xff] }
  0xd4   : > { %v962_v5 = vadd.f32 %v961_v11, %v8053_v22  ;;  %v983_v7 = vadd.f32 %v982_v15, %v8054_v42  ;;  %v1004_v36 = vadd.f32 %v1003_v1, %v8056_v10  ;;  %v8060_v2 = vunpack.c.h.bf16 %v8058_v17  ;;  %v8070_v17 = vld [vmem:[#allocation54_spill] sm:$0xff] }
  0xd5   : > { %v1025_v6 = vadd.f32 %v1024_v4, %v8057_v24  ;;  %v1046_v8 = vadd.f32 %v1045_v28, %v8059_v14  ;;  %v8062_v23 = vunpack.c.l.bf16 %v8061_v46  ;;  %v8063_v11 = vunpack.c.h.bf16 %v8061_v46 }
  0xd6   : > { %v1067_v21 = vadd.f32 %v1066_v27, %v8060_v2  ;;  %v8065_v15 = vunpack.c.l.bf16 %v8064_v33  ;;  %v8066_v1 = vunpack.c.h.bf16 %v8064_v33  ;;  %v8068_v4 = vunpack.c.l.bf16 %v8067_v48 }
  0xd7   : > { %v921_v3 = vadd.f32 %v920_v16, %v8062_v23  ;;  %v942_v22 = vadd.f32 %v941_v29, %v8063_v11  ;;  %v8069_v28 = vunpack.c.h.bf16 %v8067_v48  ;;  %v8071_v27 = vunpack.c.l.bf16 %v8070_v17 }
  0xd8   : > { %v963_v42 = vadd.f32 %v962_v5, %v8065_v15  ;;  %v984_v10 = vadd.f32 %v983_v7, %v8066_v1  ;;  %v1005_v24 = vadd.f32 %v1004_v36, %v8068_v4  ;;  %v8072_v16 = vunpack.c.h.bf16 %v8070_v17 }
  0xd9   : > { %v1026_v14 = vadd.f32 %v1025_v6, %v8069_v28  ;;  %v1047_v2 = vadd.f32 %v1046_v8, %v8071_v27  ;;  %v922_v46 = vrot.slane %v921_v3, 4  ;;  %v943_v29 = vrot.slane %v942_v22, 4 }
  0xda   : > { %v1068_v23 = vadd.f32 %v1067_v21, %v8072_v16  ;;  %v964_v11 = vrot.slane %v963_v42, 4  ;;  %v985_v35 = vrot.slane %v984_v10, 4  ;;  %v1006_v5 = vrot.slane %v1005_v24, 4 }
  0xdb   : > { %v1027_v15 = vrot.slane %v1026_v14, 4  ;;  %v1048_v33 = vrot.slane %v1047_v2, 4  ;;  %v923_v1 = vadd.f32 %v922_v46, %v921_v3  ;;  %v944_v52 = vadd.f32 %v943_v29, %v942_v22 }
  0xdc   : > { %v1069_v7 = vrot.slane %v1068_v23, 4  ;;  %v965_v36 = vadd.f32 %v964_v11, %v963_v42  ;;  %v986_v4 = vadd.f32 %v985_v35, %v984_v10  ;;  %v1007_v48 = vadd.f32 %v1006_v5, %v1005_v24 }
  0xdd   : > { %v1028_v6 = vadd.f32 %v1027_v15, %v1026_v14  ;;  %v1049_v28 = vadd.f32 %v1048_v33, %v1047_v2  ;;  %v924_v8 = vrot.slane %v923_v1, 2  ;;  %v945_v27 = vrot.slane %v944_v52, 2 }
  0xde   : > { %v1070_v54 = vadd.f32 %v1069_v7, %v1068_v23  ;;  %v966_v17 = vrot.slane %v965_v36, 2  ;;  %v987_v21 = vrot.slane %v986_v4, 2  ;;  %v1008_v16 = vrot.slane %v1007_v48, 2  ;;  %v8075_v7 = vld [vmem:[#allocation59_spill] sm:$0xff] }
  0xdf   : > { %v1029_v39 = vrot.slane %v1028_v6, 2  ;;  %v1050_v41 = vrot.slane %v1049_v28, 2  ;;  %v925_v63 = vadd.f32 %v924_v8, %v923_v1  ;;  %v946_v45 = vadd.f32 %v945_v27, %v944_v52 }
  0xe0   : > { %v1071_v60 = vrot.slane %v1070_v54, 2  ;;  %v967_v47 = vadd.f32 %v966_v17, %v965_v36  ;;  %v988_v57 = vadd.f32 %v987_v21, %v986_v4  ;;  %v1009_v46 = vadd.f32 %v1008_v16, %v1007_v48 }
  0xe1   : > { %v1030_v3 = vadd.f32 %v1029_v39, %v1028_v6  ;;  %v1051_v22 = vadd.f32 %v1050_v41, %v1049_v28  ;;  %v926_v42 = vrot.slane %v925_v63, 1  ;;  %v947_v10 = vrot.slane %v946_v45, 1  ;;  %v8081_v6 = vld [vmem:[#allocation60_spill] sm:$0xff] }
  0xe2   : > { %v1072_v35 = vadd.f32 %v1071_v60, %v1070_v54  ;;  %v968_v33 = vrot.slane %v967_v47, 1  ;;  %v989_v24 = vrot.slane %v988_v57, 1  ;;  %v1010_v14 = vrot.slane %v1009_v46, 1  ;;  %v8073_v54 = vld [vmem:[#allocation55_spill] sm:$0xff] }
  0xe3   : > { %v1031_v2 = vrot.slane %v1030_v3, 1  ;;  %v1052_v23 = vrot.slane %v1051_v22, 1  ;;  %v5217_v11 = vadd.f32 %v926_v42, %v925_v63  ;;  %v5219_v5 = vadd.f32 %v947_v10, %v946_v45 }
  0xe4   : > { %v1073_v29 = vrot.slane %v1072_v35, 1  ;;  %v5221_v15 = vadd.f32 %v968_v33, %v967_v47  ;;  %v5223_v17 = vadd.f32 %v989_v24, %v988_v57  ;;  %v5225_v48 = vadd.f32 %v1010_v14, %v1009_v46  ;;  %v8079_v57 = vld [vmem:[#allocation56_spill] sm:$0xff]  ;;  %v8085_v46 = vld [vmem:[#allocation57_spill] sm:$0xff]  ;;  %v8091_v14 = vld [vmem:[#allocation58_spill] sm:$0xff] }
  0xe5   : > { %v5227_v39 = vadd.f32 %v1031_v2, %v1030_v3  ;;  %v5229_v41 = vadd.f32 %v1052_v23, %v1051_v22  ;;  %v8074_v60 = vunpack.c.l.bf16 %v8073_v54  ;;  %v8076_v1 = vunpack.c.l.bf16 %v8075_v7  ;;  %v8087_v22 = vld [vmem:[#allocation61_spill] sm:$0xff]  ;;  %v8093_v23 = vld [vmem:[#allocation62_spill] sm:$0xff] }
  0xe6   : > { %v5231_v52 = vadd.f32 %v1073_v29, %v1072_v35  ;;  %v8077_v45 = vunpack.c.h.bf16 %v8073_v54  ;;  %v8078_v47 = vunpack.c.h.bf16 %v8075_v7  ;;  %v8080_v4 = vunpack.c.l.bf16 %v8079_v57 }
  0xe7   : > { %v1075_v63 = vadd.f32 %v8076_v1, %v8074_v60  ;;  %v8082_v28 = vunpack.c.l.bf16 %v8081_v6  ;;  %v8083_v27 = vunpack.c.h.bf16 %v8079_v57  ;;  %v8084_v21 = vunpack.c.h.bf16 %v8081_v6  ;;  %v8103_v6 = vld [vmem:[#allocation65_spill] sm:$0xff] }
  0xe8   : > { %v1096_v36 = vadd.f32 %v8078_v47, %v8077_v45  ;;  %v8086_v3 = vunpack.c.l.bf16 %v8085_v46  ;;  %v8088_v35 = vunpack.c.l.bf16 %v8087_v22  ;;  %v8089_v10 = vunpack.c.h.bf16 %v8085_v46 }
  0xe9   : > { %v1117_v8 = vadd.f32 %v8082_v28, %v8080_v4  ;;  %v1138_v16 = vadd.f32 %v8084_v21, %v8083_v27  ;;  %v8090_v33 = vunpack.c.h.bf16 %v8087_v22  ;;  %v8092_v2 = vunpack.c.l.bf16 %v8091_v14  ;;  %v8097_v4 = vld [vmem:[#allocation63_spill] sm:$0xff] }
  0xea   : > { %v1159_v42 = vadd.f32 %v8088_v35, %v8086_v3  ;;  %v8094_v29 = vunpack.c.l.bf16 %v8093_v23  ;;  %v8095_v1 = vunpack.c.h.bf16 %v8091_v14  ;;  %v8096_v45 = vunpack.c.h.bf16 %v8093_v23  ;;  %v8100_v35 = vld [vmem:[#allocation64_spill] sm:$0xff]  ;;  %v8106_v23 = vld [vmem:[#allocation66_spill] sm:$0xff] }
  0xeb   : > { %v1180_v24 = vadd.f32 %v8090_v33, %v8089_v10  ;;  %v8098_v28 = vunpack.c.l.bf16 %v8097_v4  ;;  %v8099_v21 = vunpack.c.h.bf16 %v8097_v4  ;;  %v8101_v46 = vunpack.c.l.bf16 %v8100_v35  ;;  %v8109_v4 = vld [vmem:[#allocation67_spill] sm:$0xff] }
  0xec   : > { %v1201_v60 = vadd.f32 %v8094_v29, %v8092_v2  ;;  %v1222_v47 = vadd.f32 %v8096_v45, %v8095_v1  ;;  %v8102_v10 = vunpack.c.h.bf16 %v8100_v35  ;;  %v8104_v57 = vunpack.c.l.bf16 %v8103_v6  ;;  %v8112_v35 = vld [vmem:[#allocation68_spill] sm:$0xff] }
  0xed   : > { %v1076_v27 = vadd.f32 %v1075_v63, %v8098_v28  ;;  %v1097_v3 = vadd.f32 %v1096_v36, %v8099_v21  ;;  %v1118_v22 = vadd.f32 %v1117_v8, %v8101_v46  ;;  %v8105_v29 = vunpack.c.h.bf16 %v8103_v6  ;;  %v8115_v6 = vld [vmem:[#allocation69_spill] sm:$0xff] }
  0xee   : > { %v1139_v33 = vadd.f32 %v1138_v16, %v8102_v10  ;;  %v1160_v2 = vadd.f32 %v1159_v42, %v8104_v57  ;;  %v8107_v1 = vunpack.c.l.bf16 %v8106_v23  ;;  %v8108_v63 = vunpack.c.h.bf16 %v8106_v23  ;;  %v8118_v23 = vld [vmem:[#allocation70_spill] sm:$0xff] }
  0xef   : > { %v1181_v14 = vadd.f32 %v1180_v24, %v8105_v29  ;;  %v8110_v36 = vunpack.c.l.bf16 %v8109_v4  ;;  %v8111_v8 = vunpack.c.h.bf16 %v8109_v4  ;;  %v8113_v16 = vunpack.c.l.bf16 %v8112_v35  ;;  %v8121_v4 = vld [vmem:[#allocation71_spill] sm:$0xff] }
  0xf0   : > { %v1202_v45 = vadd.f32 %v1201_v60, %v8107_v1  ;;  %v1223_v28 = vadd.f32 %v1222_v47, %v8108_v63  ;;  %v8114_v57 = vunpack.c.h.bf16 %v8112_v35  ;;  %v8116_v24 = vunpack.c.l.bf16 %v8115_v6  ;;  %v8124_v35 = vld [vmem:[#allocation72_spill] sm:$0xff] }
  0xf1   : > { %v1077_v21 = vadd.f32 %v1076_v27, %v8110_v36  ;;  %v1098_v46 = vadd.f32 %v1097_v3, %v8111_v8  ;;  %v1119_v10 = vadd.f32 %v1118_v22, %v8113_v16  ;;  %v8117_v60 = vunpack.c.h.bf16 %v8115_v6  ;;  %v8127_v6 = vld [vmem:[#allocation73_spill] sm:$0xff] }
  0xf2   : > { %v1140_v42 = vadd.f32 %v1139_v33, %v8114_v57  ;;  %v1161_v29 = vadd.f32 %v1160_v2, %v8116_v24  ;;  %v8119_v47 = vunpack.c.l.bf16 %v8118_v23  ;;  %v8120_v27 = vunpack.c.h.bf16 %v8118_v23  ;;  %v8130_v23 = vld [vmem:[#allocation74_spill] sm:$0xff] }
  0xf3   : > { %v1182_v1 = vadd.f32 %v1181_v14, %v8117_v60  ;;  %v8122_v3 = vunpack.c.l.bf16 %v8121_v4  ;;  %v8123_v22 = vunpack.c.h.bf16 %v8121_v4  ;;  %v8125_v33 = vunpack.c.l.bf16 %v8124_v35  ;;  %v8133_v4 = vld [vmem:[#allocation75_spill] sm:$0xff] }
  0xf4   : > { %v1203_v63 = vadd.f32 %v1202_v45, %v8119_v47  ;;  %v1224_v36 = vadd.f32 %v1223_v28, %v8120_v27  ;;  %v8126_v2 = vunpack.c.h.bf16 %v8124_v35  ;;  %v8128_v14 = vunpack.c.l.bf16 %v8127_v6  ;;  %v8136_v35 = vld [vmem:[#allocation76_spill] sm:$0xff] }
  0xf5   : > { %v1078_v8 = vadd.f32 %v1077_v21, %v8122_v3  ;;  %v1099_v16 = vadd.f32 %v1098_v46, %v8123_v22  ;;  %v1120_v57 = vadd.f32 %v1119_v10, %v8125_v33  ;;  %v8129_v45 = vunpack.c.h.bf16 %v8127_v6  ;;  %v8139_v6 = vld [vmem:[#allocation77_spill] sm:$0xff] }
  0xf6   : > { %v1141_v24 = vadd.f32 %v1140_v42, %v8126_v2  ;;  %v1162_v60 = vadd.f32 %v1161_v29, %v8128_v14  ;;  %v8131_v28 = vunpack.c.l.bf16 %v8130_v23  ;;  %v8132_v21 = vunpack.c.h.bf16 %v8130_v23  ;;  %v8142_v23 = vld [vmem:[#allocation78_spill] sm:$0xff] }
  0xf7   : > { %v1183_v47 = vadd.f32 %v1182_v1, %v8129_v45  ;;  %v8134_v46 = vunpack.c.l.bf16 %v8133_v4  ;;  %v8135_v10 = vunpack.c.h.bf16 %v8133_v4  ;;  %v8137_v42 = vunpack.c.l.bf16 %v8136_v35  ;;  %v8145_v4 = vld [vmem:[#allocation79_spill] sm:$0xff] }
  0xf8   : > { %v1204_v27 = vadd.f32 %v1203_v63, %v8131_v28  ;;  %v1225_v3 = vadd.f32 %v1224_v36, %v8132_v21  ;;  %v8138_v29 = vunpack.c.h.bf16 %v8136_v35  ;;  %v8140_v1 = vunpack.c.l.bf16 %v8139_v6  ;;  %v8148_v35 = vld [vmem:[#allocation80_spill] sm:$0xff] }
  0xf9   : > { %v1079_v22 = vadd.f32 %v1078_v8, %v8134_v46  ;;  %v1100_v33 = vadd.f32 %v1099_v16, %v8135_v10  ;;  %v1121_v2 = vadd.f32 %v1120_v57, %v8137_v42  ;;  %v8141_v63 = vunpack.c.h.bf16 %v8139_v6  ;;  %v8151_v6 = vld [vmem:[#allocation81_spill] sm:$0xff] }
  0xfa   : > { %v1142_v14 = vadd.f32 %v1141_v24, %v8138_v29  ;;  %v1163_v45 = vadd.f32 %v1162_v60, %v8140_v1  ;;  %v8143_v36 = vunpack.c.l.bf16 %v8142_v23  ;;  %v8144_v8 = vunpack.c.h.bf16 %v8142_v23  ;;  %v8154_v23 = vld [vmem:[#allocation82_spill] sm:$0xff] }
  0xfb   : > { %v1184_v28 = vadd.f32 %v1183_v47, %v8141_v63  ;;  %v8146_v16 = vunpack.c.l.bf16 %v8145_v4  ;;  %v8147_v57 = vunpack.c.h.bf16 %v8145_v4  ;;  %v8149_v24 = vunpack.c.l.bf16 %v8148_v35  ;;  %v8157_v4 = vld [vmem:[#allocation83_spill] sm:$0xff] }
  0xfc   : > { %v1205_v21 = vadd.f32 %v1204_v27, %v8143_v36  ;;  %v1226_v46 = vadd.f32 %v1225_v3, %v8144_v8  ;;  %v8150_v60 = vunpack.c.h.bf16 %v8148_v35  ;;  %v8152_v47 = vunpack.c.l.bf16 %v8151_v6  ;;  %v8160_v35 = vld [vmem:[#allocation84_spill] sm:$0xff] }
  0xfd   : > { %v1080_v10 = vadd.f32 %v1079_v22, %v8146_v16  ;;  %v1101_v42 = vadd.f32 %v1100_v33, %v8147_v57  ;;  %v1122_v29 = vadd.f32 %v1121_v2, %v8149_v24  ;;  %v8153_v27 = vunpack.c.h.bf16 %v8151_v6  ;;  %v8163_v6 = vld [vmem:[#allocation85_spill] sm:$0xff] }
  0xfe   : > { %v1143_v1 = vadd.f32 %v1142_v14, %v8150_v60  ;;  %v1164_v63 = vadd.f32 %v1163_v45, %v8152_v47  ;;  %v8155_v3 = vunpack.c.l.bf16 %v8154_v23  ;;  %v8156_v22 = vunpack.c.h.bf16 %v8154_v23  ;;  %v8166_v23 = vld [vmem:[#allocation86_spill] sm:$0xff] }
  0xff   : > { %v1185_v36 = vadd.f32 %v1184_v28, %v8153_v27  ;;  %v8158_v33 = vunpack.c.l.bf16 %v8157_v4  ;;  %v8159_v2 = vunpack.c.h.bf16 %v8157_v4  ;;  %v8161_v14 = vunpack.c.l.bf16 %v8160_v35  ;;  %v8169_v4 = vld [vmem:[#allocation87_spill] sm:$0xff] }
 0x100   : > { %v1206_v8 = vadd.f32 %v1205_v21, %v8155_v3  ;;  %v1227_v16 = vadd.f32 %v1226_v46, %v8156_v22  ;;  %v8162_v45 = vunpack.c.h.bf16 %v8160_v35  ;;  %v8164_v28 = vunpack.c.l.bf16 %v8163_v6  ;;  %v8172_v35 = vld [vmem:[#allocation88_spill] sm:$0xff] }
 0x101   : > { %v1081_v57 = vadd.f32 %v1080_v10, %v8158_v33  ;;  %v1102_v24 = vadd.f32 %v1101_v42, %v8159_v2  ;;  %v1123_v60 = vadd.f32 %v1122_v29, %v8161_v14  ;;  %v8165_v21 = vunpack.c.h.bf16 %v8163_v6  ;;  %v8175_v6 = vld [vmem:[#allocation89_spill] sm:$0xff] }
 0x102   : > { %v1144_v47 = vadd.f32 %v1143_v1, %v8162_v45  ;;  %v1165_v27 = vadd.f32 %v1164_v63, %v8164_v28  ;;  %v8167_v46 = vunpack.c.l.bf16 %v8166_v23  ;;  %v8168_v10 = vunpack.c.h.bf16 %v8166_v23  ;;  %v8178_v23 = vld [vmem:[#allocation90_spill] sm:$0xff] }
 0x103   : > { %v1186_v3 = vadd.f32 %v1185_v36, %v8165_v21  ;;  %v8170_v42 = vunpack.c.l.bf16 %v8169_v4  ;;  %v8171_v29 = vunpack.c.h.bf16 %v8169_v4  ;;  %v8173_v1 = vunpack.c.l.bf16 %v8172_v35  ;;  %v8181_v4 = vld [vmem:[#allocation91_spill] sm:$0xff] }
 0x104   : > { %v1207_v22 = vadd.f32 %v1206_v8, %v8167_v46  ;;  %v1228_v33 = vadd.f32 %v1227_v16, %v8168_v10  ;;  %v8174_v63 = vunpack.c.h.bf16 %v8172_v35  ;;  %v8176_v36 = vunpack.c.l.bf16 %v8175_v6  ;;  %v8184_v35 = vld [vmem:[#allocation92_spill] sm:$0xff] }
 0x105   : > { %v1082_v2 = vadd.f32 %v1081_v57, %v8170_v42  ;;  %v1103_v14 = vadd.f32 %v1102_v24, %v8171_v29  ;;  %v1124_v45 = vadd.f32 %v1123_v60, %v8173_v1  ;;  %v8177_v8 = vunpack.c.h.bf16 %v8175_v6  ;;  %v8187_v6 = vld [vmem:[#allocation93_spill] sm:$0xff] }
 0x106   : > { %v1145_v28 = vadd.f32 %v1144_v47, %v8174_v63  ;;  %v1166_v21 = vadd.f32 %v1165_v27, %v8176_v36  ;;  %v8179_v16 = vunpack.c.l.bf16 %v8178_v23  ;;  %v8180_v57 = vunpack.c.h.bf16 %v8178_v23  ;;  %v8190_v23 = vld [vmem:[#allocation94_spill] sm:$0xff] }
 0x107   : > { %v1187_v46 = vadd.f32 %v1186_v3, %v8177_v8  ;;  %v8182_v24 = vunpack.c.l.bf16 %v8181_v4  ;;  %v8183_v60 = vunpack.c.h.bf16 %v8181_v4  ;;  %v8185_v47 = vunpack.c.l.bf16 %v8184_v35  ;;  %v8193_v4 = vld [vmem:[#allocation95_spill] sm:$0xff] }
 0x108   : > { %v1208_v10 = vadd.f32 %v1207_v22, %v8179_v16  ;;  %v1229_v42 = vadd.f32 %v1228_v33, %v8180_v57  ;;  %v8186_v27 = vunpack.c.h.bf16 %v8184_v35  ;;  %v8188_v3 = vunpack.c.l.bf16 %v8187_v6  ;;  %v8196_v35 = vld [vmem:[#allocation96_spill] sm:$0xff] }
 0x109   : > { %v1083_v29 = vadd.f32 %v1082_v2, %v8182_v24  ;;  %v1104_v1 = vadd.f32 %v1103_v14, %v8183_v60  ;;  %v1125_v63 = vadd.f32 %v1124_v45, %v8185_v47  ;;  %v8189_v22 = vunpack.c.h.bf16 %v8187_v6  ;;  %v8199_v6 = vld [vmem:[#allocation97_spill] sm:$0xff] }
 0x10a   : > { %v1146_v36 = vadd.f32 %v1145_v28, %v8186_v27  ;;  %v1167_v8 = vadd.f32 %v1166_v21, %v8188_v3  ;;  %v8191_v33 = vunpack.c.l.bf16 %v8190_v23  ;;  %v8192_v2 = vunpack.c.h.bf16 %v8190_v23  ;;  %v8202_v23 = vld [vmem:[#allocation98_spill] sm:$0xff] }
 0x10b   : > { %v1188_v16 = vadd.f32 %v1187_v46, %v8189_v22  ;;  %v8194_v14 = vunpack.c.l.bf16 %v8193_v4  ;;  %v8195_v45 = vunpack.c.h.bf16 %v8193_v4  ;;  %v8197_v28 = vunpack.c.l.bf16 %v8196_v35  ;;  %v8205_v4 = vld [vmem:[#allocation99_spill] sm:$0xff] }
 0x10c   : > { %v1209_v57 = vadd.f32 %v1208_v10, %v8191_v33  ;;  %v1230_v24 = vadd.f32 %v1229_v42, %v8192_v2  ;;  %v8198_v21 = vunpack.c.h.bf16 %v8196_v35  ;;  %v8200_v46 = vunpack.c.l.bf16 %v8199_v6  ;;  %v8208_v35 = vld [vmem:[#allocation100_spill] sm:$0xff] }
 0x10d   : > { %v1084_v60 = vadd.f32 %v1083_v29, %v8194_v14  ;;  %v1105_v47 = vadd.f32 %v1104_v1, %v8195_v45  ;;  %v1126_v27 = vadd.f32 %v1125_v63, %v8197_v28  ;;  %v8201_v10 = vunpack.c.h.bf16 %v8199_v6  ;;  %v8211_v6 = vld [vmem:[#allocation101_spill] sm:$0xff] }
 0x10e   : > { %v1147_v3 = vadd.f32 %v1146_v36, %v8198_v21  ;;  %v1168_v22 = vadd.f32 %v1167_v8, %v8200_v46  ;;  %v8203_v42 = vunpack.c.l.bf16 %v8202_v23  ;;  %v8204_v29 = vunpack.c.h.bf16 %v8202_v23  ;;  %v8214_v23 = vld [vmem:[#allocation102_spill] sm:$0xff] }
 0x10f   : > { %v1189_v33 = vadd.f32 %v1188_v16, %v8201_v10  ;;  %v8206_v1 = vunpack.c.l.bf16 %v8205_v4  ;;  %v8207_v63 = vunpack.c.h.bf16 %v8205_v4  ;;  %v8209_v36 = vunpack.c.l.bf16 %v8208_v35  ;;  %v8217_v4 = vld [vmem:[#allocation103_spill] sm:$0xff] }
 0x110   : > { %v1210_v2 = vadd.f32 %v1209_v57, %v8203_v42  ;;  %v1231_v14 = vadd.f32 %v1230_v24, %v8204_v29  ;;  %v8210_v8 = vunpack.c.h.bf16 %v8208_v35  ;;  %v8212_v16 = vunpack.c.l.bf16 %v8211_v6  ;;  %v8220_v35 = vld [vmem:[#allocation104_spill] sm:$0xff] }
 0x111   : > { %v1085_v45 = vadd.f32 %v1084_v60, %v8206_v1  ;;  %v1106_v28 = vadd.f32 %v1105_v47, %v8207_v63  ;;  %v1127_v21 = vadd.f32 %v1126_v27, %v8209_v36  ;;  %v8213_v57 = vunpack.c.h.bf16 %v8211_v6  ;;  %v8223_v6 = vld [vmem:[#allocation105_spill] sm:$0xff] }
 0x112   : > { %v1148_v46 = vadd.f32 %v1147_v3, %v8210_v8  ;;  %v1169_v10 = vadd.f32 %v1168_v22, %v8212_v16  ;;  %v8215_v24 = vunpack.c.l.bf16 %v8214_v23  ;;  %v8216_v60 = vunpack.c.h.bf16 %v8214_v23  ;;  %v8226_v23 = vld [vmem:[#allocation106_spill] sm:$0xff] }
 0x113   : > { %v1190_v42 = vadd.f32 %v1189_v33, %v8213_v57  ;;  %v8218_v47 = vunpack.c.l.bf16 %v8217_v4  ;;  %v8219_v27 = vunpack.c.h.bf16 %v8217_v4  ;;  %v8221_v3 = vunpack.c.l.bf16 %v8220_v35 }
 0x114   : > { %v1211_v29 = vadd.f32 %v1210_v2, %v8215_v24  ;;  %v1232_v1 = vadd.f32 %v1231_v14, %v8216_v60  ;;  %v8222_v22 = vunpack.c.h.bf16 %v8220_v35  ;;  %v8224_v33 = vunpack.c.l.bf16 %v8223_v6  ;;  %v8231_v35 = vld [vmem:[#allocation108_spill] sm:$0xff] }
 0x115   : > { %v1086_v63 = vadd.f32 %v1085_v45, %v8218_v47  ;;  %v1107_v36 = vadd.f32 %v1106_v28, %v8219_v27  ;;  %v1128_v8 = vadd.f32 %v1127_v21, %v8221_v3  ;;  %v8225_v2 = vunpack.c.h.bf16 %v8223_v6  ;;  %v8234_v6 = vld [vmem:[#allocation109_spill] sm:$0xff] }
 0x116   : > { %v1149_v16 = vadd.f32 %v1148_v46, %v8222_v22  ;;  %v1170_v57 = vadd.f32 %v1169_v10, %v8224_v33  ;;  %v8227_v14 = vunpack.c.l.bf16 %v8226_v23  ;;  %v8228_v45 = vunpack.c.h.bf16 %v8226_v23  ;;  %v8237_v23 = vld [vmem:[#allocation110_spill] sm:$0xff] }
 0x117   : > { %v1191_v24 = vadd.f32 %v1190_v42, %v8225_v2  ;;  %v8229_v28 = vunpack.c.l.bf16 %v4890_v40  ;;  %v8230_v21 = vunpack.c.h.bf16 %v4890_v40  ;;  %v8232_v46 = vunpack.c.l.bf16 %v8231_v35 }
 0x118   : > { %v1212_v60 = vadd.f32 %v1211_v29, %v8227_v14  ;;  %v1233_v47 = vadd.f32 %v1232_v1, %v8228_v45  ;;  %v8233_v10 = vunpack.c.h.bf16 %v8231_v35  ;;  %v8235_v42 = vunpack.c.l.bf16 %v8234_v6 }
 0x119   : > { %v1087_v27 = vadd.f32 %v1086_v63, %v8229_v28  ;;  %v1108_v3 = vadd.f32 %v1107_v36, %v8230_v21  ;;  %v1129_v22 = vadd.f32 %v1128_v8, %v8232_v46  ;;  %v8236_v29 = vunpack.c.h.bf16 %v8234_v6 }
 0x11a   : > { %v1150_v33 = vadd.f32 %v1149_v16, %v8233_v10  ;;  %v1171_v2 = vadd.f32 %v1170_v57, %v8235_v42  ;;  %v8238_v1 = vunpack.c.l.bf16 %v8237_v23  ;;  %v8239_v63 = vunpack.c.h.bf16 %v8237_v23  ;;  %v8246_v23 = vld [vmem:[#allocation114_spill] sm:$0xff] }
 0x11b   : > { %v1192_v14 = vadd.f32 %v1191_v24, %v8236_v29  ;;  %v8240_v36 = vunpack.c.l.bf16 %v4910_v34  ;;  %v8241_v8 = vunpack.c.h.bf16 %v4910_v34  ;;  %v8242_v16 = vunpack.c.l.bf16 %v4913_v9  ;;  %v8249_v34 = vld [vmem:[#allocation115_spill] sm:$0xff] }
 0x11c   : > { %v1213_v45 = vadd.f32 %v1212_v60, %v8238_v1  ;;  %v1234_v28 = vadd.f32 %v1233_v47, %v8239_v63  ;;  %v8243_v57 = vunpack.c.h.bf16 %v4913_v9  ;;  %v8244_v24 = vunpack.c.l.bf16 %v4920_v30  ;;  %v8252_v9 = vld [vmem:[#allocation116_spill] sm:$0xff] }
 0x11d   : > { %v1088_v21 = vadd.f32 %v1087_v27, %v8240_v36  ;;  %v1109_v46 = vadd.f32 %v1108_v3, %v8241_v8  ;;  %v1130_v10 = vadd.f32 %v1129_v22, %v8242_v16  ;;  %v8245_v60 = vunpack.c.h.bf16 %v4920_v30  ;;  %v8255_v30 = vld [vmem:[#allocation117_spill] sm:$0xff] }
 0x11e   : > { %v1151_v42 = vadd.f32 %v1150_v33, %v8243_v57  ;;  %v1172_v29 = vadd.f32 %v1171_v2, %v8244_v24  ;;  %v8247_v47 = vunpack.c.l.bf16 %v8246_v23  ;;  %v8248_v27 = vunpack.c.h.bf16 %v8246_v23  ;;  %v8258_v23 = vld [vmem:[#allocation118_spill] sm:$0xff] }
 0x11f   : > { %v1193_v1 = vadd.f32 %v1192_v14, %v8245_v60  ;;  %v8250_v3 = vunpack.c.l.bf16 %v8249_v34  ;;  %v8251_v22 = vunpack.c.h.bf16 %v8249_v34  ;;  %v8253_v33 = vunpack.c.l.bf16 %v8252_v9 }
 0x120   : > { %v1214_v63 = vadd.f32 %v1213_v45, %v8247_v47  ;;  %v1235_v36 = vadd.f32 %v1234_v28, %v8248_v27  ;;  %v8254_v2 = vunpack.c.h.bf16 %v8252_v9  ;;  %v8256_v14 = vunpack.c.l.bf16 %v8255_v30 }
 0x121   : > { %v1089_v8 = vadd.f32 %v1088_v21, %v8250_v3  ;;  %v1110_v16 = vadd.f32 %v1109_v46, %v8251_v22  ;;  %v1131_v57 = vadd.f32 %v1130_v10, %v8253_v33  ;;  %v8257_v45 = vunpack.c.h.bf16 %v8255_v30 }
 0x122   : > { %v1152_v24 = vadd.f32 %v1151_v42, %v8254_v2  ;;  %v1173_v60 = vadd.f32 %v1172_v29, %v8256_v14  ;;  %v8259_v28 = vunpack.c.l.bf16 %v8258_v23  ;;  %v8260_v21 = vunpack.c.h.bf16 %v8258_v23 }
 0x123   : > { %v1194_v47 = vadd.f32 %v1193_v1, %v8257_v45  ;;  %v1090_v34 = vrot.slane %v1089_v8, 4  ;;  %v1111_v46 = vrot.slane %v1110_v16, 4  ;;  %v1132_v22 = vrot.slane %v1131_v57, 4 }
 0x124   : > { %v1215_v27 = vadd.f32 %v1214_v63, %v8259_v28  ;;  %v1236_v3 = vadd.f32 %v1235_v36, %v8260_v21  ;;  %v1153_v6 = vrot.slane %v1152_v24, 4  ;;  %v1174_v10 = vrot.slane %v1173_v60, 4 }
 0x125   : > { %v1195_v33 = vrot.slane %v1194_v47, 4  ;;  %v1091_v2 = vadd.f32 %v1090_v34, %v1089_v8  ;;  %v1112_v35 = vadd.f32 %v1111_v46, %v1110_v16  ;;  %v1133_v29 = vadd.f32 %v1132_v22, %v1131_v57 }
 0x126   : > { %v1216_v9 = vrot.slane %v1215_v27, 4  ;;  %v1237_v42 = vrot.slane %v1236_v3, 4  ;;  %v1154_v14 = vadd.f32 %v1153_v6, %v1152_v24  ;;  %v1175_v30 = vadd.f32 %v1174_v10, %v1173_v60 }
 0x127   : > { %v1196_v1 = vadd.f32 %v1195_v33, %v1194_v47  ;;  %v1092_v63 = vrot.slane %v1091_v2, 2  ;;  %v1113_v28 = vrot.slane %v1112_v35, 2  ;;  %v1134_v23 = vrot.slane %v1133_v29, 2 }
 0x128   : > { %v1217_v45 = vadd.f32 %v1216_v9, %v1215_v27  ;;  %v1238_v40 = vadd.f32 %v1237_v42, %v1236_v3  ;;  %v1155_v36 = vrot.slane %v1154_v14, 2  ;;  %v1176_v21 = vrot.slane %v1175_v30, 2 }
 0x129   : > { %v1197_v4 = vrot.slane %v1196_v1, 2  ;;  %v1093_v59 = vadd.f32 %v1092_v63, %v1091_v2  ;;  %v1114_v51 = vadd.f32 %v1113_v28, %v1112_v35  ;;  %v1135_v53 = vadd.f32 %v1134_v23, %v1133_v29 }
 0x12a   : > { %v1218_v7 = vrot.slane %v1217_v45, 2  ;;  %v1239_v54 = vrot.slane %v1238_v40, 2  ;;  %v1156_v0 = vadd.f32 %v1155_v36, %v1154_v14  ;;  %v1177_v34 = vadd.f32 %v1176_v21, %v1175_v30 }
 0x12b   : > { %v1198_v8 = vadd.f32 %v1197_v4, %v1196_v1  ;;  %v1094_v57 = vrot.slane %v1093_v59, 1  ;;  %v1115_v24 = vrot.slane %v1114_v51, 1  ;;  %v1136_v9 = vrot.slane %v1135_v53, 1 }
 0x12c   : > { %v1219_v16 = vadd.f32 %v1218_v7, %v1217_v45  ;;  %v1240_v6 = vadd.f32 %v1239_v54, %v1238_v40  ;;  %v1157_v60 = vrot.slane %v1156_v0, 1  ;;  %v1178_v47 = vrot.slane %v1177_v34, 1 }
 0x12d   : > { %v1199_v27 = vrot.slane %v1198_v8, 1  ;;  %v1095_v22 = vadd.f32 %v1094_v57, %v1093_v59  ;;  %v1116_v10 = vadd.f32 %v1115_v24, %v1114_v51  ;;  %v1137_v33 = vadd.f32 %v1136_v9, %v1135_v53  ;;  %v905_v9 = vld [vmem:[#allocation2] sm:$0xff] }
 0x12e   : > { %v1220_v3 = vrot.slane %v1219_v16, 1  ;;  %v1241_v46 = vrot.slane %v1240_v6, 1  ;;  %v1158_v42 = vadd.f32 %v1157_v60, %v1156_v0  ;;  %v1179_v2 = vadd.f32 %v1178_v47, %v1177_v34  ;;  %v906_v60 = vld [vmem:[#allocation2 + $0x8] sm:$0xff] }
 0x12f   : > { %v1200_v35 = vadd.f32 %v1199_v27, %v1198_v8  ;;  %v1264_v30 = vlaneseq  ;;  %v1259_v40 = vcombine.low %v5217_v11, %v5219_v5  ;;  %v1260_v54 = vcombine.low %v5221_v15, %v5223_v17 }
 0x130   : > { %v1221_v23 = vadd.f32 %v1220_v3, %v1219_v16  ;;  %v1242_v29 = vadd.f32 %v1241_v46, %v1240_v6  ;;  %v3980_v7 = vmov 1983009808   ;;  %v1276_v14 = vcombine.low %v5225_v48, %v5227_v39 }
 0x131   : > { %v1262_v4 = vunpack.c.l.s4 %v3980_v7  ;;  %v5495_v59 = vshrl.u32 %v1264_v30, 7  ;;  %v1277_v51 = vcombine.low %v5229_v41, %v5231_v52  ;;  %v1293_v53 = vcombine.low %v1095_v22, %v1116_v10  ;;  %v8265_v30 = vld [vmem:[#allocation13_spill] sm:$0xff]  ;;  %v8288_v7 = vld [vmem:[#allocation39_spill] sm:$0xff] }
 0x132   : > { %v1294_v0 = vcombine.low %v1137_v33, %v1158_v42  ;;  %v1310_v45 = vcombine.low %v1179_v2, %v1200_v35  ;;  %v1311_v63 = vcombine.low %v1221_v23, %v1242_v29  ;;  %v8261_v2 = vld [vmem:[#allocation11_spill] sm:$0xff]  ;;  %v8263_v23 = vld [vmem:[#allocation12_spill] sm:$0xff]  ;;  %3775 = vmul.bf16.f32.vacc2 %v8265_v30, %v8265_v30 }
 0x133   : > { %v1263_v1 = vunpack.c.0.s8 %v1262_v4  ;;  %3711 = vmul.bf16.f32.vacc0 %v8261_v2, %v8261_v2  ;;  %v8262_v35 = vld [vmem:[#allocation15_spill] sm:$0xff]  ;;  %3743 = vmul.bf16.f32.vacc1 %v8263_v23, %v8263_v23  ;;  %v8264_v29 = vld [vmem:[#allocation16_spill] sm:$0xff]  ;;  %v8289_v4 = vld [vmem:[#allocation38_spill] sm:$0xff] }
 0x134   : > { %3712 = vmac.bf16.f32.vacc0 %v8262_v35, %v8262_v35  ;;  %3744 = vmac.bf16.f32.vacc1 %v8264_v29, %v8264_v29 }
 0x135   : > { %v5500_v11 = vsub.s32 %v1263_v1, %v5495_v59  ;;  %3713 = vmac.bf16.f32.vacc0 %v4350_v13, %v4350_v13  ;;  %3745 = vmac.bf16.f32.vacc1 %v4357_v18, %v4357_v18  ;;  %v8269_v13 = vld [vmem:[#allocation18_spill] sm:$0xff]  ;;  %v8270_v18 = vld [vmem:[#allocation20_spill] sm:$0xff] }
 0x136   : > { %3714 = vmac.bf16.f32.vacc0 %v4370_v25, %v4370_v25  ;;  %3746 = vmac.bf16.f32.vacc1 %v4373_v26, %v4373_v26  ;;  %v8273_v25 = vld [vmem:[#allocation22_spill] sm:$0xff]  ;;  %v8274_v26 = vld [vmem:[#allocation24_spill] sm:$0xff] }
 0x137   : > { %v1267_v5 = vrot.slane %v1259_v40, %v5500_v11  ;;  %v1274_v15 = vrot.slane %v1260_v54, %v5500_v11  ;;  %v1284_v17 = vrot.slane %v1276_v14, %v5500_v11  ;;  %v1291_v48 = vrot.slane %v1277_v51, %v5500_v11  ;;  %v8266_v40 = vld [vmem:[#allocation17_spill] sm:$0xff]  ;;  %v8267_v54 = vld [vmem:[#allocation14_spill] sm:$0xff]  ;;  %v8290_v14 = vld [vmem:[#allocation40_spill] sm:$0xff] }
 0x138   : > { %v1301_v39 = vrot.slane %v1293_v53, %v5500_v11  ;;  %v1308_v41 = vrot.slane %v1294_v0, %v5500_v11  ;;  %v1318_v52 = vrot.slane %v1310_v45, %v5500_v11  ;;  %v1325_v28 = vrot.slane %v1311_v63, %v5500_v11  ;;  %v8291_v51 = vld [vmem:[#allocation41_spill] sm:$0xff]  ;;  %v8292_v53 = vld [vmem:[#allocation43_spill] sm:$0xff]  ;;  %v8293_v0 = vld [vmem:[#allocation42_spill] sm:$0xff] }
 0x139   : > { %v1275_v36 = vcombine.low %v1267_v5, %v1274_v15  ;;  %v1292_v21 = vcombine.low %v1284_v17, %v1291_v48  ;;  %3776 = vmac.bf16.f32.vacc2 %v8266_v40, %v8266_v40  ;;  %3807 = vmul.bf16.f32.vacc3 %v8267_v54, %v8267_v54  ;;  %v8294_v1 = vld [vmem:[#allocation44_spill] sm:$0xff]  ;;  %v8295_v45 = vld [vmem:[#allocation45_spill] sm:$0xff]  ;;  %v8296_v63 = vld [vmem:[#allocation47_spill] sm:$0xff] }
 0x13a   : > { %v1309_v34 = vcombine.low %v1301_v39, %v1308_v41  ;;  %v1326_v8 = vcombine.low %v1318_v52, %v1325_v28  ;;  %3808 = vmac.bf16.f32.vacc3 %v4347_v12, %v4347_v12  ;;  %3777 = vmac.bf16.f32.vacc2 %v4360_v19, %v4360_v19  ;;  %v8268_v12 = vld [vmem:[#allocation19_spill] sm:$0xff]  ;;  %v8271_v19 = vld [vmem:[#allocation21_spill] sm:$0xff]  ;;  %v8297_v5 = vld [vmem:[#allocation46_spill] sm:$0xff] }
 0x13b   : > { %3809 = vmac.bf16.f32.vacc3 %v4363_v20, %v4363_v20  ;;  %3778 = vmac.bf16.f32.vacc2 %v4380_v31, %v4380_v31  ;;  %3715 = vmac.bf16.f32.vacc0 %v4390_v37, %v4390_v37  ;;  %3747 = vmac.bf16.f32.vacc1 %v4393_v38, %v4393_v38  ;;  %v8272_v20 = vld [vmem:[#allocation23_spill] sm:$0xff]  ;;  %v8275_v31 = vld [vmem:[#allocation25_spill] sm:$0xff]  ;;  %v8277_v37 = vld [vmem:[#allocation26_spill] sm:$0xff] }
 0x13c   : > { %v1331_v16 = vrot.slane %v1309_v34, 7  ;;  %v1342_v6 = vrot.slane %v1326_v8, 7  ;;  %3810 = vmac.bf16.f32.vacc3 %v4383_v32, %v4383_v32  ;;  %3779 = vmac.bf16.f32.vacc2 %v4400_v43, %v4400_v43  ;;  %v8276_v32 = vld [vmem:[#allocation27_spill] sm:$0xff]  ;;  %v8278_v38 = vld [vmem:[#allocation28_spill] sm:$0xff]  ;;  %v8279_v43 = vld [vmem:[#allocation29_spill] sm:$0xff] }
 0x13d   : > { %3716 = vmac.bf16.f32.vacc0 %v4410_v49, %v4410_v49  ;;  %3811 = vmac.bf16.f32.vacc3 %v4403_v44, %v4403_v44  ;;  %3748 = vmac.bf16.f32.vacc1 %v4413_v50, %v4413_v50  ;;  %3780 = vmac.bf16.f32.vacc2 %v4420_v55, %v4420_v55  ;;  %v8280_v44 = vld [vmem:[#allocation31_spill] sm:$0xff]  ;;  %v8281_v49 = vld [vmem:[#allocation30_spill] sm:$0xff]  ;;  %v8282_v50 = vld [vmem:[#allocation32_spill] sm:$0xff] }
 0x13e   : > { %v1333_v57 = vsel %vm1332_vm0, %v1331_v16, %v1275_v36  ;;  %v1343_v24 = vsel %vm1332_vm0, %v1342_v6, %v1292_v21  ;;  %3717 = vmac.bf16.f32.vacc0 %v4430_v61, %v4430_v61  ;;  %3812 = vmac.bf16.f32.vacc3 %v4423_v56, %v4423_v56  ;;  %v8283_v55 = vld [vmem:[#allocation33_spill] sm:$0xff]  ;;  %v8284_v56 = vld [vmem:[#allocation35_spill] sm:$0xff]  ;;  %v8286_v61 = vld [vmem:[#allocation36_spill] sm:$0xff] }
 0x13f   : > { %v1335_v47 = vsel %vm1334_vm1, %v1331_v16, %v1333_v57  ;;  %v1344_v27 = vsel %vm1334_vm1, %v1342_v6, %v1343_v24  ;;  %3749 = vmac.bf16.f32.vacc1 %v4433_v62, %v4433_v62  ;;  %3781 = vmac.bf16.f32.vacc2 %v4440_v58, %v4440_v58  ;;  %v8285_v58 = vld [vmem:[#allocation34_spill] sm:$0xff]  ;;  %v8287_v62 = vld [vmem:[#allocation37_spill] sm:$0xff]  ;;  %v8298_v15 = vld [vmem:[#allocation48_spill] sm:$0xff] }
 0x140   : > { %v1337_v3 = vsel %vm1336_vm2, %v1331_v16, %v1335_v47  ;;  %v1345_v46 = vsel %vm1336_vm2, %v1342_v6, %v1344_v27  ;;  %3718 = vmac.bf16.f32.vacc0 %v8268_v12, %v8268_v12  ;;  %3813 = vmac.bf16.f32.vacc3 %v8269_v13, %v8269_v13  ;;  %v8299_v17 = vld [vmem:[#allocation49_spill] sm:$0xff]  ;;  %v8300_v48 = vld [vmem:[#allocation51_spill] sm:$0xff]  ;;  %v8301_v57 = vld [vmem:[#allocation50_spill] sm:$0xff] }
 0x141   : > { %v1339_v22 = vsel %vm1338_vm3, %v1331_v16, %v1337_v3  ;;  %v1346_v10 = vsel %vm1338_vm3, %v1342_v6, %v1345_v46  ;;  %3750 = vmac.bf16.f32.vacc1 %v8270_v18, %v8270_v18  ;;  %3782 = vmac.bf16.f32.vacc2 %v8271_v19, %v8271_v19  ;;  %v8302_v24 = vld [vmem:[#allocation52_spill] sm:$0xff]  ;;  %v8304_v40 = vld [vmem:[#allocation54_spill] sm:$0xff] }
 0x142   : > { %v1349_v33 = vadd.f32 %v1339_v22, %v905_v9  ;;  %v1350_v42 = vadd.f32 %v1346_v10, %v906_v60  ;;  %3719 = vmac.bf16.f32.vacc0 %v8272_v20, %v8272_v20  ;;  %3814 = vmac.bf16.f32.vacc3 %v8273_v25, %v8273_v25  ;;  %v8303_v22 = vld [vmem:[#allocation53_spill] sm:$0xff] }
 0x143   : > { %3751 = vmac.bf16.f32.vacc1 %v8274_v26, %v8274_v26  ;;  %3783 = vmac.bf16.f32.vacc2 %v8275_v31, %v8275_v31  ;;  %3720 = vmac.bf16.f32.vacc0 %v8276_v32, %v8276_v32  ;;  %3815 = vmac.bf16.f32.vacc3 %v8277_v37, %v8277_v37 }
 0x144   : > { %1351 = vst [vmem:[#allocation2] sm:$0xff] %v1349_v33  ;;  %1352 = vst [vmem:[#allocation2 + $0x8] sm:$0xff] %v1350_v42  ;;  %3752 = vmac.bf16.f32.vacc1 %v8278_v38, %v8278_v38  ;;  %3784 = vmac.bf16.f32.vacc2 %v8279_v43, %v8279_v43  ;;  %3721 = vmac.bf16.f32.vacc0 %v8280_v44, %v8280_v44  ;;  %v3981_v36 = vmov 1935823168  }
 0x145   : > { %3816 = vmac.bf16.f32.vacc3 %v8281_v49, %v8281_v49  ;;  %3753 = vmac.bf16.f32.vacc1 %v8282_v50, %v8282_v50  ;;  %3785 = vmac.bf16.f32.vacc2 %v8283_v55, %v8283_v55  ;;  %3722 = vmac.bf16.f32.vacc0 %v8284_v56, %v8284_v56 }
 0x146   : > { %3817 = vmac.bf16.f32.vacc3 %v8285_v58, %v8285_v58  ;;  %3754 = vmac.bf16.f32.vacc1 %v8286_v61, %v8286_v61  ;;  %3786 = vmac.bf16.f32.vacc2 %v8287_v62, %v8287_v62  ;;  %3723 = vmac.bf16.f32.vacc0 %v8288_v7, %v8288_v7 }
 0x147   : > { %3818 = vmac.bf16.f32.vacc3 %v8289_v4, %v8289_v4  ;;  %3755 = vmac.bf16.f32.vacc1 %v8290_v14, %v8290_v14  ;;  %3787 = vmac.bf16.f32.vacc2 %v8291_v51, %v8291_v51  ;;  %3724 = vmac.bf16.f32.vacc0 %v8292_v53, %v8292_v53 }
 0x148   : > { %3819 = vmac.bf16.f32.vacc3 %v8293_v0, %v8293_v0  ;;  %3756 = vmac.bf16.f32.vacc1 %v8294_v1, %v8294_v1  ;;  %3788 = vmac.bf16.f32.vacc2 %v8295_v45, %v8295_v45  ;;  %3725 = vmac.bf16.f32.vacc0 %v8296_v63, %v8296_v63 }
 0x149   : > { %3820 = vmac.bf16.f32.vacc3 %v8297_v5, %v8297_v5  ;;  %3757 = vmac.bf16.f32.vacc1 %v8298_v15, %v8298_v15  ;;  %3789 = vmac.bf16.f32.vacc2 %v8299_v17, %v8299_v17  ;;  %3726 = vmac.bf16.f32.vacc0 %v8300_v48, %v8300_v48 }
 0x14a   : > { %v3731_v21 = vunpack.c.l.s4 %v3981_v36  ;;  %3821 = vmac.bf16.f32.vacc3 %v8301_v57, %v8301_v57  ;;  %3758 = vmac.bf16.f32.vacc1 %v8302_v24, %v8302_v24  ;;  %3790 = vmac.bf16.f32.vacc2 %v8303_v22, %v8303_v22 }
 0x14b   : > { %v3727_v39 = vmovacc.add.low.vacc0  ;;  %3822 = vmac.bf16.f32.vacc3 %v8304_v40, %v8304_v40  ;;  %v8313_v40 = vld [vmem:[#allocation62_spill] sm:$0xff] }
 0x14c   : > { %v3728_v41 = vmovacc.add.high.vacc0  ;;  %v3732_v34 = vunpack.c.0.s8 %v3731_v21  ;;  %v3759_v9 = vmovacc.add.low.vacc1  ;;  %v3791_v10 = vmovacc.add.low.vacc2 }
 0x14d   : > { %v3760_v60 = vmovacc.add.high.vacc1  ;;  %v3792_v33 = vmovacc.add.high.vacc2  ;;  %v3823_v54 = vmovacc.add.low.vacc3 }
 0x14e   : > { %v3729_v52 = vcombine.low %v3727_v39, %v3728_v41  ;;  %v3730_v28 = vcombine.high %v3727_v39, %v3728_v41  ;;  %v5639_v8 = vsub.s32 %v3732_v34, %v5495_v59  ;;  %v3824_v12 = vmovacc.add.high.vacc3 }
 0x14f   : > { %v3761_v47 = vcombine.low %v3759_v9, %v3760_v60  ;;  %v3762_v27 = vcombine.high %v3759_v9, %v3760_v60  ;;  %v3793_v42 = vcombine.low %v3791_v10, %v3792_v33  ;;  %v3794_v2 = vcombine.high %v3791_v10, %v3792_v33  ;;  %v8305_v10 = vld [vmem:[#allocation55_spill] sm:$0xff] }
 0x150   : > { %v3736_v16 = vrot.slane %v3729_v52, %v5639_v8  ;;  %v3742_v6 = vrot.slane %v3730_v28, %v5639_v8  ;;  %v3825_v13 = vcombine.low %v3823_v54, %v3824_v12  ;;  %v3826_v18 = vcombine.high %v3823_v54, %v3824_v12  ;;  %v8306_v33 = vld [vmem:[#allocation59_spill] sm:$0xff]  ;;  %v8314_v54 = vld [vmem:[#allocation64_spill] sm:$0xff]  ;;  %v8315_v12 = vld [vmem:[#allocation65_spill] sm:$0xff] }
 0x151   : > { %v3768_v3 = vrot.slane %v3761_v47, %v5639_v8  ;;  %v3774_v46 = vrot.slane %v3762_v27, %v5639_v8  ;;  %v3800_v35 = vrot.slane %v3793_v42, %v5639_v8  ;;  %v3806_v23 = vrot.slane %v3794_v2, %v5639_v8  ;;  %v8307_v42 = vld [vmem:[#allocation56_spill] sm:$0xff] }
 0x152   : > { %v1626_v29 = vrot.slane %v3736_v16, 4  ;;  %v1647_v30 = vrot.slane %v3742_v6, 4  ;;  %v3832_v19 = vrot.slane %v3825_v13, %v5639_v8  ;;  %v3838_v20 = vrot.slane %v3826_v18, %v5639_v8  ;;  %v8308_v2 = vld [vmem:[#allocation60_spill] sm:$0xff]  ;;  %v8316_v13 = vld [vmem:[#allocation67_spill] sm:$0xff]  ;;  %v8317_v18 = vld [vmem:[#allocation66_spill] sm:$0xff] }
 0x153   : > { %v1668_v25 = vrot.slane %v3768_v3, 4  ;;  %v1689_v26 = vrot.slane %v3774_v46, 4  ;;  %v1710_v31 = vrot.slane %v3800_v35, 4  ;;  %v1731_v32 = vrot.slane %v3806_v23, 4 }
 0x154   : > { %v1627_v37 = vadd.f32 %v3736_v16, %v1626_v29  ;;  %v1648_v38 = vadd.f32 %v3742_v6, %v1647_v30  ;;  %v1752_v43 = vrot.slane %v3832_v19, 4  ;;  %v1773_v44 = vrot.slane %v3838_v20, 4  ;;  %v8311_v29 = vld [vmem:[#allocation63_spill] sm:$0xff]  ;;  %v8312_v30 = vld [vmem:[#allocation58_spill] sm:$0xff] }
 0x155   : > { %v1669_v49 = vadd.f32 %v3768_v3, %v1668_v25  ;;  %v1690_v50 = vadd.f32 %v3774_v46, %v1689_v26  ;;  %v1711_v55 = vadd.f32 %v3800_v35, %v1710_v31  ;;  %v1732_v56 = vadd.f32 %v3806_v23, %v1731_v32  ;;  %v8309_v35 = vld [vmem:[#allocation57_spill] sm:$0xff]  ;;  %v8320_v25 = vld [vmem:[#allocation71_spill] sm:$0xff]  ;;  %v8321_v26 = vld [vmem:[#allocation70_spill] sm:$0xff] }
 0x156   : > { %v1628_v58 = vrot.slane %v1627_v37, 2  ;;  %v1649_v61 = vrot.slane %v1648_v38, 2  ;;  %v1753_v62 = vadd.f32 %v3832_v19, %v1752_v43  ;;  %v1774_v7 = vadd.f32 %v3838_v20, %v1773_v44  ;;  %v8310_v23 = vld [vmem:[#allocation61_spill] sm:$0xff]  ;;  %v8318_v19 = vld [vmem:[#allocation68_spill] sm:$0xff] }
 0x157   : > { %v1670_v4 = vrot.slane %v1669_v49, 2  ;;  %v1691_v14 = vrot.slane %v1690_v50, 2  ;;  %v1712_v51 = vrot.slane %v1711_v55, 2  ;;  %v1733_v53 = vrot.slane %v1732_v56, 2  ;;  %v8319_v20 = vld [vmem:[#allocation69_spill] sm:$0xff]  ;;  %v8322_v31 = vld [vmem:[#allocation72_spill] sm:$0xff] }
 0x158   : > { %v1629_v0 = vadd.f32 %v1628_v58, %v1627_v37  ;;  %v1650_v1 = vadd.f32 %v1649_v61, %v1648_v38  ;;  %v1754_v45 = vrot.slane %v1753_v62, 2  ;;  %v1775_v63 = vrot.slane %v1774_v7, 2  ;;  %v8323_v32 = vld [vmem:[#allocation73_spill] sm:$0xff]  ;;  %v8324_v37 = vld [vmem:[#allocation75_spill] sm:$0xff]  ;;  %v8325_v38 = vld [vmem:[#allocation74_spill] sm:$0xff] }
 0x159   : > { %v1671_v5 = vadd.f32 %v1670_v4, %v1669_v49  ;;  %v1692_v15 = vadd.f32 %v1691_v14, %v1690_v50  ;;  %v1713_v17 = vadd.f32 %v1712_v51, %v1711_v55  ;;  %v1734_v48 = vadd.f32 %v1733_v53, %v1732_v56  ;;  %v8326_v43 = vld [vmem:[#allocation76_spill] sm:$0xff]  ;;  %v8327_v44 = vld [vmem:[#allocation77_spill] sm:$0xff]  ;;  %v8328_v49 = vld [vmem:[#allocation79_spill] sm:$0xff] }
 0x15a   : > { %v1630_v39 = vrot.slane %v1629_v0, 1  ;;  %v1651_v41 = vrot.slane %v1650_v1, 1  ;;  %v1755_v52 = vadd.f32 %v1754_v45, %v1753_v62  ;;  %v1776_v28 = vadd.f32 %v1775_v63, %v1774_v7  ;;  %v8329_v50 = vld [vmem:[#allocation78_spill] sm:$0xff]  ;;  %v8330_v55 = vld [vmem:[#allocation80_spill] sm:$0xff]  ;;  %v8331_v56 = vld [vmem:[#allocation81_spill] sm:$0xff] }
 0x15b   : > { %v1672_v36 = vrot.slane %v1671_v5, 1  ;;  %v1693_v21 = vrot.slane %v1692_v15, 1  ;;  %v1714_v34 = vrot.slane %v1713_v17, 1  ;;  %v1735_v16 = vrot.slane %v1734_v48, 1  ;;  %v8332_v58 = vld [vmem:[#allocation83_spill] sm:$0xff]  ;;  %v8333_v61 = vld [vmem:[#allocation82_spill] sm:$0xff] }
 0x15c   : > { %v5657_v6 = vadd.f32 %v1630_v39, %v1629_v0  ;;  %v5659_v57 = vadd.f32 %v1651_v41, %v1650_v1  ;;  %v1756_v24 = vrot.slane %v1755_v52, 1  ;;  %v1777_v9 = vrot.slane %v1776_v28, 1  ;;  %v8334_v62 = vld [vmem:[#allocation84_spill] sm:$0xff]  ;;  %v8335_v7 = vld [vmem:[#allocation85_spill] sm:$0xff]  ;;  %v8336_v4 = vld [vmem:[#allocation87_spill] sm:$0xff] }
 0x15d   : > { %v5661_v60 = vadd.f32 %v1672_v36, %v1671_v5  ;;  %v5663_v47 = vadd.f32 %v1693_v21, %v1692_v15  ;;  %v5665_v27 = vadd.f32 %v1714_v34, %v1713_v17  ;;  %v5667_v3 = vadd.f32 %v1735_v16, %v1734_v48  ;;  %v8337_v14 = vld [vmem:[#allocation86_spill] sm:$0xff]  ;;  %v8338_v51 = vld [vmem:[#allocation88_spill] sm:$0xff]  ;;  %v8339_v53 = vld [vmem:[#allocation89_spill] sm:$0xff] }
 0x15e   : > { %v5669_v46 = vadd.f32 %v1756_v24, %v1755_v52  ;;  %v5671_v22 = vadd.f32 %v1777_v9, %v1776_v28  ;;  %3839 = vmul.bf16.f32.vacc0 %v8305_v10, %v8305_v10  ;;  %3871 = vmul.bf16.f32.vacc1 %v8307_v42, %v8307_v42  ;;  %v8340_v0 = vld [vmem:[#allocation91_spill] sm:$0xff]  ;;  %v8341_v1 = vld [vmem:[#allocation90_spill] sm:$0xff]  ;;  %v8342_v45 = vld [vmem:[#allocation92_spill] sm:$0xff] }
 0x15f   : > { %3840 = vmac.bf16.f32.vacc0 %v8306_v33, %v8306_v33  ;;  %3872 = vmac.bf16.f32.vacc1 %v8308_v2, %v8308_v2  ;;  %3903 = vmul.bf16.f32.vacc2 %v8309_v35, %v8309_v35  ;;  %3935 = vmul.bf16.f32.vacc3 %v8312_v30, %v8312_v30  ;;  %v8343_v63 = vld [vmem:[#allocation93_spill] sm:$0xff]  ;;  %v8344_v5 = vld [vmem:[#allocation95_spill] sm:$0xff]  ;;  %v8345_v15 = vld [vmem:[#allocation94_spill] sm:$0xff] }
 0x160   : > { %3904 = vmac.bf16.f32.vacc2 %v8310_v23, %v8310_v23  ;;  %3841 = vmac.bf16.f32.vacc0 %v8311_v29, %v8311_v29  ;;  %3936 = vmac.bf16.f32.vacc3 %v8313_v40, %v8313_v40  ;;  %3873 = vmac.bf16.f32.vacc1 %v8314_v54, %v8314_v54  ;;  %v8346_v17 = vld [vmem:[#allocation96_spill] sm:$0xff]  ;;  %v8347_v48 = vld [vmem:[#allocation97_spill] sm:$0xff]  ;;  %v8348_v39 = vld [vmem:[#allocation99_spill] sm:$0xff] }
 0x161   : > { %3905 = vmac.bf16.f32.vacc2 %v8315_v12, %v8315_v12  ;;  %3842 = vmac.bf16.f32.vacc0 %v8316_v13, %v8316_v13  ;;  %3937 = vmac.bf16.f32.vacc3 %v8317_v18, %v8317_v18  ;;  %3874 = vmac.bf16.f32.vacc1 %v8318_v19, %v8318_v19  ;;  %v8349_v41 = vld [vmem:[#allocation98_spill] sm:$0xff]  ;;  %v8350_v52 = vld [vmem:[#allocation100_spill] sm:$0xff]  ;;  %v8351_v28 = vld [vmem:[#allocation101_spill] sm:$0xff] }
 0x162   : > { %3906 = vmac.bf16.f32.vacc2 %v8319_v20, %v8319_v20  ;;  %3843 = vmac.bf16.f32.vacc0 %v8320_v25, %v8320_v25  ;;  %3938 = vmac.bf16.f32.vacc3 %v8321_v26, %v8321_v26  ;;  %3875 = vmac.bf16.f32.vacc1 %v8322_v31, %v8322_v31  ;;  %v8352_v36 = vld [vmem:[#allocation103_spill] sm:$0xff]  ;;  %v8353_v21 = vld [vmem:[#allocation102_spill] sm:$0xff]  ;;  %v8354_v34 = vld [vmem:[#allocation104_spill] sm:$0xff] }
 0x163   : > { %3907 = vmac.bf16.f32.vacc2 %v8323_v32, %v8323_v32  ;;  %3844 = vmac.bf16.f32.vacc0 %v8324_v37, %v8324_v37  ;;  %3939 = vmac.bf16.f32.vacc3 %v8325_v38, %v8325_v38  ;;  %3876 = vmac.bf16.f32.vacc1 %v8326_v43, %v8326_v43  ;;  %v8355_v16 = vld [vmem:[#allocation105_spill] sm:$0xff]  ;;  %v8356_v24 = vld [vmem:[#allocation107_spill] sm:$0xff]  ;;  %v8357_v9 = vld [vmem:[#allocation106_spill] sm:$0xff] }
 0x164   : > { %3908 = vmac.bf16.f32.vacc2 %v8327_v44, %v8327_v44  ;;  %3845 = vmac.bf16.f32.vacc0 %v8328_v49, %v8328_v49  ;;  %3940 = vmac.bf16.f32.vacc3 %v8329_v50, %v8329_v50  ;;  %3877 = vmac.bf16.f32.vacc1 %v8330_v55, %v8330_v55  ;;  %v8358_v10 = vld [vmem:[#allocation108_spill] sm:$0xff]  ;;  %v8359_v33 = vld [vmem:[#allocation109_spill] sm:$0xff]  ;;  %v8360_v42 = vld [vmem:[#allocation111_spill] sm:$0xff] }
 0x165   : > { %3909 = vmac.bf16.f32.vacc2 %v8331_v56, %v8331_v56  ;;  %3846 = vmac.bf16.f32.vacc0 %v8332_v58, %v8332_v58  ;;  %3941 = vmac.bf16.f32.vacc3 %v8333_v61, %v8333_v61  ;;  %3878 = vmac.bf16.f32.vacc1 %v8334_v62, %v8334_v62  ;;  %v8361_v2 = vld [vmem:[#allocation110_spill] sm:$0xff]  ;;  %v8362_v35 = vld [vmem:[#allocation112_spill] sm:$0xff]  ;;  %v8363_v23 = vld [vmem:[#allocation113_spill] sm:$0xff] }
 0x166   : > { %3910 = vmac.bf16.f32.vacc2 %v8335_v7, %v8335_v7  ;;  %3847 = vmac.bf16.f32.vacc0 %v8336_v4, %v8336_v4  ;;  %3942 = vmac.bf16.f32.vacc3 %v8337_v14, %v8337_v14  ;;  %3879 = vmac.bf16.f32.vacc1 %v8338_v51, %v8338_v51  ;;  %v8364_v29 = vld [vmem:[#allocation115_spill] sm:$0xff]  ;;  %v8365_v19 = vld [vmem:[#allocation114_spill] sm:$0xff]  ;;  %v8366_v20 = vld [vmem:[#allocation116_spill] sm:$0xff] }
 0x167   : > { %3911 = vmac.bf16.f32.vacc2 %v8339_v53, %v8339_v53  ;;  %3848 = vmac.bf16.f32.vacc0 %v8340_v0, %v8340_v0  ;;  %3943 = vmac.bf16.f32.vacc3 %v8341_v1, %v8341_v1  ;;  %3880 = vmac.bf16.f32.vacc1 %v8342_v45, %v8342_v45  ;;  %v8367_v43 = vld [vmem:[#allocation117_spill] sm:$0xff]  ;;  %v8368_v7 = vld [vmem:[#allocation118_spill] sm:$0xff] }
 0x168   : > { %3912 = vmac.bf16.f32.vacc2 %v8343_v63, %v8343_v63  ;;  %3849 = vmac.bf16.f32.vacc0 %v8344_v5, %v8344_v5  ;;  %3944 = vmac.bf16.f32.vacc3 %v8345_v15, %v8345_v15  ;;  %3881 = vmac.bf16.f32.vacc1 %v8346_v17, %v8346_v17 }
 0x169   : > { %3913 = vmac.bf16.f32.vacc2 %v8347_v48, %v8347_v48  ;;  %3850 = vmac.bf16.f32.vacc0 %v8348_v39, %v8348_v39  ;;  %3945 = vmac.bf16.f32.vacc3 %v8349_v41, %v8349_v41  ;;  %3882 = vmac.bf16.f32.vacc1 %v8350_v52, %v8350_v52 }
 0x16a   : > { %3914 = vmac.bf16.f32.vacc2 %v8351_v28, %v8351_v28  ;;  %3851 = vmac.bf16.f32.vacc0 %v8352_v36, %v8352_v36  ;;  %3946 = vmac.bf16.f32.vacc3 %v8353_v21, %v8353_v21  ;;  %3883 = vmac.bf16.f32.vacc1 %v8354_v34, %v8354_v34 }
 0x16b   : > { %3915 = vmac.bf16.f32.vacc2 %v8355_v16, %v8355_v16  ;;  %3852 = vmac.bf16.f32.vacc0 %v8356_v24, %v8356_v24  ;;  %3947 = vmac.bf16.f32.vacc3 %v8357_v9, %v8357_v9  ;;  %3884 = vmac.bf16.f32.vacc1 %v8358_v10, %v8358_v10 }
 0x16c   : > { %3916 = vmac.bf16.f32.vacc2 %v8359_v33, %v8359_v33  ;;  %3853 = vmac.bf16.f32.vacc0 %v8360_v42, %v8360_v42  ;;  %3948 = vmac.bf16.f32.vacc3 %v8361_v2, %v8361_v2  ;;  %3885 = vmac.bf16.f32.vacc1 %v8362_v35, %v8362_v35 }
 0x16d   : > { %3917 = vmac.bf16.f32.vacc2 %v8363_v23, %v8363_v23  ;;  %3854 = vmac.bf16.f32.vacc0 %v8364_v29, %v8364_v29  ;;  %3949 = vmac.bf16.f32.vacc3 %v8365_v19, %v8365_v19  ;;  %3886 = vmac.bf16.f32.vacc1 %v8366_v20, %v8366_v20 }
 0x16e   : > { %3918 = vmac.bf16.f32.vacc2 %v8367_v43, %v8367_v43  ;;  %3950 = vmac.bf16.f32.vacc3 %v8368_v7, %v8368_v7  ;;  %v1964_v7 = vcombine.low %v5661_v60, %v5663_v47 }
 0x16f   : > { %v3855_v30 = vmovacc.add.low.vacc0  ;;  %v3887_v25 = vmovacc.add.low.vacc1 }
 0x170   : > { %v3856_v40 = vmovacc.add.high.vacc0  ;;  %v3888_v26 = vmovacc.add.high.vacc1  ;;  %v3919_v44 = vmovacc.add.low.vacc2  ;;  %v3951_v4 = vmovacc.add.low.vacc3 }
 0x171   : > { %v3920_v49 = vmovacc.add.high.vacc2  ;;  %v3952_v14 = vmovacc.add.high.vacc3 }
 0x172   : > { %v3857_v54 = vcombine.low %v3855_v30, %v3856_v40  ;;  %v3858_v12 = vcombine.high %v3855_v30, %v3856_v40  ;;  %v3889_v31 = vcombine.low %v3887_v25, %v3888_v26  ;;  %v3890_v32 = vcombine.high %v3887_v25, %v3888_v26 }
 0x173   : > { %v3921_v50 = vcombine.low %v3919_v44, %v3920_v49  ;;  %v3922_v55 = vcombine.high %v3919_v44, %v3920_v49  ;;  %v3953_v51 = vcombine.low %v3951_v4, %v3952_v14  ;;  %v3954_v53 = vcombine.high %v3951_v4, %v3952_v14 }
 0x174   : > { %v3864_v13 = vrot.slane %v3857_v54, %v5639_v8  ;;  %v3870_v18 = vrot.slane %v3858_v12, %v5639_v8  ;;  %v3896_v37 = vrot.slane %v3889_v31, %v5639_v8  ;;  %v3902_v38 = vrot.slane %v3890_v32, %v5639_v8 }
 0x175   : > { %v3928_v56 = vrot.slane %v3921_v50, %v5639_v8  ;;  %v3934_v58 = vrot.slane %v3922_v55, %v5639_v8  ;;  %v3960_v0 = vrot.slane %v3953_v51, %v5639_v8  ;;  %v3966_v1 = vrot.slane %v3954_v53, %v5639_v8 }
 0x176   : > { %v1794_v61 = vrot.slane %v3864_v13, 4  ;;  %v1815_v62 = vrot.slane %v3870_v18, 4  ;;  %v1836_v45 = vrot.slane %v3896_v37, 4  ;;  %v1857_v63 = vrot.slane %v3902_v38, 4 }
 0x177   : > { %v1878_v5 = vrot.slane %v3928_v56, 4  ;;  %v1899_v15 = vrot.slane %v3934_v58, 4  ;;  %v1920_v39 = vrot.slane %v3960_v0, 4  ;;  %v1941_v41 = vrot.slane %v3966_v1, 4 }
 0x178   : > { %v1795_v17 = vadd.f32 %v3864_v13, %v1794_v61  ;;  %v1816_v48 = vadd.f32 %v3870_v18, %v1815_v62  ;;  %v1837_v52 = vadd.f32 %v3896_v37, %v1836_v45  ;;  %v1858_v28 = vadd.f32 %v3902_v38, %v1857_v63 }
 0x179   : > { %v1879_v36 = vadd.f32 %v3928_v56, %v1878_v5  ;;  %v1900_v21 = vadd.f32 %v3934_v58, %v1899_v15  ;;  %v1921_v24 = vadd.f32 %v3960_v0, %v1920_v39  ;;  %v1942_v9 = vadd.f32 %v3966_v1, %v1941_v41  ;;  %v1353_v41 = vld [vmem:[#allocation3 + $0x8] sm:$0xff] }
 0x17a   : > { %v1796_v34 = vrot.slane %v1795_v17, 2  ;;  %v1817_v16 = vrot.slane %v1816_v48, 2  ;;  %v1838_v10 = vrot.slane %v1837_v52, 2  ;;  %v1859_v33 = vrot.slane %v1858_v28, 2 }
 0x17b   : > { %v1880_v42 = vrot.slane %v1879_v36, 2  ;;  %v1901_v8 = vrot.slane %v1900_v21, 2  ;;  %v1922_v23 = vrot.slane %v1921_v24, 2  ;;  %v1943_v29 = vrot.slane %v1942_v9, 2 }
 0x17c   : > { %v1797_v2 = vadd.f32 %v1796_v34, %v1795_v17  ;;  %v1818_v35 = vadd.f32 %v1817_v16, %v1816_v48  ;;  %v1839_v30 = vadd.f32 %v1838_v10, %v1837_v52  ;;  %v1860_v40 = vadd.f32 %v1859_v33, %v1858_v28 }
 0x17d   : > { %v1881_v54 = vadd.f32 %v1880_v42, %v1879_v36  ;;  %v1902_v12 = vadd.f32 %v1901_v8, %v1900_v21  ;;  %v1923_v19 = vadd.f32 %v1922_v23, %v1921_v24  ;;  %v1944_v20 = vadd.f32 %v1943_v29, %v1942_v9  ;;  %v1354_v36 = vld [vmem:[#allocation3] sm:$0xff] }
 0x17e   : > { %v1798_v13 = vrot.slane %v1797_v2, 1  ;;  %v1819_v18 = vrot.slane %v1818_v35, 1  ;;  %v1840_v25 = vrot.slane %v1839_v30, 1  ;;  %v1861_v26 = vrot.slane %v1860_v40, 1 }
 0x17f   : > { %v1882_v31 = vrot.slane %v1881_v54, 1  ;;  %v1903_v32 = vrot.slane %v1902_v12, 1  ;;  %v1924_v43 = vrot.slane %v1923_v19, 1  ;;  %v1945_v44 = vrot.slane %v1944_v20, 1 }
 0x180   : > { %v1799_v37 = vadd.f32 %v1798_v13, %v1797_v2  ;;  %v1820_v38 = vadd.f32 %v1819_v18, %v1818_v35  ;;  %v1841_v49 = vadd.f32 %v1840_v25, %v1839_v30  ;;  %v1862_v50 = vadd.f32 %v1861_v26, %v1860_v40 }
 0x181   : > { %v1883_v55 = vadd.f32 %v1882_v31, %v1881_v54  ;;  %v1904_v56 = vadd.f32 %v1903_v32, %v1902_v12  ;;  %v1925_v58 = vadd.f32 %v1924_v43, %v1923_v19  ;;  %v1946_v61 = vadd.f32 %v1945_v44, %v1944_v20 }
 0x182   : > { %v1963_v62 = vcombine.low %v5657_v6, %v5659_v57  ;;  %v1980_v4 = vcombine.low %v5665_v27, %v5667_v3  ;;  %v1981_v14 = vcombine.low %v5669_v46, %v5671_v22  ;;  %v1997_v51 = vcombine.low %v1799_v37, %v1820_v38 }
 0x183   : > { %v1998_v53 = vcombine.low %v1841_v49, %v1862_v50  ;;  %v1978_v1 = vrot.slane %v1964_v7, %v5500_v11  ;;  %v2014_v45 = vcombine.low %v1883_v55, %v1904_v56  ;;  %v2015_v63 = vcombine.low %v1925_v58, %v1946_v61 }
 0x184   : > { %v1971_v0 = vrot.slane %v1963_v62, %v5500_v11  ;;  %v1988_v5 = vrot.slane %v1980_v4, %v5500_v11  ;;  %v1995_v6 = vrot.slane %v1981_v14, %v5500_v11  ;;  %v2005_v57 = vrot.slane %v1997_v51, %v5500_v11 }
 0x185   : > { %v2012_v60 = vrot.slane %v1998_v53, %v5500_v11  ;;  %v2022_v47 = vrot.slane %v2014_v45, %v5500_v11  ;;  %v2029_v27 = vrot.slane %v2015_v63, %v5500_v11 }
 0x186   : > { %v1979_v3 = vcombine.low %v1971_v0, %v1978_v1  ;;  %v1996_v22 = vcombine.low %v1988_v5, %v1995_v6 }
 0x187   : > { %v2013_v46 = vcombine.low %v2005_v57, %v2012_v60  ;;  %v2030_v15 = vcombine.low %v2022_v47, %v2029_v27 }
 0x189   : > { %v2033_v17 = vrot.slane %v2013_v46, 7  ;;  %v2040_v48 = vrot.slane %v2030_v15, 7 }
 0x18b   : > { %v2034_v39 = vsel %vm1332_vm0, %v2033_v17, %v1979_v3  ;;  %v2041_v28 = vsel %vm1332_vm0, %v2040_v48, %v1996_v22 }
 0x18c   : > { %v2035_v52 = vsel %vm1334_vm1, %v2033_v17, %v2034_v39  ;;  %v2042_v34 = vsel %vm1334_vm1, %v2040_v48, %v2041_v28 }
 0x18d   : > { %v2036_v21 = vsel %vm1336_vm2, %v2033_v17, %v2035_v52  ;;  %v2043_v24 = vsel %vm1336_vm2, %v2040_v48, %v2042_v34  ;;  %2054 = sbr.rel (%p3546_p9) target bundleno = 1440 (0x5a0), region = 71 }
 0x18e   : > { %v2037_v16 = vsel %vm1338_vm3, %v2033_v17, %v2036_v21  ;;  %v2044_v9 = vsel %vm1338_vm3, %v2040_v48, %v2043_v24 }
 0x18f   : > { %v2047_v10 = vadd.f32 %v2037_v16, %v1353_v41  ;;  %v2048_v33 = vadd.f32 %v2044_v9, %v1354_v36 }
 0x191   : > { %2049 = vst [vmem:[#allocation3 + $0x8] sm:$0xff] %v2047_v10  ;;  %2050 = vst [vmem:[#allocation3] sm:$0xff] %v2048_v33 }
 0x192   : > { %v2372_v42 = vld [vmem:[%s7546_s1 + $0x8f8] sm:$0xff]  ;;  %v2371_v2 = vld [vmem:[%s7546_s1 + $0x8f0] sm:$0xff]  ;;  %v2370_v23 = vld [vmem:[%s7546_s1 + $0x8e8] sm:$0xff]  ;;  %vm3253_vm8 = vcmask 1041408  }
 0x193   : > { %v2436_v8 = vld [vmem:[%s7546_s1 + $0xaf8] sm:$0xff]  ;;  %2641 = vmatprep.subr.mxu0 %v2372_v42  ;;  %v2435_v35 = vld [vmem:[%s7546_s1 + $0xaf0] sm:$0xff]  ;;  %v2434_v29 = vld [vmem:[%s7546_s1 + $0xae8] sm:$0xff] }
 0x194   : > { %2712 = vmatprep.subr.mxu1 %v2436_v8  ;;  %2642 = vmatpush1.msra.mxu0 %v2371_v2  ;;  %v2369_v30 = vld [vmem:[%s7546_s1 + $0x8e0] sm:$0xff]  ;;  %v2368_v54 = vld [vmem:[%s7546_s1 + $0x8d8] sm:$0xff]  ;;  %v2367_v13 = vld [vmem:[%s7546_s1 + $0x8d0] sm:$0xff] }
 0x195   : > { %2713 = vmatpush1.msra.mxu1 %v2435_v35  ;;  %v2433_v40 = vld [vmem:[%s7546_s1 + $0xae0] sm:$0xff]  ;;  %2643 = vmatprep.subr.mxu0 %v2370_v23  ;;  %v2432_v12 = vld [vmem:[%s7546_s1 + $0xad8] sm:$0xff]  ;;  %v2431_v18 = vld [vmem:[%s7546_s1 + $0xad0] sm:$0xff] }
 0x196   : > { %2714 = vmatprep.subr.mxu1 %v2434_v29  ;;  %2644 = vmatpush1.msra.mxu0 %v2369_v30  ;;  %v2366_v19 = vld [vmem:[%s7546_s1 + $0x8c8] sm:$0xff]  ;;  %v2365_v25 = vld [vmem:[%s7546_s1 + $0x8c0] sm:$0xff]  ;;  %v2364_v31 = vld [vmem:[%s7546_s1 + $0x8b8] sm:$0xff] }
 0x197   : > { %2715 = vmatpush1.msra.mxu1 %v2433_v40  ;;  %v2430_v20 = vld [vmem:[%s7546_s1 + $0xac8] sm:$0xff]  ;;  %2645 = vmatprep.subr.mxu0 %v2368_v54  ;;  %v2429_v26 = vld [vmem:[%s7546_s1 + $0xac0] sm:$0xff]  ;;  %v2428_v32 = vld [vmem:[%s7546_s1 + $0xab8] sm:$0xff] }
 0x198   : > { %2716 = vmatprep.subr.mxu1 %v2432_v12  ;;  %2646 = vmatpush1.msra.mxu0 %v2367_v13  ;;  %v2363_v37 = vld [vmem:[%s7546_s1 + $0x8b0] sm:$0xff]  ;;  %v2362_v43 = vld [vmem:[%s7546_s1 + $0x8a8] sm:$0xff]  ;;  %v2361_v49 = vld [vmem:[%s7546_s1 + $0x8a0] sm:$0xff] }
 0x199   : > { %2717 = vmatpush1.msra.mxu1 %v2431_v18  ;;  %2647 = vmatprep.subr.mxu0 %v2366_v19  ;;  %v2427_v38 = vld [vmem:[%s7546_s1 + $0xab0] sm:$0xff]  ;;  %v2426_v44 = vld [vmem:[%s7546_s1 + $0xaa8] sm:$0xff]  ;;  %v2425_v50 = vld [vmem:[%s7546_s1 + $0xaa0] sm:$0xff] }
 0x19a   : > { %2718 = vmatprep.subr.mxu1 %v2430_v20  ;;  %2648 = vmatpush1.msra.mxu0 %v2365_v25  ;;  %v2360_v55 = vld [vmem:[%s7546_s1 + $0x898] sm:$0xff]  ;;  %v2359_v58 = vld [vmem:[%s7546_s1 + $0x890] sm:$0xff]  ;;  %v2358_v62 = vld [vmem:[%s7546_s1 + $0x888] sm:$0xff] }
 0x19b   : > { %2719 = vmatpush1.msra.mxu1 %v2429_v26  ;;  %2649 = vmatprep.subr.mxu0 %v2364_v31  ;;  %v2424_v56 = vld [vmem:[%s7546_s1 + $0xa98] sm:$0xff]  ;;  %v2423_v61 = vld [vmem:[%s7546_s1 + $0xa90] sm:$0xff]  ;;  %v2422_v7 = vld [vmem:[%s7546_s1 + $0xa88] sm:$0xff] }
 0x19c   : > { %2720 = vmatprep.subr.mxu1 %v2428_v32  ;;  %2650 = vmatpush1.msra.mxu0 %v2363_v37  ;;  %v2357_v4 = vld [vmem:[%s7546_s1 + $0x880] sm:$0xff]  ;;  %v2356_v51 = vld [vmem:[%s7546_s1 + $0x878] sm:$0xff]  ;;  %v2355_v0 = vld [vmem:[%s7546_s1 + $0x870] sm:$0xff] }
 0x19d   : > { %2721 = vmatpush1.msra.mxu1 %v2427_v38  ;;  %2651 = vmatprep.subr.mxu0 %v2362_v43  ;;  %v2421_v14 = vld [vmem:[%s7546_s1 + $0xa80] sm:$0xff]  ;;  %v2420_v53 = vld [vmem:[%s7546_s1 + $0xa78] sm:$0xff]  ;;  %v2419_v1 = vld [vmem:[%s7546_s1 + $0xa70] sm:$0xff] }
 0x19e   : > { %2722 = vmatprep.subr.mxu1 %v2426_v44  ;;  %2652 = vmatpush1.msra.mxu0 %v2361_v49  ;;  %v2354_v45 = vld [vmem:[%s7546_s1 + $0x868] sm:$0xff]  ;;  %v2353_v5 = vld [vmem:[%s7546_s1 + $0x860] sm:$0xff]  ;;  %v2352_v57 = vld [vmem:[%s7546_s1 + $0x858] sm:$0xff] }
 0x19f   : > { %2723 = vmatpush1.msra.mxu1 %v2425_v50  ;;  %2653 = vmatprep.subr.mxu0 %v2360_v55  ;;  %v2418_v63 = vld [vmem:[%s7546_s1 + $0xa68] sm:$0xff]  ;;  %v2417_v6 = vld [vmem:[%s7546_s1 + $0xa60] sm:$0xff]  ;;  %v2416_v60 = vld [vmem:[%s7546_s1 + $0xa58] sm:$0xff] }
 0x1a0   : > { %2724 = vmatprep.subr.mxu1 %v2424_v56  ;;  %2654 = vmatpush1.msra.mxu0 %v2359_v58  ;;  %v2351_v47 = vld [vmem:[%s7546_s1 + $0x850] sm:$0xff]  ;;  %v2350_v3 = vld [vmem:[%s7546_s1 + $0x848] sm:$0xff]  ;;  %v2349_v22 = vld [vmem:[%s7546_s1 + $0x840] sm:$0xff] }
 0x1a1   : > { %2725 = vmatpush1.msra.mxu1 %v2423_v61  ;;  %2655 = vmatprep.subr.mxu0 %v2358_v62  ;;  %v2415_v27 = vld [vmem:[%s7546_s1 + $0xa50] sm:$0xff]  ;;  %v2414_v46 = vld [vmem:[%s7546_s1 + $0xa48] sm:$0xff]  ;;  %v2413_v15 = vld [vmem:[%s7546_s1 + $0xa40] sm:$0xff] }
 0x1a2   : > { %2726 = vmatprep.subr.mxu1 %v2422_v7  ;;  %2656 = vmatpush1.msra.mxu0 %v2357_v4  ;;  %v2348_v17 = vld [vmem:[%s7546_s1 + $0x838] sm:$0xff]  ;;  %v2347_v39 = vld [vmem:[%s7546_s1 + $0x830] sm:$0xff]  ;;  %v2346_v52 = vld [vmem:[%s7546_s1 + $0x828] sm:$0xff] }
 0x1a3   : > { %2727 = vmatpush1.msra.mxu1 %v2421_v14  ;;  %2657 = vmatprep.subr.mxu0 %v2356_v51  ;;  %v2412_v48 = vld [vmem:[%s7546_s1 + $0xa38] sm:$0xff]  ;;  %v2411_v41 = vld [vmem:[%s7546_s1 + $0xa30] sm:$0xff]  ;;  %v2410_v28 = vld [vmem:[%s7546_s1 + $0xa28] sm:$0xff] }
 0x1a4   : > { %2728 = vmatprep.subr.mxu1 %v2420_v53  ;;  %2658 = vmatpush1.msra.mxu0 %v2355_v0  ;;  %v2345_v36 = vld [vmem:[%s7546_s1 + $0x820] sm:$0xff]  ;;  %v2344_v34 = vld [vmem:[%s7546_s1 + $0x818] sm:$0xff]  ;;  %v2343_v24 = vld [vmem:[%s7546_s1 + $0x810] sm:$0xff] }
 0x1a5   : > { %2729 = vmatpush1.msra.mxu1 %v2419_v1  ;;  %2659 = vmatprep.subr.mxu0 %v2354_v45  ;;  %v2409_v21 = vld [vmem:[%s7546_s1 + $0xa20] sm:$0xff]  ;;  %v2408_v16 = vld [vmem:[%s7546_s1 + $0xa18] sm:$0xff]  ;;  %v2407_v9 = vld [vmem:[%s7546_s1 + $0xa10] sm:$0xff] }
 0x1a6   : > { %2730 = vmatprep.subr.mxu1 %v2418_v63  ;;  %2660 = vmatpush1.msra.mxu0 %v2353_v5  ;;  %v2342_v10 = vld [vmem:[%s7546_s1 + $0x808] sm:$0xff]  ;;  %v2341_v42 = vld [vmem:[%s7546_s1 + $0x800] sm:$0xff]  ;;  %v2404_v2 = vld [vmem:[%s7546_s1 + $0x9f8] sm:$0xff] }
 0x1a7   : > { %2731 = vmatpush1.msra.mxu1 %v2417_v6  ;;  %2661 = vmatprep.subr.mxu0 %v2352_v57  ;;  %v2406_v33 = vld [vmem:[%s7546_s1 + $0xa08] sm:$0xff]  ;;  %v2405_v8 = vld [vmem:[%s7546_s1 + $0xa00] sm:$0xff]  ;;  %v2468_v35 = vld [vmem:[%s7546_s1 + $0xbf8] sm:$0xff] }
 0x1a8   : > { %2732 = vmatprep.subr.mxu1 %v2416_v60  ;;  %2662 = vmatpush1.msra.mxu0 %v2351_v47  ;;  %v2403_v23 = vld [vmem:[%s7546_s1 + $0x9f0] sm:$0xff]  ;;  %v2402_v30 = vld [vmem:[%s7546_s1 + $0x9e8] sm:$0xff]  ;;  %v2401_v54 = vld [vmem:[%s7546_s1 + $0x9e0] sm:$0xff] }
 0x1a9   : > { %2733 = vmatpush1.msra.mxu1 %v2415_v27  ;;  %2663 = vmatprep.subr.mxu0 %v2350_v3  ;;  %v2467_v29 = vld [vmem:[%s7546_s1 + $0xbf0] sm:$0xff]  ;;  %v2466_v40 = vld [vmem:[%s7546_s1 + $0xbe8] sm:$0xff]  ;;  %v2465_v12 = vld [vmem:[%s7546_s1 + $0xbe0] sm:$0xff] }
 0x1aa   : > { %2734 = vmatprep.subr.mxu1 %v2414_v46  ;;  %2664 = vmatpush1.msra.mxu0 %v2349_v22  ;;  %v2400_v13 = vld [vmem:[%s7546_s1 + $0x9d8] sm:$0xff]  ;;  %v2399_v19 = vld [vmem:[%s7546_s1 + $0x9d0] sm:$0xff]  ;;  %v2398_v25 = vld [vmem:[%s7546_s1 + $0x9c8] sm:$0xff] }
 0x1ab   : > { %2735 = vmatpush1.msra.mxu1 %v2413_v15  ;;  %2665 = vmatprep.subr.mxu0 %v2348_v17  ;;  %v2464_v18 = vld [vmem:[%s7546_s1 + $0xbd8] sm:$0xff]  ;;  %v2463_v20 = vld [vmem:[%s7546_s1 + $0xbd0] sm:$0xff]  ;;  %v2462_v26 = vld [vmem:[%s7546_s1 + $0xbc8] sm:$0xff] }
 0x1ac   : > { %2736 = vmatprep.subr.mxu1 %v2412_v48  ;;  %2666 = vmatpush1.msra.mxu0 %v2347_v39  ;;  %v2397_v31 = vld [vmem:[%s7546_s1 + $0x9c0] sm:$0xff]  ;;  %v2396_v37 = vld [vmem:[%s7546_s1 + $0x9b8] sm:$0xff]  ;;  %v2395_v43 = vld [vmem:[%s7546_s1 + $0x9b0] sm:$0xff] }
 0x1ad   : > { %2737 = vmatpush1.msra.mxu1 %v2411_v41  ;;  %2667 = vmatprep.subr.mxu0 %v2346_v52  ;;  %v2461_v32 = vld [vmem:[%s7546_s1 + $0xbc0] sm:$0xff]  ;;  %v2460_v38 = vld [vmem:[%s7546_s1 + $0xbb8] sm:$0xff]  ;;  %v2459_v44 = vld [vmem:[%s7546_s1 + $0xbb0] sm:$0xff] }
 0x1ae   : > { %2738 = vmatprep.subr.mxu1 %v2410_v28  ;;  %2668 = vmatpush1.msra.mxu0 %v2345_v36  ;;  %v2394_v49 = vld [vmem:[%s7546_s1 + $0x9a8] sm:$0xff]  ;;  %v2393_v55 = vld [vmem:[%s7546_s1 + $0x9a0] sm:$0xff]  ;;  %v2392_v58 = vld [vmem:[%s7546_s1 + $0x998] sm:$0xff] }
 0x1af   : > { %2739 = vmatpush1.msra.mxu1 %v2409_v21  ;;  %2669 = vmatprep.subr.mxu0 %v2344_v34  ;;  %v2458_v50 = vld [vmem:[%s7546_s1 + $0xba8] sm:$0xff]  ;;  %v2457_v56 = vld [vmem:[%s7546_s1 + $0xba0] sm:$0xff]  ;;  %v2456_v61 = vld [vmem:[%s7546_s1 + $0xb98] sm:$0xff] }
 0x1b0   : > { %2740 = vmatprep.subr.mxu1 %v2408_v16  ;;  %2670 = vmatpush1.msra.mxu0 %v2343_v24  ;;  %v2055_v62 = vld [vmem:[#allocation2] sm:$0xff]  ;;  %v2391_v7 = vld [vmem:[%s7546_s1 + $0x990] sm:$0xff]  ;;  %v2390_v51 = vld [vmem:[%s7546_s1 + $0x988] sm:$0xff] }
 0x1b1   : > { %2741 = vmatpush1.msra.mxu1 %v2407_v9  ;;  %2671 = vmatprep.subr.mxu0 %v2342_v10  ;;  %v2455_v4 = vld [vmem:[%s7546_s1 + $0xb90] sm:$0xff]  ;;  %v6110_v14 = vmul.f32 0.005, %v2055_v62  ;;  %v2454_v53 = vld [vmem:[%s7546_s1 + $0xb88] sm:$0xff]  ;;  %v2389_v0 = vld [vmem:[%s7546_s1 + $0x980] sm:$0xff] }
 0x1b2   : > { %2742 = vmatprep.subr.mxu1 %v2406_v33  ;;  %2672 = vmatpush1.msra.mxu0 %v2341_v42  ;;  %v2453_v1 = vld [vmem:[%s7546_s1 + $0xb80] sm:$0xff]  ;;  %v2388_v63 = vld [vmem:[%s7546_s1 + $0x978] sm:$0xff]  ;;  %v2387_v57 = vld [vmem:[%s7546_s1 + $0x970] sm:$0xff] }
 0x1b3   : > { %2743 = vmatpush1.msra.mxu1 %v2405_v8  ;;  %2673 = vmatprep.subr.mxu0 %v2404_v2  ;;  %v2061_v45 = vmul.f32 200.0, %v6110_v14  ;;  %v2452_v5 = vld [vmem:[%s7546_s1 + $0xb78] sm:$0xff]  ;;  %v2451_v60 = vld [vmem:[%s7546_s1 + $0xb70] sm:$0xff]  ;;  %v2386_v27 = vld [vmem:[%s7546_s1 + $0x968] sm:$0xff] }
 0x1b4   : > { %2744 = vmatprep.subr.mxu1 %v2468_v35  ;;  %2674 = vmatpush2.msra.mxu0 %v2403_v23  ;;  %v2059_v6 = vld [vmem:[#allocation3 + $0x8] sm:$0xff]  ;;  %v2450_v3 = vld [vmem:[%s7546_s1 + $0xb68] sm:$0xff]  ;;  %v2385_v46 = vld [vmem:[%s7546_s1 + $0x960] sm:$0xff] }
 0x1b5   : > { %2745 = vmatpush2.msra.mxu1 %v2467_v29  ;;  %2675 = vmatprep.subr.mxu0 %v2402_v30  ;;  %v2063_v47 = vmul.f32 %v2061_v45, %v6110_v14  ;;  %v2449_v22 = vld [vmem:[%s7546_s1 + $0xb60] sm:$0xff]  ;;  %v2384_v17 = vld [vmem:[%s7546_s1 + $0x958] sm:$0xff]  ;;  %v2383_v39 = vld [vmem:[%s7546_s1 + $0x950] sm:$0xff] }
 0x1b6   : > { %2746 = vmatprep.subr.mxu1 %v2466_v40  ;;  %2676 = vmatpush2.msra.mxu0 %v2401_v54  ;;  %v2448_v48 = vld [vmem:[%s7546_s1 + $0xb58] sm:$0xff]  ;;  %v2447_v41 = vld [vmem:[%s7546_s1 + $0xb50] sm:$0xff]  ;;  %v2382_v28 = vld [vmem:[%s7546_s1 + $0x948] sm:$0xff] }
 0x1b7   : > { %2747 = vmatpush2.msra.mxu1 %v2465_v12  ;;  %2677 = vmatprep.subr.mxu0 %v2400_v13  ;;  %v2065_v15 = vsub.f32 %v2059_v6, %v2063_v47  ;;  %v2446_v36 = vld [vmem:[%s7546_s1 + $0xb48] sm:$0xff]  ;;  %v2381_v21 = vld [vmem:[%s7546_s1 + $0x940] sm:$0xff]  ;;  %v2380_v24 = vld [vmem:[%s7546_s1 + $0x938] sm:$0xff] }
 0x1b8   : > { %2748 = vmatprep.subr.mxu1 %v2464_v18  ;;  %2678 = vmatpush2.msra.mxu0 %v2399_v19  ;;  %v2445_v34 = vld [vmem:[%s7546_s1 + $0xb40] sm:$0xff]  ;;  %v2444_v9 = vld [vmem:[%s7546_s1 + $0xb38] sm:$0xff]  ;;  %v2379_v10 = vld [vmem:[%s7546_s1 + $0x930] sm:$0xff] }
 0x1b9   : > { %2749 = vmatpush2.msra.mxu1 %v2463_v20  ;;  %2679 = vmatprep.subr.mxu0 %v2398_v25  ;;  %v2067_v52 = vmul.f32 0.0050251256, %v2065_v15  ;;  %v2443_v33 = vld [vmem:[%s7546_s1 + $0xb30] sm:$0xff]  ;;  %v2378_v42 = vld [vmem:[%s7546_s1 + $0x928] sm:$0xff]  ;;  %v2377_v2 = vld [vmem:[%s7546_s1 + $0x920] sm:$0xff] }
 0x1ba   : > { %2750 = vmatprep.subr.mxu1 %v2462_v26  ;;  %2680 = vmatpush2.msra.mxu0 %v2397_v31  ;;  %v2442_v8 = vld [vmem:[%s7546_s1 + $0xb28] sm:$0xff]  ;;  %v2441_v35 = vld [vmem:[%s7546_s1 + $0xb20] sm:$0xff]  ;;  %v2376_v23 = vld [vmem:[%s7546_s1 + $0x918] sm:$0xff] }
 0x1bb   : > { %2751 = vmatpush2.msra.mxu1 %v2461_v32  ;;  %2681 = vmatprep.subr.mxu0 %v2396_v37  ;;  %v2069_v16 = vmax.f32 %v2067_v52, 0.0  ;;  %v2440_v29 = vld [vmem:[%s7546_s1 + $0xb18] sm:$0xff]  ;;  %v2375_v30 = vld [vmem:[%s7546_s1 + $0x910] sm:$0xff]  ;;  %v2374_v54 = vld [vmem:[%s7546_s1 + $0x908] sm:$0xff] }
 0x1bc   : > { %2752 = vmatprep.subr.mxu1 %v2460_v38  ;;  %2682 = vmatpush2.msra.mxu0 %v2395_v43  ;;  %v2439_v40 = vld [vmem:[%s7546_s1 + $0xb10] sm:$0xff]  ;;  %v2438_v12 = vld [vmem:[%s7546_s1 + $0xb08] sm:$0xff]  ;;  %v2373_v13 = vld [vmem:[%s7546_s1 + $0x900] sm:$0xff] }
 0x1bd   : > { %2753 = vmatpush2.msra.mxu1 %v2459_v44  ;;  %2683 = vmatprep.subr.mxu0 %v2394_v49  ;;  %3631 = vrsqrt.f32 %v2069_v16  ;;  %v2437_v18 = vld [vmem:[%s7546_s1 + $0xb00] sm:$0xff]  ;;  %v2500_v19 = vld [vmem:[%s7546_s1 + $0xcf8] sm:$0xff]  ;;  %vm2073_vm4 = vcmp.eq.f32.partialorder %v2069_v16, inf  ;;  %v2076_v26 = vand.u32 2147483648, %v2069_v16  ;;  %vm2075_vm5 = vcmp.eq.f32.partialorder %v2069_v16, 0.0  ;;  %v2562_v62 = vld [vmem:[%s7546_s1 + $0xee8] sm:$0xff] }
 0x1be   : > { %2754 = vmatprep.subr.mxu1 %v2458_v50  ;;  %2684 = vmatpush2.msra.mxu0 %v2393_v55  ;;  %v2564_v20 = vld [vmem:[%s7546_s1 + $0xef8] sm:$0xff]  ;;  %v2499_v50 = vld [vmem:[%s7546_s1 + $0xcf0] sm:$0xff]  ;;  %v2493_v45 = vld [vmem:[%s7546_s1 + $0xcc0] sm:$0xff] }
 0x1bf   : > { %2755 = vmatpush2.msra.mxu1 %v2457_v56  ;;  %2685 = vmatprep.subr.mxu0 %v2392_v58  ;;  %v2498_v56 = vld [vmem:[%s7546_s1 + $0xce8] sm:$0xff]  ;;  %v2563_v58 = vld [vmem:[%s7546_s1 + $0xef0] sm:$0xff]  ;;  %v2557_v6 = vld [vmem:[%s7546_s1 + $0xec0] sm:$0xff] }
 0x1c0   : > { %2756 = vmatprep.subr.mxu1 %v2456_v61  ;;  %2686 = vmatpush2.msra.mxu0 %v2391_v7  ;;  %v2497_v61 = vld [vmem:[%s7546_s1 + $0xce0] sm:$0xff]  ;;  %v2496_v7 = vld [vmem:[%s7546_s1 + $0xcd8] sm:$0xff]  ;;  %v2490_v47 = vld [vmem:[%s7546_s1 + $0xca8] sm:$0xff] }
 0x1c1   : > { %2757 = vmatpush2.msra.mxu1 %v2455_v4  ;;  %2687 = vmatprep.subr.mxu0 %v2390_v51  ;;  %v2561_v4 = vld [vmem:[%s7546_s1 + $0xee0] sm:$0xff]  ;;  %v2495_v51 = vld [vmem:[%s7546_s1 + $0xcd0] sm:$0xff]  ;;  %v2554_v15 = vld [vmem:[%s7546_s1 + $0xea8] sm:$0xff] }
 0x1c2   : > { %2758 = vmatprep.subr.mxu1 %v2454_v53  ;;  %2688 = vmatpush2.msra.mxu0 %v2389_v0  ;;  %v2560_v53 = vld [vmem:[%s7546_s1 + $0xed8] sm:$0xff]  ;;  %v2494_v0 = vld [vmem:[%s7546_s1 + $0xcc8] sm:$0xff] }
 0x1c3   : > { %2759 = vmatpush2.msra.mxu1 %v2453_v1  ;;  %2689 = vmatprep.subr.mxu0 %v2388_v63  ;;  %v2559_v1 = vld [vmem:[%s7546_s1 + $0xed0] sm:$0xff]  ;;  %v2558_v63 = vld [vmem:[%s7546_s1 + $0xec8] sm:$0xff]  ;;  %v2552_v52 = vld [vmem:[%s7546_s1 + $0xe98] sm:$0xff] }
 0x1c4   : > { %2760 = vmatprep.subr.mxu1 %v2452_v5  ;;  %2690 = vmatpush2.msra.mxu0 %v2387_v57  ;;  %v2492_v5 = vld [vmem:[%s7546_s1 + $0xcb8] sm:$0xff]  ;;  %v2491_v57 = vld [vmem:[%s7546_s1 + $0xcb0] sm:$0xff] }
 0x1c5   : > { %2761 = vmatpush2.msra.mxu1 %v2451_v60  ;;  %2691 = vmatprep.subr.mxu0 %v2386_v27  ;;  %v2556_v60 = vld [vmem:[%s7546_s1 + $0xeb8] sm:$0xff]  ;;  %v2056_v27 = vld [vmem:[#allocation2 + $0x8] sm:$0xff] }
 0x1c6   : > { %2762 = vmatprep.subr.mxu1 %v2450_v3  ;;  %2692 = vmatpush2.msra.mxu0 %v2385_v46  ;;  %v2555_v3 = vld [vmem:[%s7546_s1 + $0xeb0] sm:$0xff]  ;;  %v2489_v46 = vld [vmem:[%s7546_s1 + $0xca0] sm:$0xff] }
 0x1c7   : > { %2763 = vmatpush2.msra.mxu1 %v2449_v22  ;;  %2693 = vmatprep.subr.mxu0 %v2384_v17  ;;  %v6290_v22 = vmul.f32 0.005, %v2056_v27  ;;  %v2488_v17 = vld [vmem:[%s7546_s1 + $0xc98] sm:$0xff]  ;;  %v2527_v27 = vld [vmem:[%s7546_s1 + $0xdd0] sm:$0xff] }
 0x1c8   : > { %2764 = vmatprep.subr.mxu1 %v2448_v48  ;;  %2694 = vmatpush2.msra.mxu0 %v2383_v39  ;;  %v2553_v48 = vld [vmem:[%s7546_s1 + $0xea0] sm:$0xff]  ;;  %v2487_v39 = vld [vmem:[%s7546_s1 + $0xc90] sm:$0xff] }
 0x1c9   : > { %2765 = vmatpush2.msra.mxu1 %v2447_v41  ;;  %2695 = vmatprep.subr.mxu0 %v2382_v28  ;;  %v2062_v41 = vmul.f32 200.0, %v6290_v22  ;;  %v2486_v28 = vld [vmem:[%s7546_s1 + $0xc88] sm:$0xff] }
 0x1ca   : > { %2766 = vmatprep.subr.mxu1 %v2446_v36  ;;  %2696 = vmatpush2.msra.mxu0 %v2381_v21  ;;  %v3632_v25 = vpop.eup %3631  ;;  %v2551_v36 = vld [vmem:[%s7546_s1 + $0xe90] sm:$0xff]  ;;  %v2485_v21 = vld [vmem:[%s7546_s1 + $0xc80] sm:$0xff] }
 0x1cb   : > { %2767 = vmatpush2.msra.mxu1 %v2445_v34  ;;  %2697 = vmatprep.subr.mxu0 %v2380_v24  ;;  %v2072_v31 = vmul.f32 %v3632_v25, %v2069_v16  ;;  %v2064_v34 = vmul.f32 %v2062_v41, %v6290_v22  ;;  %v2484_v24 = vld [vmem:[%s7546_s1 + $0xc78] sm:$0xff]  ;;  %v2542_v25 = vld [vmem:[%s7546_s1 + $0xe48] sm:$0xff]  ;;  %v2589_v41 = vld [vmem:[%s7546_s1 + $0xfc0] sm:$0xff] }
 0x1cc   : > { %2768 = vmatprep.subr.mxu1 %v2444_v9  ;;  %2698 = vmatpush2.msra.mxu0 %v2379_v10  ;;  %v2060_v9 = vld [vmem:[#allocation3] sm:$0xff]  ;;  %v2549_v10 = vld [vmem:[%s7546_s1 + $0xe80] sm:$0xff] }
 0x1cd   : > { %2769 = vmatpush2.msra.mxu1 %v2443_v33  ;;  %2699 = vmatprep.subr.mxu0 %v2378_v42  ;;  %v2074_v32 = vsel %vm2073_vm4, %v2069_v16, %v2072_v31  ;;  %v2550_v16 = vld [vmem:[%s7546_s1 + $0xe88] sm:$0xff]  ;;  %v2483_v33 = vld [vmem:[%s7546_s1 + $0xc70] sm:$0xff]  ;;  %v2548_v42 = vld [vmem:[%s7546_s1 + $0xe78] sm:$0xff] }
 0x1ce   : > { %2770 = vmatprep.subr.mxu1 %v2442_v8  ;;  %2700 = vmatpush2.msra.mxu0 %v2377_v2  ;;  %v2077_v37 = vsel %vm2075_vm5, %v2076_v26, %v2074_v32  ;;  %v2482_v8 = vld [vmem:[%s7546_s1 + $0xc68] sm:$0xff]  ;;  %v2547_v2 = vld [vmem:[%s7546_s1 + $0xe70] sm:$0xff]  ;;  %v2476_v26 = vld [vmem:[%s7546_s1 + $0xc38] sm:$0xff] }
 0x1cf   : > { %2771 = vmatpush2.msra.mxu1 %v2441_v35  ;;  %2701 = vmatprep.subr.mxu0 %v2376_v23  ;;  %v2606_v38 = vrot.slane %v2077_v37, %v5500_v11  ;;  %v2599_v43 = vcombine.high %v2077_v37, %v2077_v37  ;;  %v2481_v35 = vld [vmem:[%s7546_s1 + $0xc60] sm:$0xff]  ;;  %v2066_v23 = vsub.f32 %v2060_v9, %v2064_v34  ;;  %v2475_v32 = vld [vmem:[%s7546_s1 + $0xc30] sm:$0xff]  ;;  %v2540_v37 = vld [vmem:[%s7546_s1 + $0xe38] sm:$0xff] }
 0x1d0   : > { %2772 = vmatprep.subr.mxu1 %v2440_v29  ;;  %2702 = vmatpush2.msra.mxu0 %v2375_v30  ;;  %v2546_v29 = vld [vmem:[%s7546_s1 + $0xe68] sm:$0xff]  ;;  %v2480_v30 = vld [vmem:[%s7546_s1 + $0xc58] sm:$0xff]  ;;  %v2541_v31 = vld [vmem:[%s7546_s1 + $0xe40] sm:$0xff] }
 0x1d1   : > { %2773 = vmatpush2.msra.mxu1 %v2439_v40  ;;  %2703 = vmatprep.subr.mxu0 %v2374_v54  ;;  %v2614_v44 = vcombine.high %v2606_v38, %v2606_v38  ;;  %v2613_v49 = vrot.slane %v2599_v43, %v5500_v11  ;;  %v2545_v40 = vld [vmem:[%s7546_s1 + $0xe60] sm:$0xff]  ;;  %v2479_v54 = vld [vmem:[%s7546_s1 + $0xc50] sm:$0xff]  ;;  %v2520_v9 = vld [vmem:[%s7546_s1 + $0xd98] sm:$0xff] }
 0x1d2   : > { %2774 = vmatprep.subr.mxu1 %v2438_v12  ;;  %2704 = vmatpush2.msra.mxu0 %v2373_v13  ;;  %v2544_v12 = vld [vmem:[%s7546_s1 + $0xe58] sm:$0xff]  ;;  %v2478_v13 = vld [vmem:[%s7546_s1 + $0xc48] sm:$0xff]  ;;  %v2539_v43 = vld [vmem:[%s7546_s1 + $0xe30] sm:$0xff] }
 0x1d3   : > { %2775 = vmatpush2.msra.mxu1 %v2437_v18  ;;  %2783 = vmatprep.subr.mxu0 %v2500_v19  ;;  %v2615_v55 = vcombine.high %v2613_v49, %v2613_v49  ;;  %v2543_v18 = vld [vmem:[%s7546_s1 + $0xe50] sm:$0xff]  ;;  %v2477_v19 = vld [vmem:[%s7546_s1 + $0xc40] sm:$0xff] }
 0x1d4   : > { %2854 = vmatprep.subr.mxu1 %v2564_v20  ;;  %2705 = vmatprep.mubr.f32.mxu0 %v2614_v44  ;;  %v2068_v20 = vmul.f32 0.0050251256, %v2066_v23  ;;  %v2473_v44 = vld [vmem:[%s7546_s1 + $0xc20] sm:$0xff] }
 0x1d5   : > { %2706 = vmatmul.mubr.f32.vlgmr.msra.gmra.mxu0 %v2606_v38  ;;  %2776 = vmatprep.mubr.f32.mxu1 %v2615_v55  ;;  %v2474_v38 = vld [vmem:[%s7546_s1 + $0xc28] sm:$0xff]  ;;  %v2472_v55 = vld [vmem:[%s7546_s1 + $0xc18] sm:$0xff]  ;;  %v2521_v34 = vld [vmem:[%s7546_s1 + $0xda0] sm:$0xff] }
 0x1d6   : > { %2784 = vmatpush1.msra.mxu0 %v2499_v50  ;;  %2777 = vmatmul.mubr.f32.vlgmr.msra.gmra.mxu1 %v2613_v49  ;;  %v6390_v49 = vmax.f32 %v2068_v20, 0.0  ;;  %v2538_v50 = vld [vmem:[%s7546_s1 + $0xe28] sm:$0xff]  ;;  %v2513_v20 = vld [vmem:[%s7546_s1 + $0xd60] sm:$0xff] }
 0x1d7   : > { %2785 = vmatprep.subr.mxu0 %v2498_v56  ;;  %2855 = vmatpush1.msra.mxu1 %v2563_v58  ;;  %v2537_v56 = vld [vmem:[%s7546_s1 + $0xe20] sm:$0xff]  ;;  %v2471_v58 = vld [vmem:[%s7546_s1 + $0xc10] sm:$0xff] }
 0x1d8   : > { %2786 = vmatpush1.msra.mxu0 %v2497_v61  ;;  %2856 = vmatprep.subr.mxu1 %v2562_v62  ;;  %v2536_v61 = vld [vmem:[%s7546_s1 + $0xe18] sm:$0xff]  ;;  %v2470_v62 = vld [vmem:[%s7546_s1 + $0xc08] sm:$0xff]  ;;  %3633 = vrsqrt.f32 %v6390_v49  ;;  %vm2080_vm6 = vcmp.eq.f32.partialorder %v6390_v49, inf  ;;  %vm2082_vm7 = vcmp.eq.f32.partialorder %v6390_v49, 0.0 }
 0x1d9   : > { %2787 = vmatprep.subr.mxu0 %v2496_v7  ;;  %2857 = vmatpush1.msra.mxu1 %v2561_v4  ;;  %v2535_v7 = vld [vmem:[%s7546_s1 + $0xe10] sm:$0xff]  ;;  %v2469_v4 = vld [vmem:[%s7546_s1 + $0xc00] sm:$0xff] }
 0x1da   : > { %2788 = vmatpush1.msra.mxu0 %v2495_v51  ;;  %2858 = vmatprep.subr.mxu1 %v2560_v53  ;;  %v2534_v51 = vld [vmem:[%s7546_s1 + $0xe08] sm:$0xff]  ;;  %v2532_v53 = vld [vmem:[%s7546_s1 + $0xdf8] sm:$0xff] }
 0x1db   : > { %2789 = vmatprep.subr.mxu0 %v2494_v0  ;;  %2859 = vmatpush1.msra.mxu1 %v2559_v1  ;;  %v2533_v0 = vld [vmem:[%s7546_s1 + $0xe00] sm:$0xff]  ;;  %v2531_v1 = vld [vmem:[%s7546_s1 + $0xdf0] sm:$0xff] }
 0x1dc   : > { %2790 = vmatpush1.msra.mxu0 %v2493_v45  ;;  %2860 = vmatprep.subr.mxu1 %v2558_v63  ;;  %v2596_v45 = vld [vmem:[%s7546_s1 + $0xff8] sm:$0xff]  ;;  %v2530_v63 = vld [vmem:[%s7546_s1 + $0xde8] sm:$0xff] }
 0x1dd   : > { %2791 = vmatprep.subr.mxu0 %v2492_v5  ;;  %2861 = vmatpush1.msra.mxu1 %v2557_v6  ;;  %v2595_v5 = vld [vmem:[%s7546_s1 + $0xff0] sm:$0xff]  ;;  %v2529_v6 = vld [vmem:[%s7546_s1 + $0xde0] sm:$0xff] }
 0x1de   : > { %2792 = vmatpush1.msra.mxu0 %v2491_v57  ;;  %2862 = vmatprep.subr.mxu1 %v2556_v60  ;;  %v2594_v57 = vld [vmem:[%s7546_s1 + $0xfe8] sm:$0xff]  ;;  %v2528_v60 = vld [vmem:[%s7546_s1 + $0xdd8] sm:$0xff] }
 0x1df   : > { %2793 = vmatprep.subr.mxu0 %v2490_v47  ;;  %2863 = vmatpush1.msra.mxu1 %v2555_v3  ;;  %v2593_v47 = vld [vmem:[%s7546_s1 + $0xfe0] sm:$0xff]  ;;  %v2592_v3 = vld [vmem:[%s7546_s1 + $0xfd8] sm:$0xff] }
 0x1e0   : > { %2794 = vmatpush1.msra.mxu0 %v2489_v46  ;;  %2864 = vmatprep.subr.mxu1 %v2554_v15  ;;  %v2526_v46 = vld [vmem:[%s7546_s1 + $0xdc8] sm:$0xff]  ;;  %v2591_v15 = vld [vmem:[%s7546_s1 + $0xfd0] sm:$0xff] }
 0x1e1   : > { %2795 = vmatprep.subr.mxu0 %v2488_v17  ;;  %2865 = vmatpush1.msra.mxu1 %v2553_v48  ;;  %v2525_v17 = vld [vmem:[%s7546_s1 + $0xdc0] sm:$0xff]  ;;  %v2590_v48 = vld [vmem:[%s7546_s1 + $0xfc8] sm:$0xff] }
 0x1e2   : > { %2796 = vmatpush1.msra.mxu0 %v2487_v39  ;;  %2866 = vmatprep.subr.mxu1 %v2552_v52  ;;  %v2524_v39 = vld [vmem:[%s7546_s1 + $0xdb8] sm:$0xff]  ;;  %v2523_v52 = vld [vmem:[%s7546_s1 + $0xdb0] sm:$0xff] }
 0x1e3   : > { %2797 = vmatprep.subr.mxu0 %v2486_v28  ;;  %2867 = vmatpush1.msra.mxu1 %v2551_v36  ;;  %v2588_v28 = vld [vmem:[%s7546_s1 + $0xfb8] sm:$0xff]  ;;  %v2522_v36 = vld [vmem:[%s7546_s1 + $0xda8] sm:$0xff] }
 0x1e4   : > { %2798 = vmatpush1.msra.mxu0 %v2485_v21  ;;  %2868 = vmatprep.subr.mxu1 %v2550_v16  ;;  %v2587_v21 = vld [vmem:[%s7546_s1 + $0xfb0] sm:$0xff] }
 0x1e5   : > { %2799 = vmatprep.subr.mxu0 %v2484_v24  ;;  %2869 = vmatpush1.msra.mxu1 %v2549_v10  ;;  %v3634_v16 = vpop.eup %3633  ;;  %v2586_v24 = vld [vmem:[%s7546_s1 + $0xfa8] sm:$0xff]  ;;  %v2585_v10 = vld [vmem:[%s7546_s1 + $0xfa0] sm:$0xff] }
 0x1e6   : > { %2800 = vmatpush1.msra.mxu0 %v2483_v33  ;;  %2870 = vmatprep.subr.mxu1 %v2548_v42  ;;  %v2519_v33 = vld [vmem:[%s7546_s1 + $0xd90] sm:$0xff]  ;;  %v2584_v42 = vld [vmem:[%s7546_s1 + $0xf98] sm:$0xff]  ;;  %v2079_v23 = vmul.f32 %v3634_v16, %v6390_v49 }
 0x1e7   : > { %2801 = vmatprep.subr.mxu0 %v2482_v8  ;;  %2871 = vmatpush1.msra.mxu1 %v2547_v2  ;;  %v2518_v8 = vld [vmem:[%s7546_s1 + $0xd88] sm:$0xff]  ;;  %v2583_v2 = vld [vmem:[%s7546_s1 + $0xf90] sm:$0xff]  ;;  %v2112_v16 = vld [vmem:[%s7546_s1 + $0xd8] sm:$0xff] }
 0x1e8   : > { %2802 = vmatpush1.msra.mxu0 %v2481_v35  ;;  %2872 = vmatprep.subr.mxu1 %v2546_v29  ;;  %v2517_v35 = vld [vmem:[%s7546_s1 + $0xd80] sm:$0xff]  ;;  %v2582_v29 = vld [vmem:[%s7546_s1 + $0xf88] sm:$0xff] }
 0x1e9   : > { %2803 = vmatprep.subr.mxu0 %v2480_v30  ;;  %2873 = vmatpush1.msra.mxu1 %v2545_v40  ;;  %v2516_v30 = vld [vmem:[%s7546_s1 + $0xd78] sm:$0xff]  ;;  %v2581_v40 = vld [vmem:[%s7546_s1 + $0xf80] sm:$0xff] }
 0x1ea   : > { %2804 = vmatpush1.msra.mxu0 %v2479_v54  ;;  %2874 = vmatprep.subr.mxu1 %v2544_v12  ;;  %v2515_v54 = vld [vmem:[%s7546_s1 + $0xd70] sm:$0xff]  ;;  %v2580_v12 = vld [vmem:[%s7546_s1 + $0xf78] sm:$0xff] }
 0x1eb   : > { %2805 = vmatprep.subr.mxu0 %v2478_v13  ;;  %2875 = vmatpush1.msra.mxu1 %v2543_v18  ;;  %v2514_v13 = vld [vmem:[%s7546_s1 + $0xd68] sm:$0xff]  ;;  %v2083_v18 = vand.u32 2147483648, %v6390_v49 }
 0x1ec   : > { %2806 = vmatpush1.msra.mxu0 %v2477_v19  ;;  %2876 = vmatprep.subr.mxu1 %v2542_v25  ;;  %v2579_v19 = vld [vmem:[%s7546_s1 + $0xf70] sm:$0xff]  ;;  %v2081_v25 = vsel %vm2080_vm6, %v6390_v49, %v2079_v23  ;;  %v2172_v23 = vld [vmem:[%s7546_s1 + $0x2b8] sm:$0xff] }
 0x1ed   : > { %2807 = vmatprep.subr.mxu0 %v2476_v26  ;;  %2877 = vmatpush1.msra.mxu1 %v2541_v31  ;;  %v2578_v26 = vld [vmem:[%s7546_s1 + $0xf68] sm:$0xff]  ;;  %v2512_v31 = vld [vmem:[%s7546_s1 + $0xd58] sm:$0xff]  ;;  %v2575_v49 = vld [vmem:[%s7546_s1 + $0xf50] sm:$0xff] }
 0x1ee   : > { %2808 = vmatpush1.msra.mxu0 %v2475_v32  ;;  %2878 = vmatprep.subr.mxu1 %v2540_v37  ;;  %v2577_v32 = vld [vmem:[%s7546_s1 + $0xf60] sm:$0xff]  ;;  %v2511_v37 = vld [vmem:[%s7546_s1 + $0xd50] sm:$0xff] }
 0x1ef   : > { %2809 = vmatprep.subr.mxu0 %v2474_v38  ;;  %2879 = vmatpush1.msra.mxu1 %v2539_v43  ;;  %v2576_v38 = vld [vmem:[%s7546_s1 + $0xf58] sm:$0xff]  ;;  %v2510_v43 = vld [vmem:[%s7546_s1 + $0xd48] sm:$0xff] }
 0x1f0   : > { %2810 = vmatpush1.msra.mxu0 %v2473_v44  ;;  %2880 = vmatprep.subr.mxu1 %v2538_v50  ;;  %v2084_v44 = vsel %vm2082_vm7, %v2083_v18, %v2081_v25  ;;  %v2509_v50 = vld [vmem:[%s7546_s1 + $0xd40] sm:$0xff]  ;;  %v2104_v18 = vld [vmem:[%s7546_s1 + $0x98] sm:$0xff]  ;;  %v2167_v25 = vld [vmem:[%s7546_s1 + $0x290] sm:$0xff] }
 0x1f1   : > { %2811 = vmatprep.subr.mxu0 %v2472_v55  ;;  %2881 = vmatpush1.msra.mxu1 %v2537_v56  ;;  %v2574_v55 = vld [vmem:[%s7546_s1 + $0xf48] sm:$0xff]  ;;  %v2508_v56 = vld [vmem:[%s7546_s1 + $0xd38] sm:$0xff] }
 0x1f2   : > { %2812 = vmatpush1.msra.mxu0 %v2471_v58  ;;  %2882 = vmatprep.subr.mxu1 %v2536_v61  ;;  %v2573_v58 = vld [vmem:[%s7546_s1 + $0xf40] sm:$0xff]  ;;  %v2507_v61 = vld [vmem:[%s7546_s1 + $0xd30] sm:$0xff] }
 0x1f3   : > { %2813 = vmatprep.subr.mxu0 %v2470_v62  ;;  %2883 = vmatpush1.msra.mxu1 %v2535_v7  ;;  %v2616_v62 = vcombine.high %v2084_v44, %v2084_v44  ;;  %v2572_v7 = vld [vmem:[%s7546_s1 + $0xf38] sm:$0xff] }
 0x1f4   : > { %2814 = vmatpush1.msra.mxu0 %v2469_v4  ;;  %2884 = vmatprep.subr.mxu1 %v2534_v51  ;;  %v2506_v4 = vld [vmem:[%s7546_s1 + $0xd28] sm:$0xff]  ;;  %v2571_v51 = vld [vmem:[%s7546_s1 + $0xf30] sm:$0xff] }
 0x1f5   : > { %2815 = vmatprep.subr.mxu0 %v2532_v53  ;;  %2885 = vmatpush1.msra.mxu1 %v2533_v0  ;;  %v2505_v53 = vld [vmem:[%s7546_s1 + $0xd20] sm:$0xff]  ;;  %v2623_v0 = vrot.slane %v2084_v44, %v5500_v11  ;;  %v2099_v44 = vld [vmem:[%s7546_s1 + $0x70] sm:$0xff] }
 0x1f6   : > { %2816 = vmatpush2.msra.mxu0 %v2531_v1  ;;  %2886 = vmatprep.subr.mxu1 %v2596_v45  ;;  %v2570_v1 = vld [vmem:[%s7546_s1 + $0xf28] sm:$0xff]  ;;  %v2504_v45 = vld [vmem:[%s7546_s1 + $0xd18] sm:$0xff] }
 0x1f7   : > { %2817 = vmatprep.subr.mxu0 %v2530_v63  ;;  %2887 = vmatpush2.msra.mxu1 %v2595_v5  ;;  %v2569_v63 = vld [vmem:[%s7546_s1 + $0xf20] sm:$0xff]  ;;  %v2503_v5 = vld [vmem:[%s7546_s1 + $0xd10] sm:$0xff] }
 0x1f8   : > { %2818 = vmatpush2.msra.mxu0 %v2529_v6  ;;  %2888 = vmatprep.subr.mxu1 %v2594_v57  ;;  %v2630_v6 = vrot.slane %v2616_v62, %v5500_v11  ;;  %v2568_v57 = vld [vmem:[%s7546_s1 + $0xf18] sm:$0xff] }
 0x1f9   : > { %2819 = vmatprep.subr.mxu0 %v2528_v60  ;;  %2889 = vmatpush2.msra.mxu1 %v2593_v47  ;;  %v2502_v60 = vld [vmem:[%s7546_s1 + $0xd08] sm:$0xff]  ;;  %v2567_v47 = vld [vmem:[%s7546_s1 + $0xf10] sm:$0xff]  ;;  %v2160_v62 = vld [vmem:[%s7546_s1 + $0x258] sm:$0xff] }
 0x1fa   : > { %2820 = vmatpush2.msra.mxu0 %v2527_v27  ;;  %2890 = vmatprep.subr.mxu1 %v2592_v3  ;;  %v2501_v27 = vld [vmem:[%s7546_s1 + $0xd00] sm:$0xff]  ;;  %v2631_v3 = vcombine.high %v2623_v0, %v2623_v0 }
 0x1fb   : > { %2821 = vmatprep.subr.mxu0 %v2526_v46  ;;  %2891 = vmatpush2.msra.mxu1 %v2591_v15  ;;  %v2566_v46 = vld [vmem:[%s7546_s1 + $0xf08] sm:$0xff]  ;;  %v2565_v15 = vld [vmem:[%s7546_s1 + $0xf00] sm:$0xff] }
 0x1fc   : > { %2822 = vmatpush2.msra.mxu0 %v2525_v17  ;;  %2892 = vmatprep.subr.mxu1 %v2590_v48  ;;  %v2632_v17 = vcombine.high %v2630_v6, %v2630_v6  ;;  %v2116_v48 = vld [vmem:[%s7546_s1 + $0xf8] sm:$0xff] }
 0x1fd   : > { %2823 = vmatprep.subr.mxu0 %v2524_v39  ;;  %2893 = vmatpush2.msra.mxu1 %v2589_v41  ;;  %v2180_v39 = vld [vmem:[%s7546_s1 + $0x2f8] sm:$0xff]  ;;  %v2115_v41 = vld [vmem:[%s7546_s1 + $0xf0] sm:$0xff] }
 0x1fe   : > { %2824 = vmatpush2.msra.mxu0 %v2523_v52  ;;  %2894 = vmatprep.subr.mxu1 %v2588_v28  ;;  %v2179_v52 = vld [vmem:[%s7546_s1 + $0x2f0] sm:$0xff]  ;;  %v2114_v28 = vld [vmem:[%s7546_s1 + $0xe8] sm:$0xff] }
 0x1ff   : > { %2825 = vmatprep.subr.mxu0 %v2522_v36  ;;  %2895 = vmatpush2.msra.mxu1 %v2587_v21  ;;  %v2178_v36 = vld [vmem:[%s7546_s1 + $0x2e8] sm:$0xff]  ;;  %v2113_v21 = vld [vmem:[%s7546_s1 + $0xe0] sm:$0xff] }
 0x200   : > { %2826 = vmatpush2.msra.mxu0 %v2521_v34  ;;  %2896 = vmatprep.subr.mxu1 %v2586_v24  ;;  %v2177_v34 = vld [vmem:[%s7546_s1 + $0x2e0] sm:$0xff]  ;;  %v2176_v24 = vld [vmem:[%s7546_s1 + $0x2d8] sm:$0xff] }
 0x201   : > { %2827 = vmatprep.subr.mxu0 %v2520_v9  ;;  %2897 = vmatpush2.msra.mxu1 %v2585_v10  ;;  %v2111_v9 = vld [vmem:[%s7546_s1 + $0xd0] sm:$0xff] }
 0x202   : > { %2828 = vmatpush2.msra.mxu0 %v2519_v33  ;;  %2898 = vmatprep.subr.mxu1 %v2584_v42  ;;  %v2175_v10 = vld [vmem:[%s7546_s1 + $0x2d0] sm:$0xff]  ;;  %v2110_v33 = vld [vmem:[%s7546_s1 + $0xc8] sm:$0xff] }
 0x203   : > { %2829 = vmatprep.subr.mxu0 %v2518_v8  ;;  %2899 = vmatpush2.msra.mxu1 %v2583_v2  ;;  %v2174_v42 = vld [vmem:[%s7546_s1 + $0x2c8] sm:$0xff]  ;;  %v2109_v8 = vld [vmem:[%s7546_s1 + $0xc0] sm:$0xff] }
 0x204   : > { %2830 = vmatpush2.msra.mxu0 %v2517_v35  ;;  %2900 = vmatprep.subr.mxu1 %v2582_v29  ;;  %v2173_v2 = vld [vmem:[%s7546_s1 + $0x2c0] sm:$0xff]  ;;  %v2108_v35 = vld [vmem:[%s7546_s1 + $0xb8] sm:$0xff]  ;;  %v2107_v29 = vld [vmem:[%s7546_s1 + $0xb0] sm:$0xff] }
 0x205   : > { %2831 = vmatprep.subr.mxu0 %v2516_v30  ;;  %2901 = vmatpush2.msra.mxu1 %v2581_v40  ;;  %v2171_v30 = vld [vmem:[%s7546_s1 + $0x2b0] sm:$0xff]  ;;  %v2106_v40 = vld [vmem:[%s7546_s1 + $0xa8] sm:$0xff] }
 0x206   : > { %2832 = vmatpush2.msra.mxu0 %v2515_v54  ;;  %2902 = vmatprep.subr.mxu1 %v2580_v12  ;;  %v2170_v54 = vld [vmem:[%s7546_s1 + $0x2a8] sm:$0xff]  ;;  %v2105_v12 = vld [vmem:[%s7546_s1 + $0xa0] sm:$0xff] }
 0x207   : > { %2833 = vmatprep.subr.mxu0 %v2514_v13  ;;  %2903 = vmatpush2.msra.mxu1 %v2579_v19  ;;  %v2169_v13 = vld [vmem:[%s7546_s1 + $0x2a0] sm:$0xff]  ;;  %v2168_v19 = vld [vmem:[%s7546_s1 + $0x298] sm:$0xff] }
 0x208   : > { %2834 = vmatpush2.msra.mxu0 %v2513_v20  ;;  %2904 = vmatprep.subr.mxu1 %v2578_v26  ;;  %v2103_v20 = vld [vmem:[%s7546_s1 + $0x90] sm:$0xff]  ;;  %v2102_v26 = vld [vmem:[%s7546_s1 + $0x88] sm:$0xff] }
 0x209   : > { %2835 = vmatprep.subr.mxu0 %v2512_v31  ;;  %2905 = vmatpush2.msra.mxu1 %v2577_v32  ;;  %v2166_v31 = vld [vmem:[%s7546_s1 + $0x288] sm:$0xff]  ;;  %v2101_v32 = vld [vmem:[%s7546_s1 + $0x80] sm:$0xff] }
 0x20a   : > { %2836 = vmatpush2.msra.mxu0 %v2511_v37  ;;  %2906 = vmatprep.subr.mxu1 %v2576_v38  ;;  %v2165_v37 = vld [vmem:[%s7546_s1 + $0x280] sm:$0xff]  ;;  %v2100_v38 = vld [vmem:[%s7546_s1 + $0x78] sm:$0xff] }
 0x20b   : > { %2837 = vmatprep.subr.mxu0 %v2510_v43  ;;  %2907 = vmatpush2.msra.mxu1 %v2575_v49  ;;  %v2164_v43 = vld [vmem:[%s7546_s1 + $0x278] sm:$0xff]  ;;  %v2163_v49 = vld [vmem:[%s7546_s1 + $0x270] sm:$0xff] }
 0x20c   : > { %2838 = vmatpush2.msra.mxu0 %v2509_v50  ;;  %2908 = vmatprep.subr.mxu1 %v2574_v55  ;;  %v2098_v50 = vld [vmem:[%s7546_s1 + $0x68] sm:$0xff] }
 0x20d   : > { %2839 = vmatprep.subr.mxu0 %v2508_v56  ;;  %2909 = vmatpush2.msra.mxu1 %v2573_v58  ;;  %v2162_v55 = vld [vmem:[%s7546_s1 + $0x268] sm:$0xff]  ;;  %v2097_v56 = vld [vmem:[%s7546_s1 + $0x60] sm:$0xff] }
 0x20e   : > { %2840 = vmatpush2.msra.mxu0 %v2507_v61  ;;  %2910 = vmatprep.subr.mxu1 %v2572_v7  ;;  %v2161_v58 = vld [vmem:[%s7546_s1 + $0x260] sm:$0xff]  ;;  %v2096_v61 = vld [vmem:[%s7546_s1 + $0x58] sm:$0xff]  ;;  %v2095_v7 = vld [vmem:[%s7546_s1 + $0x50] sm:$0xff] }
 0x20f   : > { %2841 = vmatprep.subr.mxu0 %v2506_v4  ;;  %2911 = vmatpush2.msra.mxu1 %v2571_v51  ;;  %v2159_v4 = vld [vmem:[%s7546_s1 + $0x250] sm:$0xff]  ;;  %v2094_v51 = vld [vmem:[%s7546_s1 + $0x48] sm:$0xff] }
 0x210   : > { %2842 = vmatpush2.msra.mxu0 %v2505_v53  ;;  %2912 = vmatprep.subr.mxu1 %v2570_v1  ;;  %v2158_v53 = vld [vmem:[%s7546_s1 + $0x248] sm:$0xff]  ;;  %v2157_v1 = vld [vmem:[%s7546_s1 + $0x240] sm:$0xff] }
 0x211   : > { %2843 = vmatprep.subr.mxu0 %v2504_v45  ;;  %2913 = vmatpush2.msra.mxu1 %v2569_v63  ;;  %v2092_v45 = vld [vmem:[%s7546_s1 + $0x38] sm:$0xff] }
 0x212   : > { %2844 = vmatpush2.msra.mxu0 %v2503_v5  ;;  %2914 = vmatprep.subr.mxu1 %v2568_v57  ;;  %v2156_v63 = vld [vmem:[%s7546_s1 + $0x238] sm:$0xff]  ;;  %v2091_v5 = vld [vmem:[%s7546_s1 + $0x30] sm:$0xff]  ;;  %v2090_v57 = vld [vmem:[%s7546_s1 + $0x28] sm:$0xff] }
 0x213   : > { %2845 = vmatprep.subr.mxu0 %v2502_v60  ;;  %2915 = vmatpush2.msra.mxu1 %v2567_v47  ;;  %v2154_v60 = vld [vmem:[%s7546_s1 + $0x228] sm:$0xff]  ;;  %v2089_v47 = vld [vmem:[%s7546_s1 + $0x20] sm:$0xff] }
 0x214   : > { %2846 = vmatpush2.msra.mxu0 %v2501_v27  ;;  %2916 = vmatprep.subr.mxu1 %v2566_v46  ;;  %v2153_v27 = vld [vmem:[%s7546_s1 + $0x220] sm:$0xff]  ;;  %v2152_v46 = vld [vmem:[%s7546_s1 + $0x218] sm:$0xff] }
 0x215   : > { %2847 = vmatprep.mubr.f32.mxu0 %v2631_v3  ;;  %2917 = vmatpush2.msra.mxu1 %v2565_v15  ;;  %v2088_v3 = vld [vmem:[%s7546_s1 + $0x18] sm:$0xff]  ;;  %v2087_v15 = vld [vmem:[%s7546_s1 + $0x10] sm:$0xff] }
 0x216   : > { %2848 = vmatmul.mubr.f32.vlgmr.msra.gmra.mxu0 %v2623_v0  ;;  %2918 = vmatprep.mubr.f32.mxu1 %v2632_v17  ;;  %v2093_v0 = vld [vmem:[%s7546_s1 + $0x40] sm:$0xff]  ;;  %v2151_v17 = vld [vmem:[%s7546_s1 + $0x210] sm:$0xff] }
 0x217   : > { %2969 = vmatprep.subr.mxu0 %v2116_v48  ;;  %3040 = vmatprep.subr.mxu1 %v2180_v39  ;;  %v2086_v48 = vld [vmem:[%s7546_s1 + $0x8] sm:$0xff] }
 0x218   : > { %2919 = vmatmul.mubr.f32.vlgmr.msra.gmra.mxu1 %v2630_v6  ;;  %2970 = vmatpush1.msra.mxu0 %v2115_v41  ;;  %v2155_v6 = vld [vmem:[%s7546_s1 + $0x230] sm:$0xff]  ;;  %v2150_v39 = vld [vmem:[%s7546_s1 + $0x208] sm:$0xff]  ;;  %v2085_v41 = vld [vmem:[%s7546_s1] sm:$0xff] }
 0x219   : > { %3041 = vmatpush1.msra.mxu1 %v2179_v52  ;;  %2971 = vmatprep.subr.mxu0 %v2114_v28  ;;  %v2149_v52 = vld [vmem:[%s7546_s1 + $0x200] sm:$0xff]  ;;  %v2148_v28 = vld [vmem:[%s7546_s1 + $0x1f8] sm:$0xff] }
 0x21a   : > { %3042 = vmatprep.subr.mxu1 %v2178_v36  ;;  %2972 = vmatpush1.msra.mxu0 %v2113_v21  ;;  %v2212_v36 = vld [vmem:[%s7546_s1 + $0x3f8] sm:$0xff]  ;;  %v2147_v21 = vld [vmem:[%s7546_s1 + $0x1f0] sm:$0xff] }
 0x21b   : > { %3043 = vmatpush1.msra.mxu1 %v2177_v34  ;;  %2973 = vmatprep.subr.mxu0 %v2112_v16  ;;  %v2211_v34 = vld [vmem:[%s7546_s1 + $0x3f0] sm:$0xff]  ;;  %v2146_v16 = vld [vmem:[%s7546_s1 + $0x1e8] sm:$0xff] }
 0x21c   : > { %3044 = vmatprep.subr.mxu1 %v2176_v24  ;;  %2974 = vmatpush1.msra.mxu0 %v2111_v9  ;;  %v2210_v24 = vld [vmem:[%s7546_s1 + $0x3e8] sm:$0xff]  ;;  %v2145_v9 = vld [vmem:[%s7546_s1 + $0x1e0] sm:$0xff] }
 0x21d   : > { %3045 = vmatpush1.msra.mxu1 %v2175_v10  ;;  %2975 = vmatprep.subr.mxu0 %v2110_v33  ;;  %v2209_v10 = vld [vmem:[%s7546_s1 + $0x3e0] sm:$0xff]  ;;  %v2144_v33 = vld [vmem:[%s7546_s1 + $0x1d8] sm:$0xff] }
 0x21e   : > { %3046 = vmatprep.subr.mxu1 %v2174_v42  ;;  %2976 = vmatpush1.msra.mxu0 %v2109_v8  ;;  %v2208_v42 = vld [vmem:[%s7546_s1 + $0x3d8] sm:$0xff]  ;;  %v2143_v8 = vld [vmem:[%s7546_s1 + $0x1d0] sm:$0xff] }
 0x21f   : > { %3047 = vmatpush1.msra.mxu1 %v2173_v2  ;;  %2977 = vmatprep.subr.mxu0 %v2108_v35  ;;  %v2207_v2 = vld [vmem:[%s7546_s1 + $0x3d0] sm:$0xff]  ;;  %v2142_v35 = vld [vmem:[%s7546_s1 + $0x1c8] sm:$0xff] }
 0x220   : > { %3048 = vmatprep.subr.mxu1 %v2172_v23  ;;  %2978 = vmatpush1.msra.mxu0 %v2107_v29  ;;  %v2206_v23 = vld [vmem:[%s7546_s1 + $0x3c8] sm:$0xff]  ;;  %v2141_v29 = vld [vmem:[%s7546_s1 + $0x1c0] sm:$0xff] }
 0x221   : > { %3049 = vmatpush1.msra.mxu1 %v2171_v30  ;;  %2979 = vmatprep.subr.mxu0 %v2106_v40  ;;  %v2205_v30 = vld [vmem:[%s7546_s1 + $0x3c0] sm:$0xff]  ;;  %v2140_v40 = vld [vmem:[%s7546_s1 + $0x1b8] sm:$0xff] }
 0x222   : > { %3050 = vmatprep.subr.mxu1 %v2170_v54  ;;  %2980 = vmatpush1.msra.mxu0 %v2105_v12  ;;  %v2204_v54 = vld [vmem:[%s7546_s1 + $0x3b8] sm:$0xff]  ;;  %v2139_v12 = vld [vmem:[%s7546_s1 + $0x1b0] sm:$0xff] }
 0x223   : > { %3051 = vmatpush1.msra.mxu1 %v2169_v13  ;;  %2981 = vmatprep.subr.mxu0 %v2104_v18  ;;  %v2203_v13 = vld [vmem:[%s7546_s1 + $0x3b0] sm:$0xff]  ;;  %v2138_v18 = vld [vmem:[%s7546_s1 + $0x1a8] sm:$0xff] }
 0x224   : > { %3052 = vmatprep.subr.mxu1 %v2168_v19  ;;  %2982 = vmatpush1.msra.mxu0 %v2103_v20  ;;  %v2202_v19 = vld [vmem:[%s7546_s1 + $0x3a8] sm:$0xff]  ;;  %v2137_v20 = vld [vmem:[%s7546_s1 + $0x1a0] sm:$0xff] }
 0x225   : > { %3053 = vmatpush1.msra.mxu1 %v2167_v25  ;;  %2983 = vmatprep.subr.mxu0 %v2102_v26  ;;  %v2201_v25 = vld [vmem:[%s7546_s1 + $0x3a0] sm:$0xff]  ;;  %v2136_v26 = vld [vmem:[%s7546_s1 + $0x198] sm:$0xff] }
 0x226   : > { %3054 = vmatprep.subr.mxu1 %v2166_v31  ;;  %2984 = vmatpush1.msra.mxu0 %v2101_v32  ;;  %v2200_v31 = vld [vmem:[%s7546_s1 + $0x398] sm:$0xff]  ;;  %v2135_v32 = vld [vmem:[%s7546_s1 + $0x190] sm:$0xff] }
 0x227   : > { %3055 = vmatpush1.msra.mxu1 %v2165_v37  ;;  %2985 = vmatprep.subr.mxu0 %v2100_v38  ;;  %v2199_v37 = vld [vmem:[%s7546_s1 + $0x390] sm:$0xff]  ;;  %v2134_v38 = vld [vmem:[%s7546_s1 + $0x188] sm:$0xff] }
 0x228   : > { %3056 = vmatprep.subr.mxu1 %v2164_v43  ;;  %2986 = vmatpush1.msra.mxu0 %v2099_v44  ;;  %v2198_v43 = vld [vmem:[%s7546_s1 + $0x388] sm:$0xff]  ;;  %v2133_v44 = vld [vmem:[%s7546_s1 + $0x180] sm:$0xff] }
 0x229   : > { %3057 = vmatpush1.msra.mxu1 %v2163_v49  ;;  %2987 = vmatprep.subr.mxu0 %v2098_v50  ;;  %v2197_v49 = vld [vmem:[%s7546_s1 + $0x380] sm:$0xff]  ;;  %v2132_v50 = vld [vmem:[%s7546_s1 + $0x178] sm:$0xff] }
 0x22a   : > { %3058 = vmatprep.subr.mxu1 %v2162_v55  ;;  %2988 = vmatpush1.msra.mxu0 %v2097_v56  ;;  %v2196_v55 = vld [vmem:[%s7546_s1 + $0x378] sm:$0xff]  ;;  %v2131_v56 = vld [vmem:[%s7546_s1 + $0x170] sm:$0xff] }
 0x22b   : > { %3059 = vmatpush1.msra.mxu1 %v2161_v58  ;;  %2989 = vmatprep.subr.mxu0 %v2096_v61  ;;  %v2195_v58 = vld [vmem:[%s7546_s1 + $0x370] sm:$0xff]  ;;  %v2130_v61 = vld [vmem:[%s7546_s1 + $0x168] sm:$0xff] }
 0x22c   : > { %3060 = vmatprep.subr.mxu1 %v2160_v62  ;;  %2990 = vmatpush1.msra.mxu0 %v2095_v7  ;;  %v2194_v62 = vld [vmem:[%s7546_s1 + $0x368] sm:$0xff]  ;;  %v2129_v7 = vld [vmem:[%s7546_s1 + $0x160] sm:$0xff] }
 0x22d   : > { %3061 = vmatpush1.msra.mxu1 %v2159_v4  ;;  %2991 = vmatprep.subr.mxu0 %v2094_v51  ;;  %v2193_v4 = vld [vmem:[%s7546_s1 + $0x360] sm:$0xff]  ;;  %v2128_v51 = vld [vmem:[%s7546_s1 + $0x158] sm:$0xff] }
 0x22e   : > { %3062 = vmatprep.subr.mxu1 %v2158_v53  ;;  %2992 = vmatpush1.msra.mxu0 %v2093_v0  ;;  %v2192_v53 = vld [vmem:[%s7546_s1 + $0x358] sm:$0xff]  ;;  %v2127_v0 = vld [vmem:[%s7546_s1 + $0x150] sm:$0xff] }
 0x22f   : > { %3063 = vmatpush1.msra.mxu1 %v2157_v1  ;;  %2993 = vmatprep.subr.mxu0 %v2092_v45  ;;  %v2191_v1 = vld [vmem:[%s7546_s1 + $0x350] sm:$0xff]  ;;  %v2126_v45 = vld [vmem:[%s7546_s1 + $0x148] sm:$0xff] }
 0x230   : > { %3064 = vmatprep.subr.mxu1 %v2156_v63  ;;  %2994 = vmatpush1.msra.mxu0 %v2091_v5  ;;  %v2190_v63 = vld [vmem:[%s7546_s1 + $0x348] sm:$0xff]  ;;  %v2125_v5 = vld [vmem:[%s7546_s1 + $0x140] sm:$0xff] }
 0x231   : > { %3065 = vmatpush1.msra.mxu1 %v2155_v6  ;;  %2995 = vmatprep.subr.mxu0 %v2090_v57  ;;  %v2189_v6 = vld [vmem:[%s7546_s1 + $0x340] sm:$0xff]  ;;  %v2124_v57 = vld [vmem:[%s7546_s1 + $0x138] sm:$0xff] }
 0x232   : > { %3066 = vmatprep.subr.mxu1 %v2154_v60  ;;  %2996 = vmatpush1.msra.mxu0 %v2089_v47  ;;  %v2188_v60 = vld [vmem:[%s7546_s1 + $0x338] sm:$0xff]  ;;  %v2927_v47 = vcombine.high %v6110_v14, %v6110_v14 }
 0x233   : > { %3067 = vmatpush1.msra.mxu1 %v2153_v27  ;;  %2997 = vmatprep.subr.mxu0 %v2088_v3  ;;  %v2123_v27 = vld [vmem:[%s7546_s1 + $0x130] sm:$0xff] }
 0x234   : > { %3068 = vmatprep.subr.mxu1 %v2152_v46  ;;  %2998 = vmatpush1.msra.mxu0 %v2087_v15  ;;  %v2187_v3 = vld [vmem:[%s7546_s1 + $0x330] sm:$0xff]  ;;  %v2122_v46 = vld [vmem:[%s7546_s1 + $0x128] sm:$0xff] }
 0x235   : > { %3069 = vmatpush1.msra.mxu1 %v2151_v17  ;;  %2999 = vmatprep.subr.mxu0 %v2086_v48  ;;  %v2186_v15 = vld [vmem:[%s7546_s1 + $0x328] sm:$0xff]  ;;  %v2934_v17 = vrot.slane %v6110_v14, %v5500_v11  ;;  %v2121_v48 = vld [vmem:[%s7546_s1 + $0x120] sm:$0xff]  ;;  %v2184_v14 = vld [vmem:[%s7546_s1 + $0x318] sm:$0xff] }
 0x236   : > { %3070 = vmatprep.subr.mxu1 %v2150_v39  ;;  %3000 = vmatpush1.msra.mxu0 %v2085_v41  ;;  %v2185_v39 = vld [vmem:[%s7546_s1 + $0x320] sm:$0xff]  ;;  %v2120_v41 = vld [vmem:[%s7546_s1 + $0x118] sm:$0xff] }
 0x237   : > { %3071 = vmatpush1.msra.mxu1 %v2149_v52  ;;  %3001 = vmatprep.subr.mxu0 %v2148_v28  ;;  %v2941_v52 = vrot.slane %v2927_v47, %v5500_v11  ;;  %v2119_v28 = vld [vmem:[%s7546_s1 + $0x110] sm:$0xff] }
 0x238   : > { %3072 = vmatprep.subr.mxu1 %v2212_v36  ;;  %3002 = vmatpush2.msra.mxu0 %v2147_v21  ;;  %v2183_v36 = vld [vmem:[%s7546_s1 + $0x310] sm:$0xff]  ;;  %v2118_v21 = vld [vmem:[%s7546_s1 + $0x108] sm:$0xff] }
 0x239   : > { %3073 = vmatpush2.msra.mxu1 %v2211_v34  ;;  %3003 = vmatprep.subr.mxu0 %v2146_v16  ;;  %v2182_v34 = vld [vmem:[%s7546_s1 + $0x308] sm:$0xff]  ;;  %v2942_v16 = vcombine.high %v2934_v17, %v2934_v17  ;;  %v2223_v47 = vld [vmem:[%s7546_s1 + $0x450] sm:$0xff] }
 0x23a   : > { %3074 = vmatprep.subr.mxu1 %v2210_v24  ;;  %3004 = vmatpush2.msra.mxu0 %v2145_v9  ;;  %v2117_v24 = vld [vmem:[%s7546_s1 + $0x100] sm:$0xff] }
 0x23b   : > { %3075 = vmatpush2.msra.mxu1 %v2209_v10  ;;  %3005 = vmatprep.subr.mxu0 %v2144_v33  ;;  %v2181_v9 = vld [vmem:[%s7546_s1 + $0x300] sm:$0xff]  ;;  %v2943_v10 = vcombine.high %v2941_v52, %v2941_v52  ;;  %v2244_v33 = vld [vmem:[%s7546_s1 + $0x4f8] sm:$0xff] }
 0x23c   : > { %3076 = vmatprep.subr.mxu1 %v2208_v42  ;;  %3006 = vmatpush2.msra.mxu0 %v2143_v8  ;;  %v2308_v42 = vld [vmem:[%s7546_s1 + $0x6f8] sm:$0xff]  ;;  %v2243_v8 = vld [vmem:[%s7546_s1 + $0x4f0] sm:$0xff] }
 0x23d   : > { %3077 = vmatpush2.msra.mxu1 %v2207_v2  ;;  %3007 = vmatprep.subr.mxu0 %v2142_v35  ;;  %v2307_v2 = vld [vmem:[%s7546_s1 + $0x6f0] sm:$0xff]  ;;  %v2242_v35 = vld [vmem:[%s7546_s1 + $0x4e8] sm:$0xff] }
 0x23e   : > { %3078 = vmatprep.subr.mxu1 %v2206_v23  ;;  %3008 = vmatpush2.msra.mxu0 %v2141_v29  ;;  %v2306_v23 = vld [vmem:[%s7546_s1 + $0x6e8] sm:$0xff]  ;;  %v2241_v29 = vld [vmem:[%s7546_s1 + $0x4e0] sm:$0xff] }
 0x23f   : > { %3079 = vmatpush2.msra.mxu1 %v2205_v30  ;;  %3009 = vmatprep.subr.mxu0 %v2140_v40  ;;  %v2305_v30 = vld [vmem:[%s7546_s1 + $0x6e0] sm:$0xff]  ;;  %v2240_v40 = vld [vmem:[%s7546_s1 + $0x4d8] sm:$0xff] }
 0x240   : > { %3080 = vmatprep.subr.mxu1 %v2204_v54  ;;  %3010 = vmatpush2.msra.mxu0 %v2139_v12  ;;  %v2304_v54 = vld [vmem:[%s7546_s1 + $0x6d8] sm:$0xff]  ;;  %v2239_v12 = vld [vmem:[%s7546_s1 + $0x4d0] sm:$0xff] }
 0x241   : > { %3081 = vmatpush2.msra.mxu1 %v2203_v13  ;;  %3011 = vmatprep.subr.mxu0 %v2138_v18  ;;  %v2303_v13 = vld [vmem:[%s7546_s1 + $0x6d0] sm:$0xff]  ;;  %v2238_v18 = vld [vmem:[%s7546_s1 + $0x4c8] sm:$0xff] }
 0x242   : > { %3082 = vmatprep.subr.mxu1 %v2202_v19  ;;  %3012 = vmatpush2.msra.mxu0 %v2137_v20  ;;  %v2302_v19 = vld [vmem:[%s7546_s1 + $0x6c8] sm:$0xff]  ;;  %v2237_v20 = vld [vmem:[%s7546_s1 + $0x4c0] sm:$0xff] }
 0x243   : > { %3083 = vmatpush2.msra.mxu1 %v2201_v25  ;;  %3013 = vmatprep.subr.mxu0 %v2136_v26  ;;  %v2301_v25 = vld [vmem:[%s7546_s1 + $0x6c0] sm:$0xff]  ;;  %v2236_v26 = vld [vmem:[%s7546_s1 + $0x4b8] sm:$0xff] }
 0x244   : > { %3084 = vmatprep.subr.mxu1 %v2200_v31  ;;  %3014 = vmatpush2.msra.mxu0 %v2135_v32  ;;  %v2300_v31 = vld [vmem:[%s7546_s1 + $0x6b8] sm:$0xff]  ;;  %v2235_v32 = vld [vmem:[%s7546_s1 + $0x4b0] sm:$0xff] }
 0x245   : > { %3085 = vmatpush2.msra.mxu1 %v2199_v37  ;;  %3015 = vmatprep.subr.mxu0 %v2134_v38  ;;  %v2299_v37 = vld [vmem:[%s7546_s1 + $0x6b0] sm:$0xff]  ;;  %v2234_v38 = vld [vmem:[%s7546_s1 + $0x4a8] sm:$0xff] }
 0x246   : > { %3086 = vmatprep.subr.mxu1 %v2198_v43  ;;  %3016 = vmatpush2.msra.mxu0 %v2133_v44  ;;  %v2298_v43 = vld [vmem:[%s7546_s1 + $0x6a8] sm:$0xff]  ;;  %v2233_v44 = vld [vmem:[%s7546_s1 + $0x4a0] sm:$0xff] }
 0x247   : > { %3087 = vmatpush2.msra.mxu1 %v2197_v49  ;;  %3017 = vmatprep.subr.mxu0 %v2132_v50  ;;  %v2297_v49 = vld [vmem:[%s7546_s1 + $0x6a0] sm:$0xff]  ;;  %v2232_v50 = vld [vmem:[%s7546_s1 + $0x498] sm:$0xff] }
 0x248   : > { %3088 = vmatprep.subr.mxu1 %v2196_v55  ;;  %3018 = vmatpush2.msra.mxu0 %v2131_v56  ;;  %v2296_v55 = vld [vmem:[%s7546_s1 + $0x698] sm:$0xff]  ;;  %v2231_v56 = vld [vmem:[%s7546_s1 + $0x490] sm:$0xff] }
 0x249   : > { %3089 = vmatpush2.msra.mxu1 %v2195_v58  ;;  %3019 = vmatprep.subr.mxu0 %v2130_v61  ;;  %v2295_v58 = vld [vmem:[%s7546_s1 + $0x690] sm:$0xff]  ;;  %v2230_v61 = vld [vmem:[%s7546_s1 + $0x488] sm:$0xff] }
 0x24a   : > { %3090 = vmatprep.subr.mxu1 %v2194_v62  ;;  %3020 = vmatpush2.msra.mxu0 %v2129_v7  ;;  %v2294_v62 = vld [vmem:[%s7546_s1 + $0x688] sm:$0xff]  ;;  %v2229_v7 = vld [vmem:[%s7546_s1 + $0x480] sm:$0xff] }
 0x24b   : > { %3091 = vmatpush2.msra.mxu1 %v2193_v4  ;;  %3021 = vmatprep.subr.mxu0 %v2128_v51  ;;  %v2293_v4 = vld [vmem:[%s7546_s1 + $0x680] sm:$0xff]  ;;  %v2228_v51 = vld [vmem:[%s7546_s1 + $0x478] sm:$0xff] }
 0x24c   : > { %3092 = vmatprep.subr.mxu1 %v2192_v53  ;;  %3022 = vmatpush2.msra.mxu0 %v2127_v0  ;;  %v2292_v53 = vld [vmem:[%s7546_s1 + $0x678] sm:$0xff]  ;;  %v2227_v0 = vld [vmem:[%s7546_s1 + $0x470] sm:$0xff] }
 0x24d   : > { %3093 = vmatpush2.msra.mxu1 %v2191_v1  ;;  %3023 = vmatprep.subr.mxu0 %v2126_v45  ;;  %v2291_v1 = vld [vmem:[%s7546_s1 + $0x670] sm:$0xff]  ;;  %v2226_v45 = vld [vmem:[%s7546_s1 + $0x468] sm:$0xff] }
 0x24e   : > { %3094 = vmatprep.subr.mxu1 %v2190_v63  ;;  %3024 = vmatpush2.msra.mxu0 %v2125_v5  ;;  %v2290_v63 = vld [vmem:[%s7546_s1 + $0x668] sm:$0xff]  ;;  %v2225_v5 = vld [vmem:[%s7546_s1 + $0x460] sm:$0xff] }
 0x24f   : > { %3095 = vmatpush2.msra.mxu1 %v2189_v6  ;;  %3025 = vmatprep.subr.mxu0 %v2124_v57  ;;  %v2289_v6 = vld [vmem:[%s7546_s1 + $0x660] sm:$0xff]  ;;  %v2224_v57 = vld [vmem:[%s7546_s1 + $0x458] sm:$0xff] }
 0x250   : > { %3096 = vmatprep.subr.mxu1 %v2188_v60  ;;  %3026 = vmatpush2.msra.mxu0 %v2123_v27  ;;  %v2288_v60 = vld [vmem:[%s7546_s1 + $0x658] sm:$0xff]  ;;  %v2287_v27 = vld [vmem:[%s7546_s1 + $0x650] sm:$0xff] }
 0x251   : > { %3097 = vmatpush2.msra.mxu1 %v2187_v3  ;;  %3027 = vmatprep.subr.mxu0 %v2122_v46  ;;  %v2222_v3 = vld [vmem:[%s7546_s1 + $0x448] sm:$0xff] }
 0x252   : > { %3098 = vmatprep.subr.mxu1 %v2186_v15  ;;  %3028 = vmatpush2.msra.mxu0 %v2121_v48  ;;  %v2286_v46 = vld [vmem:[%s7546_s1 + $0x648] sm:$0xff]  ;;  %v2221_v15 = vld [vmem:[%s7546_s1 + $0x440] sm:$0xff]  ;;  %v2220_v48 = vld [vmem:[%s7546_s1 + $0x438] sm:$0xff] }
 0x253   : > { %3099 = vmatpush2.msra.mxu1 %v2185_v39  ;;  %3029 = vmatprep.subr.mxu0 %v2120_v41  ;;  %v2284_v39 = vld [vmem:[%s7546_s1 + $0x638] sm:$0xff]  ;;  %v2219_v41 = vld [vmem:[%s7546_s1 + $0x430] sm:$0xff] }
 0x254   : > { %3100 = vmatprep.subr.mxu1 %v2184_v14  ;;  %3030 = vmatpush2.msra.mxu0 %v2119_v28  ;;  %v2283_v14 = vld [vmem:[%s7546_s1 + $0x630] sm:$0xff]  ;;  %v2282_v28 = vld [vmem:[%s7546_s1 + $0x628] sm:$0xff] }
 0x255   : > { %3101 = vmatpush2.msra.mxu1 %v2183_v36  ;;  %3031 = vmatprep.subr.mxu0 %v2118_v21  ;;  %v2217_v36 = vld [vmem:[%s7546_s1 + $0x420] sm:$0xff] }
 0x256   : > { %3102 = vmatprep.subr.mxu1 %v2182_v34  ;;  %3032 = vmatpush2.msra.mxu0 %v2117_v24  ;;  %v2281_v21 = vld [vmem:[%s7546_s1 + $0x620] sm:$0xff]  ;;  %v2216_v34 = vld [vmem:[%s7546_s1 + $0x418] sm:$0xff]  ;;  %v2215_v24 = vld [vmem:[%s7546_s1 + $0x410] sm:$0xff] }
 0x257   : > { %3033 = vmatprep.mubr.f32.mxu0 %v2942_v16  ;;  %3103 = vmatpush2.msra.mxu1 %v2181_v9  ;;  %v2280_v16 = vld [vmem:[%s7546_s1 + $0x618] sm:$0xff]  ;;  %v2279_v9 = vld [vmem:[%s7546_s1 + $0x610] sm:$0xff] }
 0x258   : > { %3034 = vmatmul.mubr.f32.vlgmr.msra.gmra.mxu0 %v2934_v17  ;;  %3104 = vmatprep.mubr.f32.mxu1 %v2943_v10  ;;  %v2285_v17 = vld [vmem:[%s7546_s1 + $0x640] sm:$0xff]  ;;  %v2214_v10 = vld [vmem:[%s7546_s1 + $0x408] sm:$0xff] }
 0x259   : > { %3111 = vmatprep.subr.mxu0 %v2244_v33  ;;  %3182 = vmatprep.subr.mxu1 %v2308_v42  ;;  %v2278_v33 = vld [vmem:[%s7546_s1 + $0x608] sm:$0xff]  ;;  %v2213_v42 = vld [vmem:[%s7546_s1 + $0x400] sm:$0xff] }
 0x25a   : > { %3105 = vmatmul.mubr.f32.vlgmr.msra.gmra.mxu1 %v2941_v52  ;;  %3112 = vmatpush1.msra.mxu0 %v2243_v8  ;;  %v2218_v52 = vld [vmem:[%s7546_s1 + $0x428] sm:$0xff]  ;;  %v2277_v8 = vld [vmem:[%s7546_s1 + $0x600] sm:$0xff] }
 0x25b   : > { %3183 = vmatpush1.msra.mxu1 %v2307_v2  ;;  %3113 = vmatprep.subr.mxu0 %v2242_v35  ;;  %v2276_v2 = vld [vmem:[%s7546_s1 + $0x5f8] sm:$0xff] }
 0x25c   : > { %3184 = vmatprep.subr.mxu1 %v2306_v23  ;;  %3114 = vmatpush1.msra.mxu0 %v2241_v29  ;;  %v2340_v35 = vld [vmem:[%s7546_s1 + $0x7f8] sm:$0xff]  ;;  %v2275_v23 = vld [vmem:[%s7546_s1 + $0x5f0] sm:$0xff] }
 0x25d   : > { %3185 = vmatpush1.msra.mxu1 %v2305_v30  ;;  %3115 = vmatprep.subr.mxu0 %v2240_v40  ;;  %v2339_v29 = vld [vmem:[%s7546_s1 + $0x7f0] sm:$0xff]  ;;  %v2274_v30 = vld [vmem:[%s7546_s1 + $0x5e8] sm:$0xff] }
 0x25e   : > { %3186 = vmatprep.subr.mxu1 %v2304_v54  ;;  %3116 = vmatpush1.msra.mxu0 %v2239_v12  ;;  %v2338_v40 = vld [vmem:[%s7546_s1 + $0x7e8] sm:$0xff]  ;;  %v2273_v54 = vld [vmem:[%s7546_s1 + $0x5e0] sm:$0xff] }
 0x25f   : > { %3187 = vmatpush1.msra.mxu1 %v2303_v13  ;;  %3117 = vmatprep.subr.mxu0 %v2238_v18  ;;  %v2337_v12 = vld [vmem:[%s7546_s1 + $0x7e0] sm:$0xff]  ;;  %v2272_v13 = vld [vmem:[%s7546_s1 + $0x5d8] sm:$0xff] }
 0x260   : > { %3188 = vmatprep.subr.mxu1 %v2302_v19  ;;  %3118 = vmatpush1.msra.mxu0 %v2237_v20  ;;  %v2336_v18 = vld [vmem:[%s7546_s1 + $0x7d8] sm:$0xff]  ;;  %v2271_v19 = vld [vmem:[%s7546_s1 + $0x5d0] sm:$0xff] }
 0x261   : > { %3189 = vmatpush1.msra.mxu1 %v2301_v25  ;;  %3119 = vmatprep.subr.mxu0 %v2236_v26  ;;  %v2335_v20 = vld [vmem:[%s7546_s1 + $0x7d0] sm:$0xff]  ;;  %v2270_v25 = vld [vmem:[%s7546_s1 + $0x5c8] sm:$0xff] }
 0x262   : > { %3190 = vmatprep.subr.mxu1 %v2300_v31  ;;  %3120 = vmatpush1.msra.mxu0 %v2235_v32  ;;  %v2334_v26 = vld [vmem:[%s7546_s1 + $0x7c8] sm:$0xff]  ;;  %v2269_v31 = vld [vmem:[%s7546_s1 + $0x5c0] sm:$0xff] }
 0x263   : > { %3191 = vmatpush1.msra.mxu1 %v2299_v37  ;;  %3121 = vmatprep.subr.mxu0 %v2234_v38  ;;  %v2333_v32 = vld [vmem:[%s7546_s1 + $0x7c0] sm:$0xff]  ;;  %v2268_v37 = vld [vmem:[%s7546_s1 + $0x5b8] sm:$0xff] }
 0x264   : > { %3192 = vmatprep.subr.mxu1 %v2298_v43  ;;  %3122 = vmatpush1.msra.mxu0 %v2233_v44  ;;  %v2332_v38 = vld [vmem:[%s7546_s1 + $0x7b8] sm:$0xff]  ;;  %v2267_v43 = vld [vmem:[%s7546_s1 + $0x5b0] sm:$0xff] }
 0x265   : > { %3193 = vmatpush1.msra.mxu1 %v2297_v49  ;;  %3123 = vmatprep.subr.mxu0 %v2232_v50  ;;  %v2331_v44 = vld [vmem:[%s7546_s1 + $0x7b0] sm:$0xff]  ;;  %v2266_v49 = vld [vmem:[%s7546_s1 + $0x5a8] sm:$0xff] }
 0x266   : > { %3194 = vmatprep.subr.mxu1 %v2296_v55  ;;  %3124 = vmatpush1.msra.mxu0 %v2231_v56  ;;  %v2330_v50 = vld [vmem:[%s7546_s1 + $0x7a8] sm:$0xff]  ;;  %v2265_v55 = vld [vmem:[%s7546_s1 + $0x5a0] sm:$0xff] }
 0x267   : > { %3195 = vmatpush1.msra.mxu1 %v2295_v58  ;;  %3125 = vmatprep.subr.mxu0 %v2230_v61  ;;  %v2329_v56 = vld [vmem:[%s7546_s1 + $0x7a0] sm:$0xff]  ;;  %v2264_v58 = vld [vmem:[%s7546_s1 + $0x598] sm:$0xff] }
 0x268   : > { %3196 = vmatprep.subr.mxu1 %v2294_v62  ;;  %3126 = vmatpush1.msra.mxu0 %v2229_v7  ;;  %v2328_v61 = vld [vmem:[%s7546_s1 + $0x798] sm:$0xff]  ;;  %v2263_v62 = vld [vmem:[%s7546_s1 + $0x590] sm:$0xff] }
 0x269   : > { %3197 = vmatpush1.msra.mxu1 %v2293_v4  ;;  %3127 = vmatprep.subr.mxu0 %v2228_v51  ;;  %v2327_v7 = vld [vmem:[%s7546_s1 + $0x790] sm:$0xff]  ;;  %v2262_v4 = vld [vmem:[%s7546_s1 + $0x588] sm:$0xff] }
 0x26a   : > { %3198 = vmatprep.subr.mxu1 %v2292_v53  ;;  %3128 = vmatpush1.msra.mxu0 %v2227_v0  ;;  %v2326_v51 = vld [vmem:[%s7546_s1 + $0x788] sm:$0xff]  ;;  %v2261_v53 = vld [vmem:[%s7546_s1 + $0x580] sm:$0xff] }
 0x26b   : > { %3199 = vmatpush1.msra.mxu1 %v2291_v1  ;;  %3129 = vmatprep.subr.mxu0 %v2226_v45  ;;  %v2325_v0 = vld [vmem:[%s7546_s1 + $0x780] sm:$0xff]  ;;  %v2260_v1 = vld [vmem:[%s7546_s1 + $0x578] sm:$0xff] }
 0x26c   : > { %3200 = vmatprep.subr.mxu1 %v2290_v63  ;;  %3130 = vmatpush1.msra.mxu0 %v2225_v5  ;;  %v2324_v45 = vld [vmem:[%s7546_s1 + $0x778] sm:$0xff]  ;;  %v2259_v63 = vld [vmem:[%s7546_s1 + $0x570] sm:$0xff] }
 0x26d   : > { %3201 = vmatpush1.msra.mxu1 %v2289_v6  ;;  %3131 = vmatprep.subr.mxu0 %v2224_v57  ;;  %v2323_v5 = vld [vmem:[%s7546_s1 + $0x770] sm:$0xff]  ;;  %v2258_v6 = vld [vmem:[%s7546_s1 + $0x568] sm:$0xff] }
 0x26e   : > { %3202 = vmatprep.subr.mxu1 %v2288_v60  ;;  %3132 = vmatpush1.msra.mxu0 %v2223_v47  ;;  %v2322_v57 = vld [vmem:[%s7546_s1 + $0x768] sm:$0xff]  ;;  %v2257_v60 = vld [vmem:[%s7546_s1 + $0x560] sm:$0xff] }
 0x26f   : > { %3203 = vmatpush1.msra.mxu1 %v2287_v27  ;;  %3133 = vmatprep.subr.mxu0 %v2222_v3  ;;  %v2321_v47 = vld [vmem:[%s7546_s1 + $0x760] sm:$0xff]  ;;  %v2256_v27 = vld [vmem:[%s7546_s1 + $0x558] sm:$0xff] }
 0x270   : > { %3204 = vmatprep.subr.mxu1 %v2286_v46  ;;  %3134 = vmatpush1.msra.mxu0 %v2221_v15  ;;  %v2320_v3 = vld [vmem:[%s7546_s1 + $0x758] sm:$0xff]  ;;  %v2255_v46 = vld [vmem:[%s7546_s1 + $0x550] sm:$0xff] }
 0x271   : > { %3205 = vmatpush1.msra.mxu1 %v2285_v17  ;;  %3135 = vmatprep.subr.mxu0 %v2220_v48  ;;  %v2319_v15 = vld [vmem:[%s7546_s1 + $0x750] sm:$0xff]  ;;  %v2254_v17 = vld [vmem:[%s7546_s1 + $0x548] sm:$0xff] }
 0x272   : > { %3206 = vmatprep.subr.mxu1 %v2284_v39  ;;  %3136 = vmatpush1.msra.mxu0 %v2219_v41  ;;  %v2318_v48 = vld [vmem:[%s7546_s1 + $0x748] sm:$0xff]  ;;  %v2253_v39 = vld [vmem:[%s7546_s1 + $0x540] sm:$0xff] }
 0x273   : > { %3207 = vmatpush1.msra.mxu1 %v2283_v14  ;;  %3137 = vmatprep.subr.mxu0 %v2218_v52  ;;  %v2317_v41 = vld [vmem:[%s7546_s1 + $0x740] sm:$0xff]  ;;  %v2944_v14 = vcombine.high %v6290_v22, %v6290_v22  ;;  %v2252_v52 = vld [vmem:[%s7546_s1 + $0x538] sm:$0xff] }
 0x274   : > { %3208 = vmatprep.subr.mxu1 %v2282_v28  ;;  %3138 = vmatpush1.msra.mxu0 %v2217_v36  ;;  %v2316_v28 = vld [vmem:[%s7546_s1 + $0x738] sm:$0xff]  ;;  %v2251_v36 = vld [vmem:[%s7546_s1 + $0x530] sm:$0xff] }
 0x275   : > { %3209 = vmatpush1.msra.mxu1 %v2281_v21  ;;  %3139 = vmatprep.subr.mxu0 %v2216_v34  ;;  %v2315_v21 = vld [vmem:[%s7546_s1 + $0x730] sm:$0xff]  ;;  %v2250_v34 = vld [vmem:[%s7546_s1 + $0x528] sm:$0xff] }
 0x276   : > { %3210 = vmatprep.subr.mxu1 %v2280_v16  ;;  %3140 = vmatpush1.msra.mxu0 %v2215_v24  ;;  %v2314_v16 = vld [vmem:[%s7546_s1 + $0x728] sm:$0xff]  ;;  %v2951_v24 = vrot.slane %v6290_v22, %v5500_v11  ;;  %v2312_v22 = vld [vmem:[%s7546_s1 + $0x718] sm:$0xff] }
 0x277   : > { %3211 = vmatpush1.msra.mxu1 %v2279_v9  ;;  %3141 = vmatprep.subr.mxu0 %v2214_v10  ;;  %v2249_v9 = vld [vmem:[%s7546_s1 + $0x520] sm:$0xff] }
 0x278   : > { %3212 = vmatprep.subr.mxu1 %v2278_v33  ;;  %3142 = vmatpush1.msra.mxu0 %v2213_v42  ;;  %v2313_v10 = vld [vmem:[%s7546_s1 + $0x720] sm:$0xff]  ;;  %v2958_v33 = vrot.slane %v2944_v14, %v5500_v11  ;;  %v2248_v42 = vld [vmem:[%s7546_s1 + $0x518] sm:$0xff]  ;;  %v2311_v11 = vld [vmem:[%s7546_s1 + $0x710] sm:$0xff] }
 0x279   : > { %3213 = vmatpush1.msra.mxu1 %v2277_v8  ;;  %3143 = vmatprep.subr.mxu0 %v2276_v2  ;;  %v2247_v8 = vld [vmem:[%s7546_s1 + $0x510] sm:$0xff]  ;;  %v2246_v2 = vld [vmem:[%s7546_s1 + $0x508] sm:$0xff] }
 0x27a   : > { %3214 = vmatprep.subr.mxu1 %v2340_v35  ;;  %3144 = vmatpush2.msra.mxu0 %v2275_v23  ;;  %v2310_v35 = vld [vmem:[%s7546_s1 + $0x708] sm:$0xff]  ;;  %v2959_v23 = vcombine.high %v2951_v24, %v2951_v24 }
 0x27b   : > { %3215 = vmatpush2.msra.mxu1 %v2339_v29  ;;  %3145 = vmatprep.subr.mxu0 %v2274_v30  ;;  %v2245_v29 = vld [vmem:[%s7546_s1 + $0x500] sm:$0xff]  ;;  %v2960_v30 = vcombine.high %v2958_v33, %v2958_v33 }
 0x27c   : > { %3216 = vmatprep.subr.mxu1 %v2338_v40  ;;  %3146 = vmatpush2.msra.mxu0 %v2273_v54  ;;  %v2309_v40 = vld [vmem:[%s7546_s1 + $0x700] sm:$0xff] }
 0x27d   : > { %3217 = vmatpush2.msra.mxu1 %v2337_v12  ;;  %3147 = vmatprep.subr.mxu0 %v2272_v13 }
 0x27e   : > { %3218 = vmatprep.subr.mxu1 %v2336_v18  ;;  %3148 = vmatpush2.msra.mxu0 %v2271_v19 }
 0x27f   : > { %3219 = vmatpush2.msra.mxu1 %v2335_v20  ;;  %3149 = vmatprep.subr.mxu0 %v2270_v25 }
 0x280   : > { %3220 = vmatprep.subr.mxu1 %v2334_v26  ;;  %3150 = vmatpush2.msra.mxu0 %v2269_v31 }
 0x281   : > { %3221 = vmatpush2.msra.mxu1 %v2333_v32  ;;  %3151 = vmatprep.subr.mxu0 %v2268_v37 }
 0x282   : > { %3222 = vmatprep.subr.mxu1 %v2332_v38  ;;  %3152 = vmatpush2.msra.mxu0 %v2267_v43 }
 0x283   : > { %3223 = vmatpush2.msra.mxu1 %v2331_v44  ;;  %3153 = vmatprep.subr.mxu0 %v2266_v49 }
 0x284   : > { %3224 = vmatprep.subr.mxu1 %v2330_v50  ;;  %3154 = vmatpush2.msra.mxu0 %v2265_v55 }
 0x285   : > { %3225 = vmatpush2.msra.mxu1 %v2329_v56  ;;  %3155 = vmatprep.subr.mxu0 %v2264_v58 }
 0x286   : > { %3226 = vmatprep.subr.mxu1 %v2328_v61  ;;  %3156 = vmatpush2.msra.mxu0 %v2263_v62 }
 0x287   : > { %3227 = vmatpush2.msra.mxu1 %v2327_v7  ;;  %3157 = vmatprep.subr.mxu0 %v2262_v4 }
 0x288   : > { %3228 = vmatprep.subr.mxu1 %v2326_v51  ;;  %3158 = vmatpush2.msra.mxu0 %v2261_v53 }
 0x289   : > { %3229 = vmatpush2.msra.mxu1 %v2325_v0  ;;  %3159 = vmatprep.subr.mxu0 %v2260_v1 }
 0x28a   : > { %3230 = vmatprep.subr.mxu1 %v2324_v45  ;;  %3160 = vmatpush2.msra.mxu0 %v2259_v63 }
 0x28b   : > { %3231 = vmatpush2.msra.mxu1 %v2323_v5  ;;  %3161 = vmatprep.subr.mxu0 %v2258_v6 }
 0x28c   : > { %3232 = vmatprep.subr.mxu1 %v2322_v57  ;;  %3162 = vmatpush2.msra.mxu0 %v2257_v60 }
 0x28d   : > { %3233 = vmatpush2.msra.mxu1 %v2321_v47  ;;  %3163 = vmatprep.subr.mxu0 %v2256_v27 }
 0x28e   : > { %3234 = vmatprep.subr.mxu1 %v2320_v3  ;;  %3164 = vmatpush2.msra.mxu0 %v2255_v46 }
 0x28f   : > { %3235 = vmatpush2.msra.mxu1 %v2319_v15  ;;  %3165 = vmatprep.subr.mxu0 %v2254_v17 }
 0x290   : > { %3236 = vmatprep.subr.mxu1 %v2318_v48  ;;  %3166 = vmatpush2.msra.mxu0 %v2253_v39 }
 0x291   : > { %3237 = vmatpush2.msra.mxu1 %v2317_v41  ;;  %3167 = vmatprep.subr.mxu0 %v2252_v52 }
 0x292   : > { %3238 = vmatprep.subr.mxu1 %v2316_v28  ;;  %3168 = vmatpush2.msra.mxu0 %v2251_v36 }
 0x293   : > { %3239 = vmatpush2.msra.mxu1 %v2315_v21  ;;  %3169 = vmatprep.subr.mxu0 %v2250_v34 }
 0x294   : > { %3240 = vmatprep.subr.mxu1 %v2314_v16  ;;  %3170 = vmatpush2.msra.mxu0 %v2249_v9 }
 0x295   : > { %3241 = vmatpush2.msra.mxu1 %v2313_v10  ;;  %3171 = vmatprep.subr.mxu0 %v2248_v42  ;;  %v2707_v54 = vpop.f32.mrf.mxu0 }
 0x296   : > { %3242 = vmatprep.subr.mxu1 %v2312_v22  ;;  %3172 = vmatpush2.msra.mxu0 %v2247_v8  ;;  %v2778_v12 = vpop.f32.mrf.mxu1 }
 0x297   : > { %3243 = vmatpush2.msra.mxu1 %v2311_v11  ;;  %3173 = vmatprep.subr.mxu0 %v2246_v2  ;;  %v2709_v13 = vpop.f32.mrf.mxu0  ;;  %v2779_v20 = vadd.f32 %v2778_v12, %v2707_v54 }
 0x298   : > { %3244 = vmatprep.subr.mxu1 %v2310_v35  ;;  %3174 = vmatpush2.msra.mxu0 %v2245_v29  ;;  %v2780_v19 = vpop.f32.mrf.mxu1 }
 0x299   : > { %3175 = vmatprep.mubr.f32.mxu0 %v2959_v23  ;;  %3245 = vmatpush2.msra.mxu1 %v2309_v40  ;;  %v2781_v31 = vadd.f32 %v2780_v19, %v2709_v13 }
 0x29a   : > { %3246 = vmatprep.mubr.f32.mxu1 %v2960_v30  ;;  %3176 = vmatmul.mubr.f32.vlgmr.msra.gmra.mxu0 %v2951_v24 }
 0x29b   : > { %3247 = vmatmul.mubr.f32.vlgmr.msra.gmra.mxu1 %v2958_v33 }
 0x2d6   : > { %v2849_v18 = vpop.f32.mrf.mxu0 }
 0x2d7   : > { %v2850_v32 = vadd.f32 %v2849_v18, %v2779_v20  ;;  %v3295_v20 = vsub.s32 0, %v5495_v59 }
 0x2d8   : > { %v2920_v25 = vpop.f32.mrf.mxu1  ;;  %v2851_v26 = vpop.f32.mrf.mxu0 }
 0x2d9   : > { %v2852_v38 = vadd.f32 %v2851_v26, %v2781_v31  ;;  %v2921_v44 = vadd.f32 %v2920_v25, %v2850_v32  ;;  %v3291_v25 = vld [vmem:[%s7547_s2] sm:$0x3]  ;;  %v3299_v26 = vsub.s32 1, %v5495_v59 }
 0x2da   : > { %v2922_v43 = vpop.f32.mrf.mxu1  ;;  %v3296_v31 = vrot.slane %v3291_v25, %v3295_v20  ;;  %v3311_v32 = vld [vmem:[%s7548_s3] sm:$0x3] }
 0x2db   : > { %v2923_v55 = vadd.f32 %v2922_v43, %v2852_v38  ;;  %v3316_v43 = vrot.slane %v3311_v32, %v3295_v20 }
 0x318   : > { %v3035_v37 = vpop.f32.mrf.mxu0 }
 0x319   : > { %v3036_v56 = vadd.f32 %v3035_v37, %v2921_v44  ;;  %v3300_v37 = vrot.slane %v3291_v25, %v3299_v26 }
 0x31a   : > { %v3106_v49 = vpop.f32.mrf.mxu1  ;;  %v3037_v50 = vpop.f32.mrf.mxu0 }
 0x31b   : > { %v3038_v58 = vadd.f32 %v3037_v50, %v2923_v55  ;;  %v3107_v62 = vadd.f32 %v3106_v49, %v3036_v56  ;;  %v3320_v55 = vrot.slane %v3311_v32, %v3299_v26 }
 0x31c   : > { %v3108_v61 = vpop.f32.mrf.mxu1 }
 0x31d   : > { %v3109_v51 = vadd.f32 %v3108_v61, %v3038_v58 }
 0x35a   : > { %v3177_v7 = vpop.f32.mrf.mxu0 }
 0x35b   : > { %v3248_v4 = vpop.f32.mrf.mxu1  ;;  %v3178_v53 = vadd.f32 %v3177_v7, %v3107_v62 }
 0x35c   : > { %v3179_v0 = vpop.f32.mrf.mxu0 }
 0x35d   : > { %v3249_v1 = vadd.f32 %v3248_v4, %v3178_v53  ;;  %v3180_v45 = vadd.f32 %v3179_v0, %v3109_v51  ;;  %v3250_v63 = vpop.f32.mrf.mxu1  ;;  %v3377_v0 = vld [vmem:[%s7549_s4 + $0xf8] sm:$0xff] }
 0x35e   : > { %3556 = vmatprep.subr.mxu0 %v3377_v0 }
 0x35f   : > { %v3254_v5 = vsel %vm3253_vm8, %v3249_v1, 0.0  ;;  %v3251_v6 = vadd.f32 %v3250_v63, %v3180_v45  ;;  %v3376_v45 = vld [vmem:[%s7549_s4 + $0xf0] sm:$0xff] }
 0x360   : > { %v3255_v57 = vrot.slane %v3254_v5, 4  ;;  %v3360_v63 = vld [vmem:[%s7549_s4 + $0x70] sm:$0xff] }
 0x361   : > { %v3261_v60 = vsel %vm3253_vm8, %v3251_v6, 0.0 }
 0x362   : > { %v3256_v47 = vadd.f32 %v3255_v57, %v3254_v5  ;;  %v3262_v27 = vrot.slane %v3261_v60, 4  ;;  %v3375_v5 = vld [vmem:[%s7549_s4 + $0xe8] sm:$0xff]  ;;  %v3374_v57 = vld [vmem:[%s7549_s4 + $0xe0] sm:$0xff] }
 0x364   : > { %v3257_v3 = vrot.slane %v3256_v47, 2  ;;  %v3263_v46 = vadd.f32 %v3262_v27, %v3261_v60  ;;  %v3358_v60 = vld [vmem:[%s7549_s4 + $0x60] sm:$0xff]  ;;  %v3357_v27 = vld [vmem:[%s7549_s4 + $0x58] sm:$0xff] }
 0x366   : > { %v3258_v15 = vadd.f32 %v3257_v3, %v3256_v47  ;;  %v3264_v17 = vrot.slane %v3263_v46, 2  ;;  %v3373_v47 = vld [vmem:[%s7549_s4 + $0xd8] sm:$0xff]  ;;  %v3372_v3 = vld [vmem:[%s7549_s4 + $0xd0] sm:$0xff] }
 0x368   : > { %v3259_v48 = vrot.slane %v3258_v15, 1  ;;  %v3265_v39 = vadd.f32 %v3264_v17, %v3263_v46  ;;  %v3356_v46 = vld [vmem:[%s7549_s4 + $0x50] sm:$0xff] }
 0x36a   : > { %v3260_v41 = vadd.f32 %v3259_v48, %v3258_v15  ;;  %v3266_v14 = vrot.slane %v3265_v39, 1  ;;  %v3371_v15 = vld [vmem:[%s7549_s4 + $0xc8] sm:$0xff] }
 0x36c   : > { %v3269_v52 = vmul.f32 0.5, %v3260_v41  ;;  %v3267_v28 = vadd.f32 %v3266_v14, %v3265_v39 }
 0x36e   : > { %v3271_v36 = vsub.f32 %v3249_v1, %v3269_v52  ;;  %v3270_v21 = vmul.f32 0.5, %v3267_v28  ;;  %v3361_v1 = vld [vmem:[%s7549_s4 + $0x78] sm:$0xff] }
 0x36f   : > { %3557 = vmatpush3.msra.mxu0 %v3361_v1 }
 0x370   : > { %v3273_v34 = vmul.f32 %v3271_v36, %v3271_v36  ;;  %v3272_v16 = vsub.f32 %v3251_v6, %v3270_v21  ;;  %v3303_v38 = vmul.f32 %v3296_v31, %v3271_v36  ;;  %3558 = vmatprep.subr.mxu0 %v3376_v45  ;;  %v3359_v6 = vld [vmem:[%s7549_s4 + $0x68] sm:$0xff] }
 0x371   : > { %3559 = vmatpush3.msra.mxu0 %v3360_v63 }
 0x372   : > { %v3275_v24 = vsel %vm3253_vm8, %v3273_v34, 0.0  ;;  %v3274_v9 = vmul.f32 %v3272_v16, %v3272_v16  ;;  %v3304_v50 = vmul.f32 %v3300_v37, %v3272_v16  ;;  %3560 = vmatprep.subr.mxu0 %v3375_v5  ;;  %v3355_v34 = vld [vmem:[%s7549_s4 + $0x48] sm:$0xff]  ;;  %v3370_v16 = vld [vmem:[%s7549_s4 + $0xc0] sm:$0xff] }
 0x373   : > { %v3276_v10 = vrot.slane %v3275_v24, 4  ;;  %3561 = vmatpush3.msra.mxu0 %v3359_v6 }
 0x374   : > { %v3282_v33 = vsel %vm3253_vm8, %v3274_v9, 0.0  ;;  %3562 = vmatprep.subr.mxu0 %v3374_v57  ;;  %v3369_v9 = vld [vmem:[%s7549_s4 + $0xb8] sm:$0xff] }
 0x375   : > { %v3277_v42 = vadd.f32 %v3276_v10, %v3275_v24  ;;  %v3283_v22 = vrot.slane %v3282_v33, 4  ;;  %3563 = vmatpush3.msra.mxu0 %v3358_v60  ;;  %v3354_v24 = vld [vmem:[%s7549_s4 + $0x40] sm:$0xff]  ;;  %v3353_v10 = vld [vmem:[%s7549_s4 + $0x38] sm:$0xff] }
 0x376   : > { %3564 = vmatprep.subr.mxu0 %v3373_v47 }
 0x377   : > { %v3278_v8 = vrot.slane %v3277_v42, 2  ;;  %v3284_v11 = vadd.f32 %v3283_v22, %v3282_v33  ;;  %3565 = vmatpush3.msra.mxu0 %v3357_v27  ;;  %v3368_v33 = vld [vmem:[%s7549_s4 + $0xb0] sm:$0xff]  ;;  %v3367_v22 = vld [vmem:[%s7549_s4 + $0xa8] sm:$0xff] }
 0x378   : > { %3566 = vmatprep.subr.mxu0 %v3372_v3 }
 0x379   : > { %v3279_v2 = vadd.f32 %v3278_v8, %v3277_v42  ;;  %v3285_v35 = vrot.slane %v3284_v11, 2  ;;  %3567 = vmatpush3.msra.mxu0 %v3356_v46  ;;  %v3352_v42 = vld [vmem:[%s7549_s4 + $0x30] sm:$0xff]  ;;  %v3351_v8 = vld [vmem:[%s7549_s4 + $0x28] sm:$0xff] }
 0x37a   : > { %3568 = vmatprep.subr.mxu0 %v3371_v15 }
 0x37b   : > { %v3280_v23 = vrot.slane %v3279_v2, 1  ;;  %v3286_v29 = vadd.f32 %v3285_v35, %v3284_v11  ;;  %3569 = vmatpush3.msra.mxu0 %v3355_v34  ;;  %v3366_v11 = vld [vmem:[%s7549_s4 + $0xa0] sm:$0xff]  ;;  %v3365_v35 = vld [vmem:[%s7549_s4 + $0x98] sm:$0xff] }
 0x37c   : > { %3570 = vmatprep.subr.mxu0 %v3370_v16 }
 0x37d   : > { %v3281_v30 = vadd.f32 %v3280_v23, %v3279_v2  ;;  %v3287_v40 = vrot.slane %v3286_v29, 1  ;;  %3571 = vmatpush3.msra.mxu0 %v3354_v24  ;;  %v3350_v2 = vld [vmem:[%s7549_s4 + $0x20] sm:$0xff]  ;;  %v3349_v23 = vld [vmem:[%s7549_s4 + $0x18] sm:$0xff] }
 0x37e   : > { %3572 = vmatprep.subr.mxu0 %v3369_v9 }
 0x37f   : > { %v3289_v54 = vmul.f32 0.5, %v3281_v30  ;;  %v3288_v12 = vadd.f32 %v3287_v40, %v3286_v29  ;;  %3573 = vmatpush3.msra.mxu0 %v3353_v10  ;;  %v3364_v29 = vld [vmem:[%s7549_s4 + $0x90] sm:$0xff]  ;;  %v3363_v40 = vld [vmem:[%s7549_s4 + $0x88] sm:$0xff] }
 0x380   : > { %3574 = vmatprep.subr.mxu0 %v3368_v33  ;;  %v3348_v30 = vld [vmem:[%s7549_s4 + $0x10] sm:$0xff] }
 0x381   : > { %v3305_v13 = vadd.f32 1e-05, %v3289_v54  ;;  %v3290_v18 = vmul.f32 0.5, %v3288_v12  ;;  %3575 = vmatpush3.msra.mxu0 %v3352_v42  ;;  %v3347_v54 = vld [vmem:[%s7549_s4 + $0x8] sm:$0xff]  ;;  %v3362_v12 = vld [vmem:[%s7549_s4 + $0x80] sm:$0xff] }
 0x382   : > { %3576 = vmatprep.subr.mxu0 %v3367_v22 }
 0x383   : > { %3635 = vrsqrt.f32 %v3305_v13  ;;  %v3306_v19 = vadd.f32 1e-05, %v3290_v18  ;;  %3577 = vmatpush3.msra.mxu0 %v3351_v8  ;;  %v3346_v13 = vld [vmem:[%s7549_s4] sm:$0xff] }
 0x384   : > { %3578 = vmatprep.subr.mxu0 %v3366_v11 }
 0x385   : > { %3637 = vrsqrt.f32 %v3306_v19  ;;  %3579 = vmatpush3.msra.mxu0 %v3350_v2 }
 0x386   : > { %3580 = vmatprep.subr.mxu0 %v3365_v35 }
 0x387   : > { %3581 = vmatpush3.msra.mxu0 %v3349_v23 }
 0x388   : > { %3582 = vmatprep.subr.mxu0 %v3364_v29 }
 0x389   : > { %3583 = vmatpush3.msra.mxu0 %v3348_v30 }
 0x38a   : > { %3584 = vmatprep.subr.mxu0 %v3363_v40 }
 0x38b   : > { %3585 = vmatpush3.msra.mxu0 %v3347_v54 }
 0x38c   : > { %3586 = vmatprep.subr.mxu0 %v3362_v12 }
 0x38d   : > { %3587 = vmatpush3.msra.mxu0 %v3346_v13 }
 0x390   : > { %v3636_v44 = vpop.eup %3635 }
 0x391   : > { %v3309_v49 = vmul.f32 %v3636_v44, %v3303_v38 }
 0x392   : > { %v3638_v56 = vpop.eup %3637 }
 0x393   : > { %v3310_v58 = vmul.f32 %v3638_v56, %v3304_v50  ;;  %v3323_v61 = vadd.f32 %v3316_v43, %v3309_v49 }
 0x395   : > { %v3324_v62 = vadd.f32 %v3320_v55, %v3310_v58  ;;  %v3325_v7 = vmul.f32 %v3323_v61, %v3323_v61 }
 0x397   : > { %v3326_v4 = vmul.f32 %v3324_v62, %v3324_v62  ;;  %v3327_v59 = vsel %vm3253_vm8, %v3325_v7, 0.0 }
 0x399   : > { %v3328_v51 = vsel %vm3253_vm8, %v3326_v4, 0.0 }
 0x39a   : > { %v3329_v53 = vadd.f32 %v3328_v51, %v3327_v59 }
 0x39c   : > { %3330 = vadd.xlane.f32.xlu0 %v3329_v53 }
 0x425   : > { %v3331_v17 = vpop.xlane.xlu0 %3330 }
 0x426   : > { %3639 = vrsqrt.f32 %v3331_v17 }
 0x433   : > { %v3640_v48 = vpop.eup %3639 }
 0x434   : > { %v3333_v39 = vmul.f32 %v3640_v48, %v3323_v61  ;;  %v3334_v41 = vmul.f32 %v3640_v48, %v3324_v62 }
 0x436   : > { %v3335_v14 = vmul.f32 %v3333_v39, %v3333_v39  ;;  %v3336_v52 = vmul.f32 %v3334_v41, %v3334_v41 }
 0x438   : > { %v3337_v28 = vsel %vm3253_vm8, %v3335_v14, 0.0  ;;  %v3338_v36 = vsel %vm3253_vm8, %v3336_v52, 0.0 }
 0x439   : > { %v3339_v21 = vadd.f32 %v3338_v36, %v3337_v28 }
 0x43b   : > { %3340 = vadd.xlane.f32.xlu0 %v3339_v21 }
 0x4c4   : > { %v3341_v18 = vpop.xlane.xlu0 %3340 }
 0x4c5   : > { %v3342_v19 = vmax.f32 %v3341_v18, 1e-24 }
 0x4c7   : > { %3641 = vrsqrt.f32 %v3342_v19 }
 0x4d4   : > { %v3642_v20 = vpop.eup %3641 }
 0x4d5   : > { %v3344_v25 = vmul.f32 %v3642_v20, %v3333_v39  ;;  %v3345_v26 = vmul.f32 %v3642_v20, %v3334_v41 }
 0x4d7   : > { %3442 = vmatprep.mubr.f32.mxu0 %v3345_v26  ;;  %v3452_v31 = vcombine.low %v3344_v25, %v3345_v26 }
 0x4d8   : > { %3443 = vmatmul.mubr.f32.vlgmr.msra.gmra.mxu0 %v3344_v25 }
 0x4d9   : > { %3547 = vst.sshfl [vmem:[#allocation7] sm:$0x33 pattern:$0x76325410] %v3452_v31 }
 0x598   : > { %v3588_v32 = vpop.f32.mrf.mxu0 }
 0x59a   : > { %v3589_v37 = vpop.f32.mrf.mxu0 }
 0x59b   : > { %v3590_v38 = vadd.f32 %v3589_v37, %v3588_v32 }
 0x59d   : > { %v3448_v43 = vmul.f32 30.0, %v3590_v38 }
 0x59f   : > { %3449 = vst [vmem:[#allocation5] sm:$0x3] %v3448_v43 }
 0x5a0 PF: > { %p3599_p10 = scmp.eq.s32.totalorder %s4035_s24, 1  ;;  %s3982_s7 = smov [#allocation5]  }
 0x5a1   : > { %s3469_s8 = sshll.u32 %s3982_s7, 4  ;;  %s3983_s9 = smov [#allocation7]   ;;  %s3470_s8 = int_to_ptr.vmem [resolvable:$true] %s3469_s8 }
 0x5a2   : > { %s3480_s10 = sshll.u32 %s3983_s9, 4  ;;  %s3643_s11 = scalar_lea.vmem %s3470_s8, 32  ;;  %s3481_s10 = int_to_ptr.vmem [resolvable:$true] %s3480_s10 }
 0x5a3   : > { %p3644_p11 = scmp.ne.s32.totalorder %s3470_s8, %s3643_s11  ;;  %p3650_p0 = scmp.lt.s32.totalorder %s3470_s8, %s3470_s8 }
 0x5a4   : > { %p3651_p1 = scmp.lt.s32.totalorder %s3643_s11, %s3643_s11 }
 0x5a5   : > { %p3645_p12 = pnand %p3644_p11, %p3599_p10 }
 0x5a6   : > { %p3652_p2 = por %p3651_p1, %p3650_p0 }
 0x5a7   : > { %p3646_p13 = pneg %p3645_p12 }
 0x5a9   : > { %p3653_p3 = pnand %p3652_p2, %p3646_p13 }
 0x5ab   : > { %3656 = shalt.err (!%p3653_p3)
}
 0x5ac   : > { %3592 = dma.vmem_to_hbm [thread:$0]  (%p3599_p10), %s3470_s8, 32, %s7550_s5, [#allocation6]  }
 0x5ad   : > { %s3667_s14 = scalar_lea.vmem %s3481_s10, 64  ;;  %p3674_p7 = scmp.lt.s32.totalorder %s3481_s10, %s3481_s10 }
 0x5ae   : > { %p3668_p4 = scmp.ne.s32.totalorder %s3481_s10, %s3667_s14  ;;  %p3675_p8 = scmp.lt.s32.totalorder %s3667_s14, %s3667_s14 }
 0x5b0   : > { %p3669_p5 = pnand %p3668_p4, %p3599_p10  ;;  %p3676_p9 = por %p3675_p8, %p3674_p7 }
 0x5b2   : > { %p3670_p6 = pneg %p3669_p5 }
 0x5b4   : > { %p3677_p11 = pnand %p3676_p9, %p3670_p6 }
 0x5b6   : > { %3680 = shalt.err (!%p3677_p11)
}
 0x5b7   : > { %3594 = dma.vmem_to_hbm [thread:$0]  (%p3599_p10), %s3481_s10, 64, %s7551_s6, [#allocation8]  }
 0x5b8   : > { %3704 = dma.done.wait (%p3599_p10), [#allocation6], 32  }
 0x5b9   : > { %3706 = vsyncadd (%p3599_p10), [#allocation6], 4294967264 }
 0x5ba   : > { %3708 = dma.done.wait (%p3599_p10), [#allocation8], 64  }
 0x5bb   : > { %3710 = vsyncadd (%p3599_p10), [#allocation8], 4294967232 }
 0x5bc PF: > { %p16_p12 = scmp.ge.s32.totalorder %s4038_s25, 4   ;;  %s8369_s21 = smov %s3973_s22 }
 0x5bd   : > { %s8370_s22 = smov %s4047_s28  ;;  %s8371_s23 = smov %s4038_s25 }
 0x5be   :  { %18 = sbr.rel (!%p16_p12) target bundleno = 3 (0x3), region = 111 }
 0x5c3   :  { %3497 = vsyncpa [#allocation6], 1 }
 0x5c4   :  { %3499 = vsyncpa [#allocation6 + $0x1], 1 }
 0x5c5   :  { %3500 = vsyncpa [#allocation8], 1 }

</bundles_post_ra>
